<compile_context>
chip_gen: v7x
topology: tpu7x:2x2x1
jax: 0.10.0
libtpu: 0.0.40
codegen_flags: <defaults>
</compile_context>

<pallas_src>
import numpy as np
import jax
import jax.numpy as jnp
from jax import lax
from jax.experimental import pallas as pl
from jax.experimental.pallas import tpu as pltpu


def _round_up(x, m):
    return ((x + m - 1) // m) * m


# ----------------------------- Pallas kernels ------------------------------ #

def lstm_stack_kernel(x_ref, wih0_ref, wihR_ref, whh_ref, b_ref, out_ref, gx_sc):
    """All LSTM layers, whole sequence, single kernel invocation.

    x_ref    : (T, Bt, D)  bf16      input sequence (time-major)
    wih0_ref : (D, 4H)     bf16      layer-0 input weights (transposed)
    wihR_ref : (max(L-1,1), H, 4H) bf16  layers 1..L-1 input weights
    whh_ref  : (L, H, 4H)  bf16      recurrent weights (transposed)
    b_ref    : (L, 1, 4H)  f32       b_ih + b_hh per layer
    out_ref  : (T, Bt, H)  bf16      final-layer hidden states; also used as the
                                     resident inter-layer activation buffer
    gx_sc    : (T, Bt, 4H) bf16      hoisted input-projection scratch
    PyTorch gate order (i, f, g, o) is preserved.
    """
    T, Bt, D = x_ref.shape
    L, H, H4 = whh_ref.shape
    unroll = T if T <= 16 else 8   # bounded unroll: keep LLO visibility, no vreg blowup

    def recurrence(layer):
        whh = whh_ref[layer]                                   # (H, 4H) bf16, resident
        def step(t, carry):
            h, c = carry                                       # f32 carries
            gates = gx_sc[t].astype(jnp.float32) + jnp.dot(
                h.astype(jnp.bfloat16), whh, preferred_element_type=jnp.float32)
            i_f = jax.nn.sigmoid(gates[:, :2 * H])             # fused i|f sigmoid
            g = jnp.tanh(gates[:, 2 * H:3 * H])
            o = jax.nn.sigmoid(gates[:, 3 * H:])
            c_new = i_f[:, H:] * c + i_f[:, :H] * g
            h_new = o * jnp.tanh(c_new)
            out_ref[t] = h_new.astype(out_ref.dtype)
            return h_new, c_new
        h0 = jnp.zeros((Bt, H), jnp.float32)
        c0 = jnp.zeros((Bt, H), jnp.float32)
        lax.fori_loop(0, T, step, (h0, c0), unroll=unroll)

    # Layer 0: one MXU-friendly matmul computes the input projection for every
    # timestep at once (bias folded in).  x is already bf16.
    x_all = x_ref[...].reshape(T * Bt, D)
    gx0 = jnp.dot(x_all, wih0_ref[...], preferred_element_type=jnp.float32) + b_ref[0]
    gx_sc[...] = gx0.reshape(T, Bt, H4).astype(gx_sc.dtype)
    recurrence(0)

    # Layers 1..L-1: previous layer's output is read straight from out_ref
    # (still in VMEM) -- no HBM round trip between layers.
    for l in range(1, L):
        h_all = out_ref[...].reshape(T * Bt, H)
        gx = jnp.dot(h_all, wihR_ref[l - 1],
                     preferred_element_type=jnp.float32) + b_ref[l]
        gx_sc[...] = gx.reshape(T, Bt, H4).astype(gx_sc.dtype)
        recurrence(l)


def linear_kernel(x_ref, w_ref, b_ref, o_ref):
    # x_ref and w_ref are already bf16 (cast hoisted out of the kernel).
    o_ref[...] = (jnp.dot(x_ref[...], w_ref[...],
                          preferred_element_type=jnp.float32)
                  + b_ref[...]).astype(o_ref.dtype)


# ------------------------------- wrappers ----------------------------------- #

def run_lstm_stack(x_tbd, wih0, wihR, whh, bias):
    """x_tbd: (T, B, D) bf16 -> (T, B, H) bf16.  All layers fused in one call."""
    T, B, D = x_tbd.shape
    L, H, H4 = whh.shape

    # Split the batch over a leading "parallel" grid axis (second TensorCore on
    # v7x) only when each piece stays a sublane-dense multiple of 8.
    # NOTE: the per-step h @ W_hh only uses Bt of the 256 MXU rows -- batching
    # more independent sequences per call raises throughput nearly for free.
    batch_tile = B // 2 if (B >= 16 and B % 16 == 0) else B
    nb = B // batch_tile

    # Explicit VMEM budget (double-buffer factor on pipelined blocks + scratch).
    bytes_needed = (
        2 * T * batch_tile * D * 2            # x  (bf16)
        + 2 * T * batch_tile * H * 2          # out (bf16)
        + T * batch_tile * H4 * 2             # gx scratch (bf16)
        + 2 * (D * H4 + max(L - 1, 1) * H * H4 + L * H * H4) * 2   # weights bf16
        + 2 * L * H4 * 4)                     # biases f32
    vmem_limit = int(min(64 * 1024 * 1024, max(2 * bytes_needed, 8 * 1024 * 1024)))
    # TODO(synk): force single-buffering of the constant-index weight blocks
    # (pipeline_mode=pl.Buffered(1)) if Mosaic double-buffers them at large H.

    return pl.pallas_call(
        lstm_stack_kernel,
        out_shape=jax.ShapeDtypeStruct((T, B, H), jnp.bfloat16),
        grid=(nb,),
        in_specs=[
            pl.BlockSpec((T, batch_tile, D), lambda i: (0, i, 0)),
            pl.BlockSpec((D, H4), lambda i: (0, 0)),
            pl.BlockSpec((max(L - 1, 1), H, H4), lambda i: (0, 0, 0)),
            pl.BlockSpec((L, H, H4), lambda i: (0, 0, 0)),
            pl.BlockSpec((L, 1, H4), lambda i: (0, 0, 0)),
        ],
        out_specs=pl.BlockSpec((T, batch_tile, H), lambda i: (0, i, 0)),
        scratch_shapes=[pltpu.VMEM((T, batch_tile, H4), jnp.bfloat16)],   # gates_x
        compiler_params=pltpu.CompilerParams(
            dimension_semantics=("parallel",),
            vmem_limit_bytes=vmem_limit),
    )(x_tbd, wih0, wihR, whh, bias)


def run_linear(x, w_t, bias):
    """x: (N, H) -> (N, V) f32 logits.  w_t: (H, V) bf16, bias: (1, V) f32.

    Tiled over (rows, vocab); rows padded up to a sublane multiple so stores
    stay unmasked; input cast to bf16 once outside the kernel.
    """
    N, H = x.shape
    V = w_t.shape[1]
    x = x.astype(jnp.bfloat16)

    Np = _round_up(N, 8)
    tile_n = min(256, Np)                    # 256 rows matches the v6e/v7x MXU
    Np = _round_up(Np, tile_n)
    if Np != N:
        x = jnp.pad(x, ((0, Np - N), (0, 0)))

    if V % 512 == 0:
        tile_v = 512
    elif V % 256 == 0:
        tile_v = 256
    elif V % 128 == 0:
        tile_v = 128
    else:
        tile_v = V

    out = pl.pallas_call(
        linear_kernel,
        out_shape=jax.ShapeDtypeStruct((Np, V), jnp.float32),
        grid=(Np // tile_n, V // tile_v),
        in_specs=[
            pl.BlockSpec((tile_n, H), lambda i, j: (i, 0)),
            pl.BlockSpec((H, tile_v), lambda i, j: (0, j)),
            pl.BlockSpec((1, tile_v), lambda i, j: (0, j)),
        ],
        out_specs=pl.BlockSpec((tile_n, tile_v), lambda i, j: (i, j)),
        compiler_params=pltpu.CompilerParams(
            dimension_semantics=("parallel", "parallel")),
    )(x, w_t, bias)
    return out[:N]


# --------------------------- full forward pass ------------------------------ #

def lstm_custom_forward(features, captions, lengths, params):
    """
    features: (B, E) f32        -- image features (first "token")
    captions: (B, T-1) int32    -- token ids
    lengths:  python list[int]  -- valid lengths (descending, <= T), as in
                                   pack_padded_sequence(enforce_sorted=True)
    returns:  (sum(lengths), vocab_size) f32 logits, packed-sequence order
    """
    emb_w = params["embedding"]                               # (V, E)

    # Embedding lookup + prepend features as timestep 0 (JAX glue).
    # TODO(synk): optionally fuse this gather into the layer-0 kernel via
    # scalar-prefetched caption ids + a pl.Element row BlockSpec on emb_w.
    emb = jnp.take(emb_w, captions, axis=0)                   # (B, T-1, E)
    x = jnp.concatenate([features[:, None, :], emb], axis=1)  # (B, T, E)
    x = jnp.transpose(x, (1, 0, 2)).astype(jnp.bfloat16)      # (T, B, E) bf16
    T, B, _ = x.shape

    # Fused multi-layer LSTM (all layers in one Pallas call, weights resident).
    wih0, wihR, whh, bias = params["lstm"]
    h = run_lstm_stack(x, wih0, wihR, whh, bias)              # (T, B, H) bf16

    # pack_padded_sequence(batch_first=True, enforce_sorted=True) ordering:
    # one host-precomputed flat index + a single gather (no per-t slicing).
    # NOTE: idx depends on `lengths`, so a new set of lengths retraces this path.
    lengths_np = np.asarray(lengths, dtype=np.int64)
    assert lengths_np.ndim == 1 and lengths_np.shape[0] == B
    assert np.all(lengths_np[:-1] >= lengths_np[1:]), \
        "lengths must be sorted descending (enforce_sorted=True semantics)"
    assert int(lengths_np.max()) <= T
    idx = np.concatenate(
        [t * B + np.arange(int((lengths_np > t).sum())) for t in range(T)]
    ).astype(np.int32)
    h_flat = h.reshape(T * B, h.shape[-1])
    packed = jnp.take(h_flat, jnp.asarray(idx), axis=0)       # (sum(lengths), H) bf16
    # TODO(synk): fold this gather into run_linear with
    # PrefetchScalarGridSpec(num_scalar_prefetch=1) + a row-gather index_map to
    # skip materializing `packed` in HBM.

    # Output projection (tiled Pallas matmul).
    w_lin_t, b_lin = params["linear"]
    return run_linear(packed, w_lin_t, b_lin)                 # (sum(lengths), V)


# ------------------------------- main --------------------------------------- #

if __name__ == "__main__":
    # Small but lane/sublane-aligned configuration (H, 4H, V multiples of 128;
    # B = 8 fills the sublane dimension).
    vocab_size = 256
    embedding_dim = 128
    hidden_size = 128
    num_layers = 2
    B = 8
    cap_len = 7
    T = cap_len + 1                                   # +1 for prepended features
    lengths = [8, 8, 7, 6, 5, 4, 3, 2]                # descending, sum = 43

    key = jax.random.PRNGKey(0)
    keys = jax.random.split(key, 4 * num_layers + 5)

    # Parameters (deterministic synthetic init, PyTorch shapes -> transposed,
    # matmul weights stored in bf16, biases f32, gate math f32 in-kernel).
    emb_w = jax.random.normal(keys[0], (vocab_size, embedding_dim),
                              jnp.float32) * 0.1

    wih_list, whh_list, b_list = [], [], []
    for layer in range(num_layers):
        in_dim = embedding_dim if layer == 0 else hidden_size
        k = keys[1 + 4 * layer:5 + 4 * layer]
        w_ih = jax.random.normal(k[0], (4 * hidden_size, in_dim),
                                 jnp.float32) * 0.1          # PyTorch (4H, D)
        w_hh = jax.random.normal(k[1], (4 * hidden_size, hidden_size),
                                 jnp.float32) * 0.1          # PyTorch (4H, H)
        b_ih = jax.random.normal(k[2], (4 * hidden_size,), jnp.float32) * 0.1
        b_hh = jax.random.normal(k[3], (4 * hidden_size,), jnp.float32) * 0.1
        wih_list.append(w_ih.T.astype(jnp.bfloat16))         # (D, 4H)
        whh_list.append(w_hh.T.astype(jnp.bfloat16))         # (H, 4H)
        b_list.append((b_ih + b_hh)[None, :])                # (1, 4H) f32

    wih0 = wih_list[0]                                        # (D, 4H)
    if num_layers > 1:
        wihR = jnp.stack(wih_list[1:], axis=0)                # (L-1, H, 4H)
    else:
        wihR = jnp.zeros((1, hidden_size, 4 * hidden_size), jnp.bfloat16)
    whh = jnp.stack(whh_list, axis=0)                         # (L, H, 4H)
    bias = jnp.stack(b_list, axis=0)                          # (L, 1, 4H)

    kk = keys[1 + 4 * num_layers:]
    w_lin = jax.random.normal(kk[0], (vocab_size, hidden_size),
                              jnp.float32) * 0.1              # PyTorch (V, H)
    b_lin = jax.random.normal(kk[1], (vocab_size,), jnp.float32) * 0.1

    params = {
        "embedding": emb_w,
        "lstm": (wih0, wihR, whh, bias),
        "linear": (w_lin.T.astype(jnp.bfloat16), b_lin[None, :]),
    }

    # Inputs.
    features = jax.random.normal(kk[2], (B, embedding_dim), jnp.float32)
    captions = jax.random.randint(kk[3], (B, cap_len), 0, vocab_size,
                                  dtype=jnp.int32)

    out = lstm_custom_forward(features, captions, lengths, params)
    out = jax.block_until_ready(out)

    assert out.shape == (sum(lengths), vocab_size), out.shape
    assert bool(jnp.all(jnp.isfinite(out)))
    print("KERNEL_OK")
</pallas_src>

<mosaic_0001>
module attributes {stable_mosaic.version = 11 : i64} {
  func.func @lstm_stack_kernel(%arg0: i32, %arg1: memref<8x8x128xbf16, #tpu.memory_space<vmem>>, %arg2: memref<128x512xbf16, #tpu.memory_space<vmem>>, %arg3: memref<1x128x512xbf16, #tpu.memory_space<vmem>>, %arg4: memref<2x128x512xbf16, #tpu.memory_space<vmem>>, %arg5: memref<2x1x512xf32, #tpu.memory_space<vmem>>, %arg6: memref<8x8x128xbf16, #tpu.memory_space<vmem>>, %arg7: memref<8x8x512xbf16, #tpu.memory_space<vmem>>) attributes {dimension_semantics = [#tpu.dimension_semantics<parallel>], iteration_bounds = array<i64: 1>, scalar_prefetch = 0 : i64, scratch_operands = 1 : i64, tpu.core_type = #tpu.core_type<tc>, window_params = [{transform_indices = @transform_0, window_bounds = array<i64: 8, 8, 128>}, {pipeline_mode = #tpu.pipeline_mode<synchronous>, transform_indices = @transform_1, window_bounds = array<i64: 128, 512>}, {pipeline_mode = #tpu.pipeline_mode<synchronous>, transform_indices = @transform_2, window_bounds = array<i64: 1, 128, 512>}, {pipeline_mode = #tpu.pipeline_mode<synchronous>, transform_indices = @transform_3, window_bounds = array<i64: 2, 128, 512>}, {pipeline_mode = #tpu.pipeline_mode<synchronous>, transform_indices = @transform_4, window_bounds = array<i64: 2, 1, 512>}, {transform_indices = @transform_5, window_bounds = array<i64: 8, 8, 128>}]} {
    %c0 = arith.constant 0 : index
    %c0_0 = arith.constant 0 : index
    %c0_1 = arith.constant 0 : index
    %0 = vector.load %arg1[%c0, %c0_0, %c0_1] : memref<8x8x128xbf16, #tpu.memory_space<vmem>>, vector<8x8x128xbf16>
    %1 = vector.shape_cast %0 : vector<8x8x128xbf16> to vector<64x128xbf16>
    %c0_2 = arith.constant 0 : index
    %c0_3 = arith.constant 0 : index
    %2 = vector.load %arg2[%c0_2, %c0_3] : memref<128x512xbf16, #tpu.memory_space<vmem>>, vector<128x512xbf16>
    %cst = arith.constant dense<0.000000e+00> : vector<64x512xf32>
    %3 = tpu.matmul %1, %2, %cst {dimension_numbers = #tpu.dot_dimension_numbers<[1], [0], [0], [1], [0, 0, 1, 1], [], []>} : vector<64x128xbf16>, vector<128x512xbf16>, vector<64x512xf32> -> vector<64x512xf32>
    %c0_4 = arith.constant 0 : index
    %c0_5 = arith.constant 0 : index
    %c0_6 = arith.constant 0 : index
    %4 = vector.load %arg5[%c0_4, %c0_5, %c0_6] : memref<2x1x512xf32, #tpu.memory_space<vmem>>, vector<1x1x512xf32>
    %5 = vector.shape_cast %4 : vector<1x1x512xf32> to vector<1x512xf32>
    %6 = vector.broadcast %5 : vector<1x512xf32> to vector<64x512xf32>
    %7 = arith.addf %3, %6 : vector<64x512xf32>
    %8 = vector.shape_cast %7 : vector<64x512xf32> to vector<8x8x512xf32>
    %9 = arith.truncf %8 : vector<8x8x512xf32> to vector<8x8x512xbf16>
    %c0_7 = arith.constant 0 : index
    %c0_8 = arith.constant 0 : index
    %c0_9 = arith.constant 0 : index
    %10 = vector.load %arg7[%c0_7, %c0_8, %c0_9] : memref<8x8x512xbf16, #tpu.memory_space<vmem>>, vector<8x8x512xbf16>
    tpu.vector_store %arg7[%c0_7, %c0_8, %c0_9], %9 {strides = array<i32>} : memref<8x8x512xbf16, #tpu.memory_space<vmem>>, vector<8x8x512xbf16>,
    %c0_10 = arith.constant 0 : index
    %c0_11 = arith.constant 0 : index
    %c0_12 = arith.constant 0 : index
    %11 = vector.load %arg4[%c0_10, %c0_11, %c0_12] : memref<2x128x512xbf16, #tpu.memory_space<vmem>>, vector<1x128x512xbf16>
    %12 = vector.shape_cast %11 : vector<1x128x512xbf16> to vector<128x512xbf16>
    %cst_13 = arith.constant 0.000000e+00 : f32
    %13 = vector.broadcast %cst_13 : f32 to vector<8x128xf32>
    %cst_14 = arith.constant 0.000000e+00 : f32
    %14 = vector.broadcast %cst_14 : f32 to vector<8x128xf32>
    %c0_i32 = arith.constant 0 : i32
    %15 = arith.index_cast %c0_i32 : i32 to index
    %c0_15 = arith.constant 0 : index
    %c0_16 = arith.constant 0 : index
    %16 = vector.load %arg7[%15, %c0_15, %c0_16] : memref<8x8x512xbf16, #tpu.memory_space<vmem>>, vector<1x8x512xbf16>
    %17 = vector.shape_cast %16 : vector<1x8x512xbf16> to vector<8x512xbf16>
    %18 = arith.extf %17 : vector<8x512xbf16> to vector<8x512xf32>
    %19 = arith.truncf %13 : vector<8x128xf32> to vector<8x128xbf16>
    %cst_17 = arith.constant dense<0.000000e+00> : vector<8x512xf32>
    %20 = tpu.matmul %19, %12, %cst_17 {dimension_numbers = #tpu.dot_dimension_numbers<[1], [0], [0], [1], [0, 0, 1, 1], [], []>} : vector<8x128xbf16>, vector<128x512xbf16>, vector<8x512xf32> -> vector<8x512xf32>
    %21 = arith.addf %18, %20 : vector<8x512xf32>
    %22 = vector.extract_strided_slice %21 {offsets = [0, 0], sizes = [8, 256], strides = [1, 1]} : vector<8x512xf32> to vector<8x256xf32>
    %23 = arith.negf %22 : vector<8x256xf32>
    %24 = math.exp %23 : vector<8x256xf32>
    %cst_18 = arith.constant 1.000000e+00 : f32
    %25 = vector.broadcast %cst_18 : f32 to vector<8x256xf32>
    %26 = arith.addf %25, %24 : vector<8x256xf32>
    %27 = arith.divf %25, %26 : vector<8x256xf32>
    %28 = vector.extract_strided_slice %21 {offsets = [0, 256], sizes = [8, 128], strides = [1, 1]} : vector<8x512xf32> to vector<8x128xf32>
    %29 = math.tanh %28 : vector<8x128xf32>
    %30 = vector.extract_strided_slice %21 {offsets = [0, 384], sizes = [8, 128], strides = [1, 1]} : vector<8x512xf32> to vector<8x128xf32>
    %31 = arith.negf %30 : vector<8x128xf32>
    %32 = math.exp %31 : vector<8x128xf32>
    %cst_19 = arith.constant 1.000000e+00 : f32
    %33 = vector.broadcast %cst_19 : f32 to vector<8x128xf32>
    %34 = arith.addf %33, %32 : vector<8x128xf32>
    %35 = arith.divf %33, %34 : vector<8x128xf32>
    %36 = vector.extract_strided_slice %27 {offsets = [0, 128], sizes = [8, 128], strides = [1, 1]} : vector<8x256xf32> to vector<8x128xf32>
    %37 = arith.mulf %36, %14 : vector<8x128xf32>
    %38 = vector.extract_strided_slice %27 {offsets = [0, 0], sizes = [8, 128], strides = [1, 1]} : vector<8x256xf32> to vector<8x128xf32>
    %39 = arith.mulf %38, %29 : vector<8x128xf32>
    %40 = arith.addf %37, %39 : vector<8x128xf32>
    %41 = math.tanh %40 : vector<8x128xf32>
    %42 = arith.mulf %35, %41 : vector<8x128xf32>
    %43 = arith.truncf %42 : vector<8x128xf32> to vector<8x128xbf16>
    %44 = arith.index_cast %c0_i32 : i32 to index
    %c0_20 = arith.constant 0 : index
    %c0_21 = arith.constant 0 : index
    %45 = vector.load %arg6[%44, %c0_20, %c0_21] : memref<8x8x128xbf16, #tpu.memory_space<vmem>>, vector<1x8x128xbf16>
    %46 = vector.shape_cast %45 : vector<1x8x128xbf16> to vector<8x128xbf16>
    %47 = vector.shape_cast %43 : vector<8x128xbf16> to vector<1x8x128xbf16>
    tpu.vector_store %arg6[%44, %c0_20, %c0_21], %47 {strides = array<i32>} : memref<8x8x128xbf16, #tpu.memory_space<vmem>>, vector<1x8x128xbf16>,
    %c1_i32 = arith.constant 1 : i32
    %48 = arith.index_cast %c1_i32 : i32 to index
    %c0_22 = arith.constant 0 : index
    %c0_23 = arith.constant 0 : index
    %49 = vector.load %arg7[%48, %c0_22, %c0_23] : memref<8x8x512xbf16, #tpu.memory_space<vmem>>, vector<1x8x512xbf16>
    %50 = vector.shape_cast %49 : vector<1x8x512xbf16> to vector<8x512xbf16>
    %51 = arith.extf %50 : vector<8x512xbf16> to vector<8x512xf32>
    %52 = arith.truncf %42 : vector<8x128xf32> to vector<8x128xbf16>
    %cst_24 = arith.constant dense<0.000000e+00> : vector<8x512xf32>
    %53 = tpu.matmul %52, %12, %cst_24 {dimension_numbers = #tpu.dot_dimension_numbers<[1], [0], [0], [1], [0, 0, 1, 1], [], []>} : vector<8x128xbf16>, vector<128x512xbf16>, vector<8x512xf32> -> vector<8x512xf32>
    %54 = arith.addf %51, %53 : vector<8x512xf32>
    %55 = vector.extract_strided_slice %54 {offsets = [0, 0], sizes = [8, 256], strides = [1, 1]} : vector<8x512xf32> to vector<8x256xf32>
    %56 = arith.negf %55 : vector<8x256xf32>
    %57 = math.exp %56 : vector<8x256xf32>
    %cst_25 = arith.constant 1.000000e+00 : f32
    %58 = vector.broadcast %cst_25 : f32 to vector<8x256xf32>
    %59 = arith.addf %58, %57 : vector<8x256xf32>
    %60 = arith.divf %58, %59 : vector<8x256xf32>
    %61 = vector.extract_strided_slice %54 {offsets = [0, 256], sizes = [8, 128], strides = [1, 1]} : vector<8x512xf32> to vector<8x128xf32>
    %62 = math.tanh %61 : vector<8x128xf32>
    %63 = vector.extract_strided_slice %54 {offsets = [0, 384], sizes = [8, 128], strides = [1, 1]} : vector<8x512xf32> to vector<8x128xf32>
    %64 = arith.negf %63 : vector<8x128xf32>
    %65 = math.exp %64 : vector<8x128xf32>
    %cst_26 = arith.constant 1.000000e+00 : f32
    %66 = vector.broadcast %cst_26 : f32 to vector<8x128xf32>
    %67 = arith.addf %66, %65 : vector<8x128xf32>
    %68 = arith.divf %66, %67 : vector<8x128xf32>
    %69 = vector.extract_strided_slice %60 {offsets = [0, 128], sizes = [8, 128], strides = [1, 1]} : vector<8x256xf32> to vector<8x128xf32>
    %70 = arith.mulf %69, %40 : vector<8x128xf32>
    %71 = vector.extract_strided_slice %60 {offsets = [0, 0], sizes = [8, 128], strides = [1, 1]} : vector<8x256xf32> to vector<8x128xf32>
    %72 = arith.mulf %71, %62 : vector<8x128xf32>
    %73 = arith.addf %70, %72 : vector<8x128xf32>
    %74 = math.tanh %73 : vector<8x128xf32>
    %75 = arith.mulf %68, %74 : vector<8x128xf32>
    %76 = arith.truncf %75 : vector<8x128xf32> to vector<8x128xbf16>
    %77 = arith.index_cast %c1_i32 : i32 to index
    %c0_27 = arith.constant 0 : index
    %c0_28 = arith.constant 0 : index
    %78 = vector.load %arg6[%77, %c0_27, %c0_28] : memref<8x8x128xbf16, #tpu.memory_space<vmem>>, vector<1x8x128xbf16>
    %79 = vector.shape_cast %78 : vector<1x8x128xbf16> to vector<8x128xbf16>
    %80 = vector.shape_cast %76 : vector<8x128xbf16> to vector<1x8x128xbf16>
    tpu.vector_store %arg6[%77, %c0_27, %c0_28], %80 {strides = array<i32>} : memref<8x8x128xbf16, #tpu.memory_space<vmem>>, vector<1x8x128xbf16>,
    %c2_i32 = arith.constant 2 : i32
    %81 = arith.index_cast %c2_i32 : i32 to index
    %c0_29 = arith.constant 0 : index
    %c0_30 = arith.constant 0 : index
    %82 = vector.load %arg7[%81, %c0_29, %c0_30] : memref<8x8x512xbf16, #tpu.memory_space<vmem>>, vector<1x8x512xbf16>
    %83 = vector.shape_cast %82 : vector<1x8x512xbf16> to vector<8x512xbf16>
    %84 = arith.extf %83 : vector<8x512xbf16> to vector<8x512xf32>
    %85 = arith.truncf %75 : vector<8x128xf32> to vector<8x128xbf16>
    %cst_31 = arith.constant dense<0.000000e+00> : vector<8x512xf32>
    %86 = tpu.matmul %85, %12, %cst_31 {dimension_numbers = #tpu.dot_dimension_numbers<[1], [0], [0], [1], [0, 0, 1, 1], [], []>} : vector<8x128xbf16>, vector<128x512xbf16>, vector<8x512xf32> -> vector<8x512xf32>
    %87 = arith.addf %84, %86 : vector<8x512xf32>
    %88 = vector.extract_strided_slice %87 {offsets = [0, 0], sizes = [8, 256], strides = [1, 1]} : vector<8x512xf32> to vector<8x256xf32>
    %89 = arith.negf %88 : vector<8x256xf32>
    %90 = math.exp %89 : vector<8x256xf32>
    %cst_32 = arith.constant 1.000000e+00 : f32
    %91 = vector.broadcast %cst_32 : f32 to vector<8x256xf32>
    %92 = arith.addf %91, %90 : vector<8x256xf32>
    %93 = arith.divf %91, %92 : vector<8x256xf32>
    %94 = vector.extract_strided_slice %87 {offsets = [0, 256], sizes = [8, 128], strides = [1, 1]} : vector<8x512xf32> to vector<8x128xf32>
    %95 = math.tanh %94 : vector<8x128xf32>
    %96 = vector.extract_strided_slice %87 {offsets = [0, 384], sizes = [8, 128], strides = [1, 1]} : vector<8x512xf32> to vector<8x128xf32>
    %97 = arith.negf %96 : vector<8x128xf32>
    %98 = math.exp %97 : vector<8x128xf32>
    %cst_33 = arith.constant 1.000000e+00 : f32
    %99 = vector.broadcast %cst_33 : f32 to vector<8x128xf32>
    %100 = arith.addf %99, %98 : vector<8x128xf32>
    %101 = arith.divf %99, %100 : vector<8x128xf32>
    %102 = vector.extract_strided_slice %93 {offsets = [0, 128], sizes = [8, 128], strides = [1, 1]} : vector<8x256xf32> to vector<8x128xf32>
    %103 = arith.mulf %102, %73 : vector<8x128xf32>
    %104 = vector.extract_strided_slice %93 {offsets = [0, 0], sizes = [8, 128], strides = [1, 1]} : vector<8x256xf32> to vector<8x128xf32>
    %105 = arith.mulf %104, %95 : vector<8x128xf32>
    %106 = arith.addf %103, %105 : vector<8x128xf32>
    %107 = math.tanh %106 : vector<8x128xf32>
    %108 = arith.mulf %101, %107 : vector<8x128xf32>
    %109 = arith.truncf %108 : vector<8x128xf32> to vector<8x128xbf16>
    %110 = arith.index_cast %c2_i32 : i32 to index
    %c0_34 = arith.constant 0 : index
    %c0_35 = arith.constant 0 : index
    %111 = vector.load %arg6[%110, %c0_34, %c0_35] : memref<8x8x128xbf16, #tpu.memory_space<vmem>>, vector<1x8x128xbf16>
    %112 = vector.shape_cast %111 : vector<1x8x128xbf16> to vector<8x128xbf16>
    %113 = vector.shape_cast %109 : vector<8x128xbf16> to vector<1x8x128xbf16>
    tpu.vector_store %arg6[%110, %c0_34, %c0_35], %113 {strides = array<i32>} : memref<8x8x128xbf16, #tpu.memory_space<vmem>>, vector<1x8x128xbf16>,
    %c3_i32 = arith.constant 3 : i32
    %114 = arith.index_cast %c3_i32 : i32 to index
    %c0_36 = arith.constant 0 : index
    %c0_37 = arith.constant 0 : index
    %115 = vector.load %arg7[%114, %c0_36, %c0_37] : memref<8x8x512xbf16, #tpu.memory_space<vmem>>, vector<1x8x512xbf16>
    %116 = vector.shape_cast %115 : vector<1x8x512xbf16> to vector<8x512xbf16>
    %117 = arith.extf %116 : vector<8x512xbf16> to vector<8x512xf32>
    %118 = arith.truncf %108 : vector<8x128xf32> to vector<8x128xbf16>
    %cst_38 = arith.constant dense<0.000000e+00> : vector<8x512xf32>
    %119 = tpu.matmul %118, %12, %cst_38 {dimension_numbers = #tpu.dot_dimension_numbers<[1], [0], [0], [1], [0, 0, 1, 1], [], []>} : vector<8x128xbf16>, vector<128x512xbf16>, vector<8x512xf32> -> vector<8x512xf32>
    %120 = arith.addf %117, %119 : vector<8x512xf32>
    %121 = vector.extract_strided_slice %120 {offsets = [0, 0], sizes = [8, 256], strides = [1, 1]} : vector<8x512xf32> to vector<8x256xf32>
    %122 = arith.negf %121 : vector<8x256xf32>
    %123 = math.exp %122 : vector<8x256xf32>
    %cst_39 = arith.constant 1.000000e+00 : f32
    %124 = vector.broadcast %cst_39 : f32 to vector<8x256xf32>
    %125 = arith.addf %124, %123 : vector<8x256xf32>
    %126 = arith.divf %124, %125 : vector<8x256xf32>
    %127 = vector.extract_strided_slice %120 {offsets = [0, 256], sizes = [8, 128], strides = [1, 1]} : vector<8x512xf32> to vector<8x128xf32>
    %128 = math.tanh %127 : vector<8x128xf32>
    %129 = vector.extract_strided_slice %120 {offsets = [0, 384], sizes = [8, 128], strides = [1, 1]} : vector<8x512xf32> to vector<8x128xf32>
    %130 = arith.negf %129 : vector<8x128xf32>
    %131 = math.exp %130 : vector<8x128xf32>
    %cst_40 = arith.constant 1.000000e+00 : f32
    %132 = vector.broadcast %cst_40 : f32 to vector<8x128xf32>
    %133 = arith.addf %132, %131 : vector<8x128xf32>
    %134 = arith.divf %132, %133 : vector<8x128xf32>
    %135 = vector.extract_strided_slice %126 {offsets = [0, 128], sizes = [8, 128], strides = [1, 1]} : vector<8x256xf32> to vector<8x128xf32>
    %136 = arith.mulf %135, %106 : vector<8x128xf32>
    %137 = vector.extract_strided_slice %126 {offsets = [0, 0], sizes = [8, 128], strides = [1, 1]} : vector<8x256xf32> to vector<8x128xf32>
    %138 = arith.mulf %137, %128 : vector<8x128xf32>
    %139 = arith.addf %136, %138 : vector<8x128xf32>
    %140 = math.tanh %139 : vector<8x128xf32>
    %141 = arith.mulf %134, %140 : vector<8x128xf32>
    %142 = arith.truncf %141 : vector<8x128xf32> to vector<8x128xbf16>
    %143 = arith.index_cast %c3_i32 : i32 to index
    %c0_41 = arith.constant 0 : index
    %c0_42 = arith.constant 0 : index
    %144 = vector.load %arg6[%143, %c0_41, %c0_42] : memref<8x8x128xbf16, #tpu.memory_space<vmem>>, vector<1x8x128xbf16>
    %145 = vector.shape_cast %144 : vector<1x8x128xbf16> to vector<8x128xbf16>
    %146 = vector.shape_cast %142 : vector<8x128xbf16> to vector<1x8x128xbf16>
    tpu.vector_store %arg6[%143, %c0_41, %c0_42], %146 {strides = array<i32>} : memref<8x8x128xbf16, #tpu.memory_space<vmem>>, vector<1x8x128xbf16>,
    %c4_i32 = arith.constant 4 : i32
    %147 = arith.index_cast %c4_i32 : i32 to index
    %c0_43 = arith.constant 0 : index
    %c0_44 = arith.constant 0 : index
    %148 = vector.load %arg7[%147, %c0_43, %c0_44] : memref<8x8x512xbf16, #tpu.memory_space<vmem>>, vector<1x8x512xbf16>
    %149 = vector.shape_cast %148 : vector<1x8x512xbf16> to vector<8x512xbf16>
    %150 = arith.extf %149 : vector<8x512xbf16> to vector<8x512xf32>
    %151 = arith.truncf %141 : vector<8x128xf32> to vector<8x128xbf16>
    %cst_45 = arith.constant dense<0.000000e+00> : vector<8x512xf32>
    %152 = tpu.matmul %151, %12, %cst_45 {dimension_numbers = #tpu.dot_dimension_numbers<[1], [0], [0], [1], [0, 0, 1, 1], [], []>} : vector<8x128xbf16>, vector<128x512xbf16>, vector<8x512xf32> -> vector<8x512xf32>
    %153 = arith.addf %150, %152 : vector<8x512xf32>
    %154 = vector.extract_strided_slice %153 {offsets = [0, 0], sizes = [8, 256], strides = [1, 1]} : vector<8x512xf32> to vector<8x256xf32>
    %155 = arith.negf %154 : vector<8x256xf32>
    %156 = math.exp %155 : vector<8x256xf32>
    %cst_46 = arith.constant 1.000000e+00 : f32
    %157 = vector.broadcast %cst_46 : f32 to vector<8x256xf32>
    %158 = arith.addf %157, %156 : vector<8x256xf32>
    %159 = arith.divf %157, %158 : vector<8x256xf32>
    %160 = vector.extract_strided_slice %153 {offsets = [0, 256], sizes = [8, 128], strides = [1, 1]} : vector<8x512xf32> to vector<8x128xf32>
    %161 = math.tanh %160 : vector<8x128xf32>
    %162 = vector.extract_strided_slice %153 {offsets = [0, 384], sizes = [8, 128], strides = [1, 1]} : vector<8x512xf32> to vector<8x128xf32>
    %163 = arith.negf %162 : vector<8x128xf32>
    %164 = math.exp %163 : vector<8x128xf32>
    %cst_47 = arith.constant 1.000000e+00 : f32
    %165 = vector.broadcast %cst_47 : f32 to vector<8x128xf32>
    %166 = arith.addf %165, %164 : vector<8x128xf32>
    %167 = arith.divf %165, %166 : vector<8x128xf32>
    %168 = vector.extract_strided_slice %159 {offsets = [0, 128], sizes = [8, 128], strides = [1, 1]} : vector<8x256xf32> to vector<8x128xf32>
    %169 = arith.mulf %168, %139 : vector<8x128xf32>
    %170 = vector.extract_strided_slice %159 {offsets = [0, 0], sizes = [8, 128], strides = [1, 1]} : vector<8x256xf32> to vector<8x128xf32>
    %171 = arith.mulf %170, %161 : vector<8x128xf32>
    %172 = arith.addf %169, %171 : vector<8x128xf32>
    %173 = math.tanh %172 : vector<8x128xf32>
    %174 = arith.mulf %167, %173 : vector<8x128xf32>
    %175 = arith.truncf %174 : vector<8x128xf32> to vector<8x128xbf16>
    %176 = arith.index_cast %c4_i32 : i32 to index
    %c0_48 = arith.constant 0 : index
    %c0_49 = arith.constant 0 : index
    %177 = vector.load %arg6[%176, %c0_48, %c0_49] : memref<8x8x128xbf16, #tpu.memory_space<vmem>>, vector<1x8x128xbf16>
    %178 = vector.shape_cast %177 : vector<1x8x128xbf16> to vector<8x128xbf16>
    %179 = vector.shape_cast %175 : vector<8x128xbf16> to vector<1x8x128xbf16>
    tpu.vector_store %arg6[%176, %c0_48, %c0_49], %179 {strides = array<i32>} : memref<8x8x128xbf16, #tpu.memory_space<vmem>>, vector<1x8x128xbf16>,
    %c5_i32 = arith.constant 5 : i32
    %180 = arith.index_cast %c5_i32 : i32 to index
    %c0_50 = arith.constant 0 : index
    %c0_51 = arith.constant 0 : index
    %181 = vector.load %arg7[%180, %c0_50, %c0_51] : memref<8x8x512xbf16, #tpu.memory_space<vmem>>, vector<1x8x512xbf16>
    %182 = vector.shape_cast %181 : vector<1x8x512xbf16> to vector<8x512xbf16>
    %183 = arith.extf %182 : vector<8x512xbf16> to vector<8x512xf32>
    %184 = arith.truncf %174 : vector<8x128xf32> to vector<8x128xbf16>
    %cst_52 = arith.constant dense<0.000000e+00> : vector<8x512xf32>
    %185 = tpu.matmul %184, %12, %cst_52 {dimension_numbers = #tpu.dot_dimension_numbers<[1], [0], [0], [1], [0, 0, 1, 1], [], []>} : vector<8x128xbf16>, vector<128x512xbf16>, vector<8x512xf32> -> vector<8x512xf32>
    %186 = arith.addf %183, %185 : vector<8x512xf32>
    %187 = vector.extract_strided_slice %186 {offsets = [0, 0], sizes = [8, 256], strides = [1, 1]} : vector<8x512xf32> to vector<8x256xf32>
    %188 = arith.negf %187 : vector<8x256xf32>
    %189 = math.exp %188 : vector<8x256xf32>
    %cst_53 = arith.constant 1.000000e+00 : f32
    %190 = vector.broadcast %cst_53 : f32 to vector<8x256xf32>
    %191 = arith.addf %190, %189 : vector<8x256xf32>
    %192 = arith.divf %190, %191 : vector<8x256xf32>
    %193 = vector.extract_strided_slice %186 {offsets = [0, 256], sizes = [8, 128], strides = [1, 1]} : vector<8x512xf32> to vector<8x128xf32>
    %194 = math.tanh %193 : vector<8x128xf32>
    %195 = vector.extract_strided_slice %186 {offsets = [0, 384], sizes = [8, 128], strides = [1, 1]} : vector<8x512xf32> to vector<8x128xf32>
    %196 = arith.negf %195 : vector<8x128xf32>
    %197 = math.exp %196 : vector<8x128xf32>
    %cst_54 = arith.constant 1.000000e+00 : f32
    %198 = vector.broadcast %cst_54 : f32 to vector<8x128xf32>
    %199 = arith.addf %198, %197 : vector<8x128xf32>
    %200 = arith.divf %198, %199 : vector<8x128xf32>
    %201 = vector.extract_strided_slice %192 {offsets = [0, 128], sizes = [8, 128], strides = [1, 1]} : vector<8x256xf32> to vector<8x128xf32>
    %202 = arith.mulf %201, %172 : vector<8x128xf32>
    %203 = vector.extract_strided_slice %192 {offsets = [0, 0], sizes = [8, 128], strides = [1, 1]} : vector<8x256xf32> to vector<8x128xf32>
    %204 = arith.mulf %203, %194 : vector<8x128xf32>
    %205 = arith.addf %202, %204 : vector<8x128xf32>
    %206 = math.tanh %205 : vector<8x128xf32>
    %207 = arith.mulf %200, %206 : vector<8x128xf32>
    %208 = arith.truncf %207 : vector<8x128xf32> to vector<8x128xbf16>
    %209 = arith.index_cast %c5_i32 : i32 to index
    %c0_55 = arith.constant 0 : index
    %c0_56 = arith.constant 0 : index
    %210 = vector.load %arg6[%209, %c0_55, %c0_56] : memref<8x8x128xbf16, #tpu.memory_space<vmem>>, vector<1x8x128xbf16>
    %211 = vector.shape_cast %210 : vector<1x8x128xbf16> to vector<8x128xbf16>
    %212 = vector.shape_cast %208 : vector<8x128xbf16> to vector<1x8x128xbf16>
    tpu.vector_store %arg6[%209, %c0_55, %c0_56], %212 {strides = array<i32>} : memref<8x8x128xbf16, #tpu.memory_space<vmem>>, vector<1x8x128xbf16>,
    %c6_i32 = arith.constant 6 : i32
    %213 = arith.index_cast %c6_i32 : i32 to index
    %c0_57 = arith.constant 0 : index
    %c0_58 = arith.constant 0 : index
    %214 = vector.load %arg7[%213, %c0_57, %c0_58] : memref<8x8x512xbf16, #tpu.memory_space<vmem>>, vector<1x8x512xbf16>
    %215 = vector.shape_cast %214 : vector<1x8x512xbf16> to vector<8x512xbf16>
    %216 = arith.extf %215 : vector<8x512xbf16> to vector<8x512xf32>
    %217 = arith.truncf %207 : vector<8x128xf32> to vector<8x128xbf16>
    %cst_59 = arith.constant dense<0.000000e+00> : vector<8x512xf32>
    %218 = tpu.matmul %217, %12, %cst_59 {dimension_numbers = #tpu.dot_dimension_numbers<[1], [0], [0], [1], [0, 0, 1, 1], [], []>} : vector<8x128xbf16>, vector<128x512xbf16>, vector<8x512xf32> -> vector<8x512xf32>
    %219 = arith.addf %216, %218 : vector<8x512xf32>
    %220 = vector.extract_strided_slice %219 {offsets = [0, 0], sizes = [8, 256], strides = [1, 1]} : vector<8x512xf32> to vector<8x256xf32>
    %221 = arith.negf %220 : vector<8x256xf32>
    %222 = math.exp %221 : vector<8x256xf32>
    %cst_60 = arith.constant 1.000000e+00 : f32
    %223 = vector.broadcast %cst_60 : f32 to vector<8x256xf32>
    %224 = arith.addf %223, %222 : vector<8x256xf32>
    %225 = arith.divf %223, %224 : vector<8x256xf32>
    %226 = vector.extract_strided_slice %219 {offsets = [0, 256], sizes = [8, 128], strides = [1, 1]} : vector<8x512xf32> to vector<8x128xf32>
    %227 = math.tanh %226 : vector<8x128xf32>
    %228 = vector.extract_strided_slice %219 {offsets = [0, 384], sizes = [8, 128], strides = [1, 1]} : vector<8x512xf32> to vector<8x128xf32>
    %229 = arith.negf %228 : vector<8x128xf32>
    %230 = math.exp %229 : vector<8x128xf32>
    %cst_61 = arith.constant 1.000000e+00 : f32
    %231 = vector.broadcast %cst_61 : f32 to vector<8x128xf32>
    %232 = arith.addf %231, %230 : vector<8x128xf32>
    %233 = arith.divf %231, %232 : vector<8x128xf32>
    %234 = vector.extract_strided_slice %225 {offsets = [0, 128], sizes = [8, 128], strides = [1, 1]} : vector<8x256xf32> to vector<8x128xf32>
    %235 = arith.mulf %234, %205 : vector<8x128xf32>
    %236 = vector.extract_strided_slice %225 {offsets = [0, 0], sizes = [8, 128], strides = [1, 1]} : vector<8x256xf32> to vector<8x128xf32>
    %237 = arith.mulf %236, %227 : vector<8x128xf32>
    %238 = arith.addf %235, %237 : vector<8x128xf32>
    %239 = math.tanh %238 : vector<8x128xf32>
    %240 = arith.mulf %233, %239 : vector<8x128xf32>
    %241 = arith.truncf %240 : vector<8x128xf32> to vector<8x128xbf16>
    %242 = arith.index_cast %c6_i32 : i32 to index
    %c0_62 = arith.constant 0 : index
    %c0_63 = arith.constant 0 : index
    %243 = vector.load %arg6[%242, %c0_62, %c0_63] : memref<8x8x128xbf16, #tpu.memory_space<vmem>>, vector<1x8x128xbf16>
    %244 = vector.shape_cast %243 : vector<1x8x128xbf16> to vector<8x128xbf16>
    %245 = vector.shape_cast %241 : vector<8x128xbf16> to vector<1x8x128xbf16>
    tpu.vector_store %arg6[%242, %c0_62, %c0_63], %245 {strides = array<i32>} : memref<8x8x128xbf16, #tpu.memory_space<vmem>>, vector<1x8x128xbf16>,
    %c7_i32 = arith.constant 7 : i32
    %246 = arith.index_cast %c7_i32 : i32 to index
    %c0_64 = arith.constant 0 : index
    %c0_65 = arith.constant 0 : index
    %247 = vector.load %arg7[%246, %c0_64, %c0_65] : memref<8x8x512xbf16, #tpu.memory_space<vmem>>, vector<1x8x512xbf16>
    %248 = vector.shape_cast %247 : vector<1x8x512xbf16> to vector<8x512xbf16>
    %249 = arith.extf %248 : vector<8x512xbf16> to vector<8x512xf32>
    %250 = arith.truncf %240 : vector<8x128xf32> to vector<8x128xbf16>
    %cst_66 = arith.constant dense<0.000000e+00> : vector<8x512xf32>
    %251 = tpu.matmul %250, %12, %cst_66 {dimension_numbers = #tpu.dot_dimension_numbers<[1], [0], [0], [1], [0, 0, 1, 1], [], []>} : vector<8x128xbf16>, vector<128x512xbf16>, vector<8x512xf32> -> vector<8x512xf32>
    %252 = arith.addf %249, %251 : vector<8x512xf32>
    %253 = vector.extract_strided_slice %252 {offsets = [0, 0], sizes = [8, 256], strides = [1, 1]} : vector<8x512xf32> to vector<8x256xf32>
    %254 = arith.negf %253 : vector<8x256xf32>
    %255 = math.exp %254 : vector<8x256xf32>
    %cst_67 = arith.constant 1.000000e+00 : f32
    %256 = vector.broadcast %cst_67 : f32 to vector<8x256xf32>
    %257 = arith.addf %256, %255 : vector<8x256xf32>
    %258 = arith.divf %256, %257 : vector<8x256xf32>
    %259 = vector.extract_strided_slice %252 {offsets = [0, 256], sizes = [8, 128], strides = [1, 1]} : vector<8x512xf32> to vector<8x128xf32>
    %260 = math.tanh %259 : vector<8x128xf32>
    %261 = vector.extract_strided_slice %252 {offsets = [0, 384], sizes = [8, 128], strides = [1, 1]} : vector<8x512xf32> to vector<8x128xf32>
    %262 = arith.negf %261 : vector<8x128xf32>
    %263 = math.exp %262 : vector<8x128xf32>
    %cst_68 = arith.constant 1.000000e+00 : f32
    %264 = vector.broadcast %cst_68 : f32 to vector<8x128xf32>
    %265 = arith.addf %264, %263 : vector<8x128xf32>
    %266 = arith.divf %264, %265 : vector<8x128xf32>
    %267 = vector.extract_strided_slice %258 {offsets = [0, 128], sizes = [8, 128], strides = [1, 1]} : vector<8x256xf32> to vector<8x128xf32>
    %268 = arith.mulf %267, %238 : vector<8x128xf32>
    %269 = vector.extract_strided_slice %258 {offsets = [0, 0], sizes = [8, 128], strides = [1, 1]} : vector<8x256xf32> to vector<8x128xf32>
    %270 = arith.mulf %269, %260 : vector<8x128xf32>
    %271 = arith.addf %268, %270 : vector<8x128xf32>
    %272 = math.tanh %271 : vector<8x128xf32>
    %273 = arith.mulf %266, %272 : vector<8x128xf32>
    %274 = arith.truncf %273 : vector<8x128xf32> to vector<8x128xbf16>
    %275 = arith.index_cast %c7_i32 : i32 to index
    %c0_69 = arith.constant 0 : index
    %c0_70 = arith.constant 0 : index
    %276 = vector.load %arg6[%275, %c0_69, %c0_70] : memref<8x8x128xbf16, #tpu.memory_space<vmem>>, vector<1x8x128xbf16>
    %277 = vector.shape_cast %276 : vector<1x8x128xbf16> to vector<8x128xbf16>
    %278 = vector.shape_cast %274 : vector<8x128xbf16> to vector<1x8x128xbf16>
    tpu.vector_store %arg6[%275, %c0_69, %c0_70], %278 {strides = array<i32>} : memref<8x8x128xbf16, #tpu.memory_space<vmem>>, vector<1x8x128xbf16>,
    %c8_i32 = arith.constant 8 : i32
    %c0_71 = arith.constant 0 : index
    %c0_72 = arith.constant 0 : index
    %c0_73 = arith.constant 0 : index
    %279 = vector.load %arg6[%c0_71, %c0_72, %c0_73] : memref<8x8x128xbf16, #tpu.memory_space<vmem>>, vector<8x8x128xbf16>
    %280 = vector.shape_cast %279 : vector<8x8x128xbf16> to vector<64x128xbf16>
    %c0_74 = arith.constant 0 : index
    %c0_75 = arith.constant 0 : index
    %c0_76 = arith.constant 0 : index
    %281 = vector.load %arg3[%c0_74, %c0_75, %c0_76] : memref<1x128x512xbf16, #tpu.memory_space<vmem>>, vector<1x128x512xbf16>
    %282 = vector.shape_cast %281 : vector<1x128x512xbf16> to vector<128x512xbf16>
    %cst_77 = arith.constant dense<0.000000e+00> : vector<64x512xf32>
    %283 = tpu.matmul %280, %282, %cst_77 {dimension_numbers = #tpu.dot_dimension_numbers<[1], [0], [0], [1], [0, 0, 1, 1], [], []>} : vector<64x128xbf16>, vector<128x512xbf16>, vector<64x512xf32> -> vector<64x512xf32>
    %c1 = arith.constant 1 : index
    %c0_78 = arith.constant 0 : index
    %c0_79 = arith.constant 0 : index
    %284 = vector.load %arg5[%c1, %c0_78, %c0_79] : memref<2x1x512xf32, #tpu.memory_space<vmem>>, vector<1x1x512xf32>
    %285 = vector.shape_cast %284 : vector<1x1x512xf32> to vector<1x512xf32>
    %286 = vector.broadcast %285 : vector<1x512xf32> to vector<64x512xf32>
    %287 = arith.addf %283, %286 : vector<64x512xf32>
    %288 = vector.shape_cast %287 : vector<64x512xf32> to vector<8x8x512xf32>
    %289 = arith.truncf %288 : vector<8x8x512xf32> to vector<8x8x512xbf16>
    %c0_80 = arith.constant 0 : index
    %c0_81 = arith.constant 0 : index
    %c0_82 = arith.constant 0 : index
    %290 = vector.load %arg7[%c0_80, %c0_81, %c0_82] : memref<8x8x512xbf16, #tpu.memory_space<vmem>>, vector<8x8x512xbf16>
    tpu.vector_store %arg7[%c0_80, %c0_81, %c0_82], %289 {strides = array<i32>} : memref<8x8x512xbf16, #tpu.memory_space<vmem>>, vector<8x8x512xbf16>,
    %c1_83 = arith.constant 1 : index
    %c0_84 = arith.constant 0 : index
    %c0_85 = arith.constant 0 : index
    %291 = vector.load %arg4[%c1_83, %c0_84, %c0_85] : memref<2x128x512xbf16, #tpu.memory_space<vmem>>, vector<1x128x512xbf16>
    %292 = vector.shape_cast %291 : vector<1x128x512xbf16> to vector<128x512xbf16>
    %cst_86 = arith.constant 0.000000e+00 : f32
    %293 = vector.broadcast %cst_86 : f32 to vector<8x128xf32>
    %cst_87 = arith.constant 0.000000e+00 : f32
    %294 = vector.broadcast %cst_87 : f32 to vector<8x128xf32>
    %c0_i32_88 = arith.constant 0 : i32
    %295 = arith.index_cast %c0_i32_88 : i32 to index
    %c0_89 = arith.constant 0 : index
    %c0_90 = arith.constant 0 : index
    %296 = vector.load %arg7[%295, %c0_89, %c0_90] : memref<8x8x512xbf16, #tpu.memory_space<vmem>>, vector<1x8x512xbf16>
    %297 = vector.shape_cast %296 : vector<1x8x512xbf16> to vector<8x512xbf16>
    %298 = arith.extf %297 : vector<8x512xbf16> to vector<8x512xf32>
    %299 = arith.truncf %293 : vector<8x128xf32> to vector<8x128xbf16>
    %cst_91 = arith.constant dense<0.000000e+00> : vector<8x512xf32>
    %300 = tpu.matmul %299, %292, %cst_91 {dimension_numbers = #tpu.dot_dimension_numbers<[1], [0], [0], [1], [0, 0, 1, 1], [], []>} : vector<8x128xbf16>, vector<128x512xbf16>, vector<8x512xf32> -> vector<8x512xf32>
    %301 = arith.addf %298, %300 : vector<8x512xf32>
    %302 = vector.extract_strided_slice %301 {offsets = [0, 0], sizes = [8, 256], strides = [1, 1]} : vector<8x512xf32> to vector<8x256xf32>
    %303 = arith.negf %302 : vector<8x256xf32>
    %304 = math.exp %303 : vector<8x256xf32>
    %cst_92 = arith.constant 1.000000e+00 : f32
    %305 = vector.broadcast %cst_92 : f32 to vector<8x256xf32>
    %306 = arith.addf %305, %304 : vector<8x256xf32>
    %307 = arith.divf %305, %306 : vector<8x256xf32>
    %308 = vector.extract_strided_slice %301 {offsets = [0, 256], sizes = [8, 128], strides = [1, 1]} : vector<8x512xf32> to vector<8x128xf32>
    %309 = math.tanh %308 : vector<8x128xf32>
    %310 = vector.extract_strided_slice %301 {offsets = [0, 384], sizes = [8, 128], strides = [1, 1]} : vector<8x512xf32> to vector<8x128xf32>
    %311 = arith.negf %310 : vector<8x128xf32>
    %312 = math.exp %311 : vector<8x128xf32>
    %cst_93 = arith.constant 1.000000e+00 : f32
    %313 = vector.broadcast %cst_93 : f32 to vector<8x128xf32>
    %314 = arith.addf %313, %312 : vector<8x128xf32>
    %315 = arith.divf %313, %314 : vector<8x128xf32>
    %316 = vector.extract_strided_slice %307 {offsets = [0, 128], sizes = [8, 128], strides = [1, 1]} : vector<8x256xf32> to vector<8x128xf32>
    %317 = arith.mulf %316, %294 : vector<8x128xf32>
    %318 = vector.extract_strided_slice %307 {offsets = [0, 0], sizes = [8, 128], strides = [1, 1]} : vector<8x256xf32> to vector<8x128xf32>
    %319 = arith.mulf %318, %309 : vector<8x128xf32>
    %320 = arith.addf %317, %319 : vector<8x128xf32>
    %321 = math.tanh %320 : vector<8x128xf32>
    %322 = arith.mulf %315, %321 : vector<8x128xf32>
    %323 = arith.truncf %322 : vector<8x128xf32> to vector<8x128xbf16>
    %324 = arith.index_cast %c0_i32_88 : i32 to index
    %c0_94 = arith.constant 0 : index
    %c0_95 = arith.constant 0 : index
    %325 = vector.load %arg6[%324, %c0_94, %c0_95] : memref<8x8x128xbf16, #tpu.memory_space<vmem>>, vector<1x8x128xbf16>
    %326 = vector.shape_cast %325 : vector<1x8x128xbf16> to vector<8x128xbf16>
    %327 = vector.shape_cast %323 : vector<8x128xbf16> to vector<1x8x128xbf16>
    tpu.vector_store %arg6[%324, %c0_94, %c0_95], %327 {strides = array<i32>} : memref<8x8x128xbf16, #tpu.memory_space<vmem>>, vector<1x8x128xbf16>,
    %c1_i32_96 = arith.constant 1 : i32
    %328 = arith.index_cast %c1_i32_96 : i32 to index
    %c0_97 = arith.constant 0 : index
    %c0_98 = arith.constant 0 : index
    %329 = vector.load %arg7[%328, %c0_97, %c0_98] : memref<8x8x512xbf16, #tpu.memory_space<vmem>>, vector<1x8x512xbf16>
    %330 = vector.shape_cast %329 : vector<1x8x512xbf16> to vector<8x512xbf16>
    %331 = arith.extf %330 : vector<8x512xbf16> to vector<8x512xf32>
    %332 = arith.truncf %322 : vector<8x128xf32> to vector<8x128xbf16>
    %cst_99 = arith.constant dense<0.000000e+00> : vector<8x512xf32>
    %333 = tpu.matmul %332, %292, %cst_99 {dimension_numbers = #tpu.dot_dimension_numbers<[1], [0], [0], [1], [0, 0, 1, 1], [], []>} : vector<8x128xbf16>, vector<128x512xbf16>, vector<8x512xf32> -> vector<8x512xf32>
    %334 = arith.addf %331, %333 : vector<8x512xf32>
    %335 = vector.extract_strided_slice %334 {offsets = [0, 0], sizes = [8, 256], strides = [1, 1]} : vector<8x512xf32> to vector<8x256xf32>
    %336 = arith.negf %335 : vector<8x256xf32>
    %337 = math.exp %336 : vector<8x256xf32>
    %cst_100 = arith.constant 1.000000e+00 : f32
    %338 = vector.broadcast %cst_100 : f32 to vector<8x256xf32>
    %339 = arith.addf %338, %337 : vector<8x256xf32>
    %340 = arith.divf %338, %339 : vector<8x256xf32>
    %341 = vector.extract_strided_slice %334 {offsets = [0, 256], sizes = [8, 128], strides = [1, 1]} : vector<8x512xf32> to vector<8x128xf32>
    %342 = math.tanh %341 : vector<8x128xf32>
    %343 = vector.extract_strided_slice %334 {offsets = [0, 384], sizes = [8, 128], strides = [1, 1]} : vector<8x512xf32> to vector<8x128xf32>
    %344 = arith.negf %343 : vector<8x128xf32>
    %345 = math.exp %344 : vector<8x128xf32>
    %cst_101 = arith.constant 1.000000e+00 : f32
    %346 = vector.broadcast %cst_101 : f32 to vector<8x128xf32>
    %347 = arith.addf %346, %345 : vector<8x128xf32>
    %348 = arith.divf %346, %347 : vector<8x128xf32>
    %349 = vector.extract_strided_slice %340 {offsets = [0, 128], sizes = [8, 128], strides = [1, 1]} : vector<8x256xf32> to vector<8x128xf32>
    %350 = arith.mulf %349, %320 : vector<8x128xf32>
    %351 = vector.extract_strided_slice %340 {offsets = [0, 0], sizes = [8, 128], strides = [1, 1]} : vector<8x256xf32> to vector<8x128xf32>
    %352 = arith.mulf %351, %342 : vector<8x128xf32>
    %353 = arith.addf %350, %352 : vector<8x128xf32>
    %354 = math.tanh %353 : vector<8x128xf32>
    %355 = arith.mulf %348, %354 : vector<8x128xf32>
    %356 = arith.truncf %355 : vector<8x128xf32> to vector<8x128xbf16>
    %357 = arith.index_cast %c1_i32_96 : i32 to index
    %c0_102 = arith.constant 0 : index
    %c0_103 = arith.constant 0 : index
    %358 = vector.load %arg6[%357, %c0_102, %c0_103] : memref<8x8x128xbf16, #tpu.memory_space<vmem>>, vector<1x8x128xbf16>
    %359 = vector.shape_cast %358 : vector<1x8x128xbf16> to vector<8x128xbf16>
    %360 = vector.shape_cast %356 : vector<8x128xbf16> to vector<1x8x128xbf16>
    tpu.vector_store %arg6[%357, %c0_102, %c0_103], %360 {strides = array<i32>} : memref<8x8x128xbf16, #tpu.memory_space<vmem>>, vector<1x8x128xbf16>,
    %c2_i32_104 = arith.constant 2 : i32
    %361 = arith.index_cast %c2_i32_104 : i32 to index
    %c0_105 = arith.constant 0 : index
    %c0_106 = arith.constant 0 : index
    %362 = vector.load %arg7[%361, %c0_105, %c0_106] : memref<8x8x512xbf16, #tpu.memory_space<vmem>>, vector<1x8x512xbf16>
    %363 = vector.shape_cast %362 : vector<1x8x512xbf16> to vector<8x512xbf16>
    %364 = arith.extf %363 : vector<8x512xbf16> to vector<8x512xf32>
    %365 = arith.truncf %355 : vector<8x128xf32> to vector<8x128xbf16>
    %cst_107 = arith.constant dense<0.000000e+00> : vector<8x512xf32>
    %366 = tpu.matmul %365, %292, %cst_107 {dimension_numbers = #tpu.dot_dimension_numbers<[1], [0], [0], [1], [0, 0, 1, 1], [], []>} : vector<8x128xbf16>, vector<128x512xbf16>, vector<8x512xf32> -> vector<8x512xf32>
    %367 = arith.addf %364, %366 : vector<8x512xf32>
    %368 = vector.extract_strided_slice %367 {offsets = [0, 0], sizes = [8, 256], strides = [1, 1]} : vector<8x512xf32> to vector<8x256xf32>
    %369 = arith.negf %368 : vector<8x256xf32>
    %370 = math.exp %369 : vector<8x256xf32>
    %cst_108 = arith.constant 1.000000e+00 : f32
    %371 = vector.broadcast %cst_108 : f32 to vector<8x256xf32>
    %372 = arith.addf %371, %370 : vector<8x256xf32>
    %373 = arith.divf %371, %372 : vector<8x256xf32>
    %374 = vector.extract_strided_slice %367 {offsets = [0, 256], sizes = [8, 128], strides = [1, 1]} : vector<8x512xf32> to vector<8x128xf32>
    %375 = math.tanh %374 : vector<8x128xf32>
    %376 = vector.extract_strided_slice %367 {offsets = [0, 384], sizes = [8, 128], strides = [1, 1]} : vector<8x512xf32> to vector<8x128xf32>
    %377 = arith.negf %376 : vector<8x128xf32>
    %378 = math.exp %377 : vector<8x128xf32>
    %cst_109 = arith.constant 1.000000e+00 : f32
    %379 = vector.broadcast %cst_109 : f32 to vector<8x128xf32>
    %380 = arith.addf %379, %378 : vector<8x128xf32>
    %381 = arith.divf %379, %380 : vector<8x128xf32>
    %382 = vector.extract_strided_slice %373 {offsets = [0, 128], sizes = [8, 128], strides = [1, 1]} : vector<8x256xf32> to vector<8x128xf32>
    %383 = arith.mulf %382, %353 : vector<8x128xf32>
    %384 = vector.extract_strided_slice %373 {offsets = [0, 0], sizes = [8, 128], strides = [1, 1]} : vector<8x256xf32> to vector<8x128xf32>
    %385 = arith.mulf %384, %375 : vector<8x128xf32>
    %386 = arith.addf %383, %385 : vector<8x128xf32>
    %387 = math.tanh %386 : vector<8x128xf32>
    %388 = arith.mulf %381, %387 : vector<8x128xf32>
    %389 = arith.truncf %388 : vector<8x128xf32> to vector<8x128xbf16>
    %390 = arith.index_cast %c2_i32_104 : i32 to index
    %c0_110 = arith.constant 0 : index
    %c0_111 = arith.constant 0 : index
    %391 = vector.load %arg6[%390, %c0_110, %c0_111] : memref<8x8x128xbf16, #tpu.memory_space<vmem>>, vector<1x8x128xbf16>
    %392 = vector.shape_cast %391 : vector<1x8x128xbf16> to vector<8x128xbf16>
    %393 = vector.shape_cast %389 : vector<8x128xbf16> to vector<1x8x128xbf16>
    tpu.vector_store %arg6[%390, %c0_110, %c0_111], %393 {strides = array<i32>} : memref<8x8x128xbf16, #tpu.memory_space<vmem>>, vector<1x8x128xbf16>,
    %c3_i32_112 = arith.constant 3 : i32
    %394 = arith.index_cast %c3_i32_112 : i32 to index
    %c0_113 = arith.constant 0 : index
    %c0_114 = arith.constant 0 : index
    %395 = vector.load %arg7[%394, %c0_113, %c0_114] : memref<8x8x512xbf16, #tpu.memory_space<vmem>>, vector<1x8x512xbf16>
    %396 = vector.shape_cast %395 : vector<1x8x512xbf16> to vector<8x512xbf16>
    %397 = arith.extf %396 : vector<8x512xbf16> to vector<8x512xf32>
    %398 = arith.truncf %388 : vector<8x128xf32> to vector<8x128xbf16>
    %cst_115 = arith.constant dense<0.000000e+00> : vector<8x512xf32>
    %399 = tpu.matmul %398, %292, %cst_115 {dimension_numbers = #tpu.dot_dimension_numbers<[1], [0], [0], [1], [0, 0, 1, 1], [], []>} : vector<8x128xbf16>, vector<128x512xbf16>, vector<8x512xf32> -> vector<8x512xf32>
    %400 = arith.addf %397, %399 : vector<8x512xf32>
    %401 = vector.extract_strided_slice %400 {offsets = [0, 0], sizes = [8, 256], strides = [1, 1]} : vector<8x512xf32> to vector<8x256xf32>
    %402 = arith.negf %401 : vector<8x256xf32>
    %403 = math.exp %402 : vector<8x256xf32>
    %cst_116 = arith.constant 1.000000e+00 : f32
    %404 = vector.broadcast %cst_116 : f32 to vector<8x256xf32>
    %405 = arith.addf %404, %403 : vector<8x256xf32>
    %406 = arith.divf %404, %405 : vector<8x256xf32>
    %407 = vector.extract_strided_slice %400 {offsets = [0, 256], sizes = [8, 128], strides = [1, 1]} : vector<8x512xf32> to vector<8x128xf32>
    %408 = math.tanh %407 : vector<8x128xf32>
    %409 = vector.extract_strided_slice %400 {offsets = [0, 384], sizes = [8, 128], strides = [1, 1]} : vector<8x512xf32> to vector<8x128xf32>
    %410 = arith.negf %409 : vector<8x128xf32>
    %411 = math.exp %410 : vector<8x128xf32>
    %cst_117 = arith.constant 1.000000e+00 : f32
    %412 = vector.broadcast %cst_117 : f32 to vector<8x128xf32>
    %413 = arith.addf %412, %411 : vector<8x128xf32>
    %414 = arith.divf %412, %413 : vector<8x128xf32>
    %415 = vector.extract_strided_slice %406 {offsets = [0, 128], sizes = [8, 128], strides = [1, 1]} : vector<8x256xf32> to vector<8x128xf32>
    %416 = arith.mulf %415, %386 : vector<8x128xf32>
    %417 = vector.extract_strided_slice %406 {offsets = [0, 0], sizes = [8, 128], strides = [1, 1]} : vector<8x256xf32> to vector<8x128xf32>
    %418 = arith.mulf %417, %408 : vector<8x128xf32>
    %419 = arith.addf %416, %418 : vector<8x128xf32>
    %420 = math.tanh %419 : vector<8x128xf32>
    %421 = arith.mulf %414, %420 : vector<8x128xf32>
    %422 = arith.truncf %421 : vector<8x128xf32> to vector<8x128xbf16>
    %423 = arith.index_cast %c3_i32_112 : i32 to index
    %c0_118 = arith.constant 0 : index
    %c0_119 = arith.constant 0 : index
    %424 = vector.load %arg6[%423, %c0_118, %c0_119] : memref<8x8x128xbf16, #tpu.memory_space<vmem>>, vector<1x8x128xbf16>
    %425 = vector.shape_cast %424 : vector<1x8x128xbf16> to vector<8x128xbf16>
    %426 = vector.shape_cast %422 : vector<8x128xbf16> to vector<1x8x128xbf16>
    tpu.vector_store %arg6[%423, %c0_118, %c0_119], %426 {strides = array<i32>} : memref<8x8x128xbf16, #tpu.memory_space<vmem>>, vector<1x8x128xbf16>,
    %c4_i32_120 = arith.constant 4 : i32
    %427 = arith.index_cast %c4_i32_120 : i32 to index
    %c0_121 = arith.constant 0 : index
    %c0_122 = arith.constant 0 : index
    %428 = vector.load %arg7[%427, %c0_121, %c0_122] : memref<8x8x512xbf16, #tpu.memory_space<vmem>>, vector<1x8x512xbf16>
    %429 = vector.shape_cast %428 : vector<1x8x512xbf16> to vector<8x512xbf16>
    %430 = arith.extf %429 : vector<8x512xbf16> to vector<8x512xf32>
    %431 = arith.truncf %421 : vector<8x128xf32> to vector<8x128xbf16>
    %cst_123 = arith.constant dense<0.000000e+00> : vector<8x512xf32>
    %432 = tpu.matmul %431, %292, %cst_123 {dimension_numbers = #tpu.dot_dimension_numbers<[1], [0], [0], [1], [0, 0, 1, 1], [], []>} : vector<8x128xbf16>, vector<128x512xbf16>, vector<8x512xf32> -> vector<8x512xf32>
    %433 = arith.addf %430, %432 : vector<8x512xf32>
    %434 = vector.extract_strided_slice %433 {offsets = [0, 0], sizes = [8, 256], strides = [1, 1]} : vector<8x512xf32> to vector<8x256xf32>
    %435 = arith.negf %434 : vector<8x256xf32>
    %436 = math.exp %435 : vector<8x256xf32>
    %cst_124 = arith.constant 1.000000e+00 : f32
    %437 = vector.broadcast %cst_124 : f32 to vector<8x256xf32>
    %438 = arith.addf %437, %436 : vector<8x256xf32>
    %439 = arith.divf %437, %438 : vector<8x256xf32>
    %440 = vector.extract_strided_slice %433 {offsets = [0, 256], sizes = [8, 128], strides = [1, 1]} : vector<8x512xf32> to vector<8x128xf32>
    %441 = math.tanh %440 : vector<8x128xf32>
    %442 = vector.extract_strided_slice %433 {offsets = [0, 384], sizes = [8, 128], strides = [1, 1]} : vector<8x512xf32> to vector<8x128xf32>
    %443 = arith.negf %442 : vector<8x128xf32>
    %444 = math.exp %443 : vector<8x128xf32>
    %cst_125 = arith.constant 1.000000e+00 : f32
    %445 = vector.broadcast %cst_125 : f32 to vector<8x128xf32>
    %446 = arith.addf %445, %444 : vector<8x128xf32>
    %447 = arith.divf %445, %446 : vector<8x128xf32>
    %448 = vector.extract_strided_slice %439 {offsets = [0, 128], sizes = [8, 128], strides = [1, 1]} : vector<8x256xf32> to vector<8x128xf32>
    %449 = arith.mulf %448, %419 : vector<8x128xf32>
    %450 = vector.extract_strided_slice %439 {offsets = [0, 0], sizes = [8, 128], strides = [1, 1]} : vector<8x256xf32> to vector<8x128xf32>
    %451 = arith.mulf %450, %441 : vector<8x128xf32>
    %452 = arith.addf %449, %451 : vector<8x128xf32>
    %453 = math.tanh %452 : vector<8x128xf32>
    %454 = arith.mulf %447, %453 : vector<8x128xf32>
    %455 = arith.truncf %454 : vector<8x128xf32> to vector<8x128xbf16>
    %456 = arith.index_cast %c4_i32_120 : i32 to index
    %c0_126 = arith.constant 0 : index
    %c0_127 = arith.constant 0 : index
    %457 = vector.load %arg6[%456, %c0_126, %c0_127] : memref<8x8x128xbf16, #tpu.memory_space<vmem>>, vector<1x8x128xbf16>
    %458 = vector.shape_cast %457 : vector<1x8x128xbf16> to vector<8x128xbf16>
    %459 = vector.shape_cast %455 : vector<8x128xbf16> to vector<1x8x128xbf16>
    tpu.vector_store %arg6[%456, %c0_126, %c0_127], %459 {strides = array<i32>} : memref<8x8x128xbf16, #tpu.memory_space<vmem>>, vector<1x8x128xbf16>,
    %c5_i32_128 = arith.constant 5 : i32
    %460 = arith.index_cast %c5_i32_128 : i32 to index
    %c0_129 = arith.constant 0 : index
    %c0_130 = arith.constant 0 : index
    %461 = vector.load %arg7[%460, %c0_129, %c0_130] : memref<8x8x512xbf16, #tpu.memory_space<vmem>>, vector<1x8x512xbf16>
    %462 = vector.shape_cast %461 : vector<1x8x512xbf16> to vector<8x512xbf16>
    %463 = arith.extf %462 : vector<8x512xbf16> to vector<8x512xf32>
    %464 = arith.truncf %454 : vector<8x128xf32> to vector<8x128xbf16>
    %cst_131 = arith.constant dense<0.000000e+00> : vector<8x512xf32>
    %465 = tpu.matmul %464, %292, %cst_131 {dimension_numbers = #tpu.dot_dimension_numbers<[1], [0], [0], [1], [0, 0, 1, 1], [], []>} : vector<8x128xbf16>, vector<128x512xbf16>, vector<8x512xf32> -> vector<8x512xf32>
    %466 = arith.addf %463, %465 : vector<8x512xf32>
    %467 = vector.extract_strided_slice %466 {offsets = [0, 0], sizes = [8, 256], strides = [1, 1]} : vector<8x512xf32> to vector<8x256xf32>
    %468 = arith.negf %467 : vector<8x256xf32>
    %469 = math.exp %468 : vector<8x256xf32>
    %cst_132 = arith.constant 1.000000e+00 : f32
    %470 = vector.broadcast %cst_132 : f32 to vector<8x256xf32>
    %471 = arith.addf %470, %469 : vector<8x256xf32>
    %472 = arith.divf %470, %471 : vector<8x256xf32>
    %473 = vector.extract_strided_slice %466 {offsets = [0, 256], sizes = [8, 128], strides = [1, 1]} : vector<8x512xf32> to vector<8x128xf32>
    %474 = math.tanh %473 : vector<8x128xf32>
    %475 = vector.extract_strided_slice %466 {offsets = [0, 384], sizes = [8, 128], strides = [1, 1]} : vector<8x512xf32> to vector<8x128xf32>
    %476 = arith.negf %475 : vector<8x128xf32>
    %477 = math.exp %476 : vector<8x128xf32>
    %cst_133 = arith.constant 1.000000e+00 : f32
    %478 = vector.broadcast %cst_133 : f32 to vector<8x128xf32>
    %479 = arith.addf %478, %477 : vector<8x128xf32>
    %480 = arith.divf %478, %479 : vector<8x128xf32>
    %481 = vector.extract_strided_slice %472 {offsets = [0, 128], sizes = [8, 128], strides = [1, 1]} : vector<8x256xf32> to vector<8x128xf32>
    %482 = arith.mulf %481, %452 : vector<8x128xf32>
    %483 = vector.extract_strided_slice %472 {offsets = [0, 0], sizes = [8, 128], strides = [1, 1]} : vector<8x256xf32> to vector<8x128xf32>
    %484 = arith.mulf %483, %474 : vector<8x128xf32>
    %485 = arith.addf %482, %484 : vector<8x128xf32>
    %486 = math.tanh %485 : vector<8x128xf32>
    %487 = arith.mulf %480, %486 : vector<8x128xf32>
    %488 = arith.truncf %487 : vector<8x128xf32> to vector<8x128xbf16>
    %489 = arith.index_cast %c5_i32_128 : i32 to index
    %c0_134 = arith.constant 0 : index
    %c0_135 = arith.constant 0 : index
    %490 = vector.load %arg6[%489, %c0_134, %c0_135] : memref<8x8x128xbf16, #tpu.memory_space<vmem>>, vector<1x8x128xbf16>
    %491 = vector.shape_cast %490 : vector<1x8x128xbf16> to vector<8x128xbf16>
    %492 = vector.shape_cast %488 : vector<8x128xbf16> to vector<1x8x128xbf16>
    tpu.vector_store %arg6[%489, %c0_134, %c0_135], %492 {strides = array<i32>} : memref<8x8x128xbf16, #tpu.memory_space<vmem>>, vector<1x8x128xbf16>,
    %c6_i32_136 = arith.constant 6 : i32
    %493 = arith.index_cast %c6_i32_136 : i32 to index
    %c0_137 = arith.constant 0 : index
    %c0_138 = arith.constant 0 : index
    %494 = vector.load %arg7[%493, %c0_137, %c0_138] : memref<8x8x512xbf16, #tpu.memory_space<vmem>>, vector<1x8x512xbf16>
    %495 = vector.shape_cast %494 : vector<1x8x512xbf16> to vector<8x512xbf16>
    %496 = arith.extf %495 : vector<8x512xbf16> to vector<8x512xf32>
    %497 = arith.truncf %487 : vector<8x128xf32> to vector<8x128xbf16>
    %cst_139 = arith.constant dense<0.000000e+00> : vector<8x512xf32>
    %498 = tpu.matmul %497, %292, %cst_139 {dimension_numbers = #tpu.dot_dimension_numbers<[1], [0], [0], [1], [0, 0, 1, 1], [], []>} : vector<8x128xbf16>, vector<128x512xbf16>, vector<8x512xf32> -> vector<8x512xf32>
    %499 = arith.addf %496, %498 : vector<8x512xf32>
    %500 = vector.extract_strided_slice %499 {offsets = [0, 0], sizes = [8, 256], strides = [1, 1]} : vector<8x512xf32> to vector<8x256xf32>
    %501 = arith.negf %500 : vector<8x256xf32>
    %502 = math.exp %501 : vector<8x256xf32>
    %cst_140 = arith.constant 1.000000e+00 : f32
    %503 = vector.broadcast %cst_140 : f32 to vector<8x256xf32>
    %504 = arith.addf %503, %502 : vector<8x256xf32>
    %505 = arith.divf %503, %504 : vector<8x256xf32>
    %506 = vector.extract_strided_slice %499 {offsets = [0, 256], sizes = [8, 128], strides = [1, 1]} : vector<8x512xf32> to vector<8x128xf32>
    %507 = math.tanh %506 : vector<8x128xf32>
    %508 = vector.extract_strided_slice %499 {offsets = [0, 384], sizes = [8, 128], strides = [1, 1]} : vector<8x512xf32> to vector<8x128xf32>
    %509 = arith.negf %508 : vector<8x128xf32>
    %510 = math.exp %509 : vector<8x128xf32>
    %cst_141 = arith.constant 1.000000e+00 : f32
    %511 = vector.broadcast %cst_141 : f32 to vector<8x128xf32>
    %512 = arith.addf %511, %510 : vector<8x128xf32>
    %513 = arith.divf %511, %512 : vector<8x128xf32>
    %514 = vector.extract_strided_slice %505 {offsets = [0, 128], sizes = [8, 128], strides = [1, 1]} : vector<8x256xf32> to vector<8x128xf32>
    %515 = arith.mulf %514, %485 : vector<8x128xf32>
    %516 = vector.extract_strided_slice %505 {offsets = [0, 0], sizes = [8, 128], strides = [1, 1]} : vector<8x256xf32> to vector<8x128xf32>
    %517 = arith.mulf %516, %507 : vector<8x128xf32>
    %518 = arith.addf %515, %517 : vector<8x128xf32>
    %519 = math.tanh %518 : vector<8x128xf32>
    %520 = arith.mulf %513, %519 : vector<8x128xf32>
    %521 = arith.truncf %520 : vector<8x128xf32> to vector<8x128xbf16>
    %522 = arith.index_cast %c6_i32_136 : i32 to index
    %c0_142 = arith.constant 0 : index
    %c0_143 = arith.constant 0 : index
    %523 = vector.load %arg6[%522, %c0_142, %c0_143] : memref<8x8x128xbf16, #tpu.memory_space<vmem>>, vector<1x8x128xbf16>
    %524 = vector.shape_cast %523 : vector<1x8x128xbf16> to vector<8x128xbf16>
    %525 = vector.shape_cast %521 : vector<8x128xbf16> to vector<1x8x128xbf16>
    tpu.vector_store %arg6[%522, %c0_142, %c0_143], %525 {strides = array<i32>} : memref<8x8x128xbf16, #tpu.memory_space<vmem>>, vector<1x8x128xbf16>,
    %c7_i32_144 = arith.constant 7 : i32
    %526 = arith.index_cast %c7_i32_144 : i32 to index
    %c0_145 = arith.constant 0 : index
    %c0_146 = arith.constant 0 : index
    %527 = vector.load %arg7[%526, %c0_145, %c0_146] : memref<8x8x512xbf16, #tpu.memory_space<vmem>>, vector<1x8x512xbf16>
    %528 = vector.shape_cast %527 : vector<1x8x512xbf16> to vector<8x512xbf16>
    %529 = arith.extf %528 : vector<8x512xbf16> to vector<8x512xf32>
    %530 = arith.truncf %520 : vector<8x128xf32> to vector<8x128xbf16>
    %cst_147 = arith.constant dense<0.000000e+00> : vector<8x512xf32>
    %531 = tpu.matmul %530, %292, %cst_147 {dimension_numbers = #tpu.dot_dimension_numbers<[1], [0], [0], [1], [0, 0, 1, 1], [], []>} : vector<8x128xbf16>, vector<128x512xbf16>, vector<8x512xf32> -> vector<8x512xf32>
    %532 = arith.addf %529, %531 : vector<8x512xf32>
    %533 = vector.extract_strided_slice %532 {offsets = [0, 0], sizes = [8, 256], strides = [1, 1]} : vector<8x512xf32> to vector<8x256xf32>
    %534 = arith.negf %533 : vector<8x256xf32>
    %535 = math.exp %534 : vector<8x256xf32>
    %cst_148 = arith.constant 1.000000e+00 : f32
    %536 = vector.broadcast %cst_148 : f32 to vector<8x256xf32>
    %537 = arith.addf %536, %535 : vector<8x256xf32>
    %538 = arith.divf %536, %537 : vector<8x256xf32>
    %539 = vector.extract_strided_slice %532 {offsets = [0, 256], sizes = [8, 128], strides = [1, 1]} : vector<8x512xf32> to vector<8x128xf32>
    %540 = math.tanh %539 : vector<8x128xf32>
    %541 = vector.extract_strided_slice %532 {offsets = [0, 384], sizes = [8, 128], strides = [1, 1]} : vector<8x512xf32> to vector<8x128xf32>
    %542 = arith.negf %541 : vector<8x128xf32>
    %543 = math.exp %542 : vector<8x128xf32>
    %cst_149 = arith.constant 1.000000e+00 : f32
    %544 = vector.broadcast %cst_149 : f32 to vector<8x128xf32>
    %545 = arith.addf %544, %543 : vector<8x128xf32>
    %546 = arith.divf %544, %545 : vector<8x128xf32>
    %547 = vector.extract_strided_slice %538 {offsets = [0, 128], sizes = [8, 128], strides = [1, 1]} : vector<8x256xf32> to vector<8x128xf32>
    %548 = arith.mulf %547, %518 : vector<8x128xf32>
    %549 = vector.extract_strided_slice %538 {offsets = [0, 0], sizes = [8, 128], strides = [1, 1]} : vector<8x256xf32> to vector<8x128xf32>
    %550 = arith.mulf %549, %540 : vector<8x128xf32>
    %551 = arith.addf %548, %550 : vector<8x128xf32>
    %552 = math.tanh %551 : vector<8x128xf32>
    %553 = arith.mulf %546, %552 : vector<8x128xf32>
    %554 = arith.truncf %553 : vector<8x128xf32> to vector<8x128xbf16>
    %555 = arith.index_cast %c7_i32_144 : i32 to index
    %c0_150 = arith.constant 0 : index
    %c0_151 = arith.constant 0 : index
    %556 = vector.load %arg6[%555, %c0_150, %c0_151] : memref<8x8x128xbf16, #tpu.memory_space<vmem>>, vector<1x8x128xbf16>
    %557 = vector.shape_cast %556 : vector<1x8x128xbf16> to vector<8x128xbf16>
    %558 = vector.shape_cast %554 : vector<8x128xbf16> to vector<1x8x128xbf16>
    tpu.vector_store %arg6[%555, %c0_150, %c0_151], %558 {strides = array<i32>} : memref<8x8x128xbf16, #tpu.memory_space<vmem>>, vector<1x8x128xbf16>,
    %c8_i32_152 = arith.constant 8 : i32
    return
  }
  func.func @transform_0(%arg0: i32) -> (i32, i32, i32) {
    %c0_i32 = arith.constant 0 : i32
    %c0_i32_0 = arith.constant 0 : i32
    %c0_i32_1 = arith.constant 0 : i32
    return %c0_i32, %arg0, %c0_i32_0 : i32, i32, i32
  }
  func.func @transform_1(%arg0: i32) -> (i32, i32) {
    %c0_i32 = arith.constant 0 : i32
    %c0_i32_0 = arith.constant 0 : i32
    %c0_i32_1 = arith.constant 0 : i32
    return %c0_i32, %c0_i32_0 : i32, i32
  }
  func.func @transform_2(%arg0: i32) -> (i32, i32, i32) {
    %c0_i32 = arith.constant 0 : i32
    %c0_i32_0 = arith.constant 0 : i32
    %c0_i32_1 = arith.constant 0 : i32
    %c0_i32_2 = arith.constant 0 : i32
    return %c0_i32, %c0_i32_0, %c0_i32_1 : i32, i32, i32
  }
  func.func @transform_3(%arg0: i32) -> (i32, i32, i32) {
    %c0_i32 = arith.constant 0 : i32
    %c0_i32_0 = arith.constant 0 : i32
    %c0_i32_1 = arith.constant 0 : i32
    %c0_i32_2 = arith.constant 0 : i32
    return %c0_i32, %c0_i32_0, %c0_i32_1 : i32, i32, i32
  }
  func.func @transform_4(%arg0: i32) -> (i32, i32, i32) {
    %c0_i32 = arith.constant 0 : i32
    %c0_i32_0 = arith.constant 0 : i32
    %c0_i32_1 = arith.constant 0 : i32
    %c0_i32_2 = arith.constant 0 : i32
    return %c0_i32, %c0_i32_0, %c0_i32_1 : i32, i32, i32
  }
  func.func @transform_5(%arg0: i32) -> (i32, i32, i32) {
    %c0_i32 = arith.constant 0 : i32
    %c0_i32_0 = arith.constant 0 : i32
    %c0_i32_1 = arith.constant 0 : i32
    return %c0_i32, %arg0, %c0_i32_0 : i32, i32, i32
  }
}

</mosaic_0001>

<bundles_post_ra>
// kernel: tpu_custom_call.1
= control target key start
LH: loop header
LB: loop body
LE: loop exit
PB: predicated region body
PF: predicated region fallthrough
CT: control target
= control target key end

     0   :  { %10 = vsyncpa [#allocation4], 0  ;;  %s5583_s0 = inlined_call_operand.hbm [shape: bf16[8,8,128], index: 0, kind: input, shape index: {}]   ;;  %s5584_s1 = inlined_call_operand.hbm [shape: bf16[128,512], index: 1, kind: input, shape index: {}]   ;;  %s5585_s2 = inlined_call_operand.hbm [shape: bf16[1,128,512], index: 2, kind: input, shape index: {}]   ;;  %s5586_s3 = inlined_call_operand.hbm [shape: bf16[2,128,512], index: 3, kind: input, shape index: {}]   ;;  %s5587_s4 = inlined_call_operand.vmem [shape: f32[2,1,512], index: 4, kind: input, shape index: {}]   ;;  %s5588_s5 = inlined_call_operand.hbm [shape: bf16[8,8,128], index: 5, kind: output, shape index: {}]  }
   0x1   :  { %11 = vsyncpa [#allocation7], 0 }
   0x2   :  { %12 = vsyncpa [#allocation10], 0 }
   0x3   :  { %13 = vsyncpa [#allocation5], 0  ;;  %s4353_s18 = smov [#allocation6]   ;;  %s4235_s22 = scalar_lea.hbm %s5584_s1, 4096 }
   0x4   :  { %s31_s19 = sshll.u32 %s4353_s18, 4  ;;  %p4236_p0 = scmp.ne.s32.totalorder %s5584_s1, %s4235_s22  ;;  %s32_s19 = int_to_ptr.vmem [resolvable:$true] %s31_s19 }
   0x5   :  { %p4239_p1 = scmp.lt.u32.totalorder %s4235_s22, %s5584_s1 }
   0x7   :  { %p4241_p2 = pnand %p4239_p1, %p4236_p0 }
   0x9   :  { %4244 = shalt.err (!%p4241_p2)
}
   0xa   :  { %s4245_s27 = scalar_lea.vmem %s32_s19, 4096  ;;  %p4250_p4 = scmp.lt.s32.totalorder %s32_s19, %s32_s19 }
   0xb   :  { %p4246_p3 = scmp.ne.s32.totalorder %s32_s19, %s4245_s27  ;;  %p4251_p5 = scmp.lt.s32.totalorder %s4245_s27, %s4245_s27 }
   0xd   :  { %p4252_p6 = por %p4251_p5, %p4250_p4 }
   0xf   :  { %p4253_p7 = pnand %p4252_p6, %p4246_p3 }
  0x11   :  { %4256 = shalt.err (!%p4253_p7)
}
  0x12   :  { %s4354_s28 = smov 256   ;;  %s4355_s29 = smov 16  }
  0x13   :  { %37 = dma.hbm_to_vmem [thread:$0]  %s5584_s1, 4096, %s32_s19, [#allocation7], %s4354_s28, %s4354_s28, %s4355_s29  }
  0x14   :  { %s4356_s7 = smov [#allocation3]   ;;  %s4257_s11 = scalar_lea.hbm %s5583_s0, 512 }
  0x15   :  { %s19_s8 = sshll.u32 %s4356_s7, 4  ;;  %p4258_p8 = scmp.ne.s32.totalorder %s5583_s0, %s4257_s11  ;;  %s20_s8 = int_to_ptr.vmem [resolvable:$true] %s19_s8 }
  0x16   :  { %p4261_p9 = scmp.lt.u32.totalorder %s4257_s11, %s5583_s0 }
  0x18   :  { %p4263_p10 = pnand %p4261_p9, %p4258_p8 }
  0x1a   :  { %4266 = shalt.err (!%p4263_p10)
}
  0x1b   :  { %s4267_s16 = scalar_lea.vmem %s20_s8, 512  ;;  %p4272_p12 = scmp.lt.s32.totalorder %s20_s8, %s20_s8 }
  0x1c   :  { %p4268_p11 = scmp.ne.s32.totalorder %s20_s8, %s4267_s16  ;;  %p4273_p13 = scmp.lt.s32.totalorder %s4267_s16, %s4267_s16 }
  0x1e   :  { %p4274_p0 = por %p4273_p13, %p4272_p12 }
  0x20   :  { %p4275_p1 = pnand %p4274_p0, %p4268_p11 }
  0x22   :  { %4278 = shalt.err (!%p4275_p1)
}
  0x23   :  { %s4357_s1 = smov 64   ;;  %s4358_s17 = smov 4  }
  0x24   :  { %25 = dma.hbm_to_vmem [thread:$0]  %s5583_s0, 512, %s20_s8, [#allocation4], %s4357_s1, %s4357_s1, %s4358_s17  }
  0x25   :  { %s4359_s20 = smov [#allocation8]   ;;  %s4360_s22 = smov [#allocation9]  }
  0x26   :  { %s43_s21 = sshll.u32 %s4359_s20, 4  ;;  %s55_s23 = sshll.u32 %s4360_s22, 4  ;;  %s44_s21 = int_to_ptr.vmem [resolvable:$true] %s43_s21  ;;  %s4423_s23 = int_to_ptr.vmem [resolvable:$true] %s55_s23 }
  0x27   :  { %s4279_s26 = scalar_lea.hbm %s5585_s2, 4096 }
  0x28   :  { %p4280_p2 = scmp.ne.s32.totalorder %s5585_s2, %s4279_s26  ;;  %p4283_p3 = scmp.lt.u32.totalorder %s4279_s26, %s5585_s2 }
  0x2a   :  { %p4285_p4 = pnand %p4283_p3, %p4280_p2 }
  0x2c   :  { %4288 = shalt.err (!%p4285_p4)
}
  0x2d   :  { %s4289_s0 = scalar_lea.vmem %s44_s21, 4096  ;;  %p4294_p6 = scmp.lt.s32.totalorder %s44_s21, %s44_s21 }
  0x2e   :  { %p4290_p5 = scmp.ne.s32.totalorder %s44_s21, %s4289_s0  ;;  %p4295_p7 = scmp.lt.s32.totalorder %s4289_s0, %s4289_s0 }
  0x30   :  { %p4296_p8 = por %p4295_p7, %p4294_p6 }
  0x32   :  { %p4297_p9 = pnand %p4296_p8, %p4290_p5 }
  0x34   :  { %4300 = shalt.err (!%p4297_p9)
}
  0x35   :  { %49 = dma.hbm_to_vmem [thread:$0]  %s5585_s2, 4096, %s44_s21, [#allocation7], %s4354_s28, %s4354_s28, %s4355_s29  }
  0x36   :  { %s4301_s12 = scalar_lea.hbm %s5586_s3, 8192 }
  0x37   :  { %p4302_p10 = scmp.ne.s32.totalorder %s5586_s3, %s4301_s12  ;;  %p4305_p11 = scmp.lt.u32.totalorder %s4301_s12, %s5586_s3 }
  0x39   :  { %p4307_p12 = pnand %p4305_p11, %p4302_p10 }
  0x3b   :  { %4310 = shalt.err (!%p4307_p12)
}
  0x3c   :  { %s4311_s18 = scalar_lea.vmem %s4423_s23, 8192  ;;  %p4316_p0 = scmp.lt.s32.totalorder %s4423_s23, %s4423_s23 }
  0x3d   :  { %p4312_p13 = scmp.ne.s32.totalorder %s4423_s23, %s4311_s18  ;;  %p4317_p1 = scmp.lt.s32.totalorder %s4311_s18, %s4311_s18 }
  0x3f   :  { %p4318_p2 = por %p4317_p1, %p4316_p0 }
  0x41   :  { %p4319_p3 = pnand %p4318_p2, %p4312_p13 }
  0x43   :  { %4322 = shalt.err (!%p4319_p3)
}
  0x44   :  { %61 = dma.hbm_to_vmem [thread:$0]  %s5586_s3, 8192, %s4423_s23, [#allocation10], %s4354_s28, %s4354_s28, %s4355_s29  }
  0x45   :  { %4345 = dma.done.wait [#allocation4], 512  }
  0x46   :  { %4346 = vsyncadd [#allocation4], 4294966784 }
  0x47   :  { %4347 = dma.done.wait [#allocation7], 8192  }
  0x48   :  { %4348 = vsyncadd [#allocation7], 4294959104 }
  0x49   :  { %4349 = dma.done.wait [#allocation10], 8192  }
  0x4a   :  { %4350 = vsyncadd [#allocation10], 4294959104  ;;  %v5593_v0 = vmov 0   ;;  %v3715_v1 = vld [vmem:[#allocation6 + $0x4] ss:$16 sps:$4 sm:$0xff]   ;;  %v3776_v44 = vld [vmem:[#allocation3 + $0x8] sm:$0xff]  }
  0x4b   :  { %355 = vmatprep.mubr.bf16.mxu0 %v5593_v0  ;;  %428 = vmatprep.mubr.bf16.mxu1 %v5593_v0  ;;  %v3717_v2 = vld [vmem:[#allocation6 + $0xc] ss:$16 sps:$4 sm:$0xff]   ;;  %v3719_v3 = vld [vmem:[#allocation6] ss:$16 sps:$4 sm:$0xff]   ;;  %v3720_v4 = vld [vmem:[#allocation6 + $0x8] ss:$16 sps:$4 sm:$0xff]  }
  0x4c   :  { %323 = vmatprep.subr.bf16.mxu0 %v3715_v1  ;;  %396 = vmatprep.subr.bf16.mxu1 %v3717_v2  ;;  %v3721_v5 = vld [vmem:[#allocation6 + $0x24] ss:$16 sps:$4 sm:$0xff]   ;;  %v3723_v6 = vld [vmem:[#allocation6 + $0x2c] ss:$16 sps:$4 sm:$0xff]   ;;  %v3725_v7 = vld [vmem:[#allocation6 + $0x20] ss:$16 sps:$4 sm:$0xff]  }
  0x4d   :  { %324 = vmatpush1.bf16.msra.mxu0 %v3719_v3  ;;  %397 = vmatpush1.bf16.msra.mxu1 %v3720_v4  ;;  %v3726_v8 = vld [vmem:[#allocation6 + $0x28] ss:$16 sps:$4 sm:$0xff]   ;;  %v3727_v9 = vld [vmem:[#allocation6 + $0x44] ss:$16 sps:$4 sm:$0xff]   ;;  %v3729_v10 = vld [vmem:[#allocation6 + $0x4c] ss:$16 sps:$4 sm:$0xff]  }
  0x4e   :  { %325 = vmatprep.subr.bf16.mxu0 %v3721_v5  ;;  %398 = vmatprep.subr.bf16.mxu1 %v3723_v6  ;;  %v3731_v11 = vld [vmem:[#allocation6 + $0x40] ss:$16 sps:$4 sm:$0xff]   ;;  %v3732_v12 = vld [vmem:[#allocation6 + $0x48] ss:$16 sps:$4 sm:$0xff]   ;;  %v3733_v13 = vld [vmem:[#allocation6 + $0x64] ss:$16 sps:$4 sm:$0xff]   ;;  %v119_v6 = vlaneseq }
  0x4f   :  { %v3735_v14 = vld [vmem:[#allocation6 + $0x6c] ss:$16 sps:$4 sm:$0xff]   ;;  %v3737_v15 = vld [vmem:[#allocation6 + $0x60] ss:$16 sps:$4 sm:$0xff]   ;;  %v3738_v16 = vld [vmem:[#allocation6 + $0x68] ss:$16 sps:$4 sm:$0xff]  }
  0x50   :  { %v3739_v17 = vld [vmem:[#allocation6 + $0x84] ss:$16 sps:$4 sm:$0xff]   ;;  %v3741_v18 = vld [vmem:[#allocation6 + $0x8c] ss:$16 sps:$4 sm:$0xff]   ;;  %v3743_v19 = vld [vmem:[#allocation6 + $0x80] ss:$16 sps:$4 sm:$0xff]  }
  0x51   :  { %326 = vmatpush1.bf16.msra.mxu0 %v3725_v7  ;;  %399 = vmatpush1.bf16.msra.mxu1 %v3726_v8  ;;  %v3744_v20 = vld [vmem:[#allocation6 + $0x88] ss:$16 sps:$4 sm:$0xff]   ;;  %v3745_v21 = vld [vmem:[#allocation6 + $0xa4] ss:$16 sps:$4 sm:$0xff]   ;;  %v3747_v22 = vld [vmem:[#allocation6 + $0xac] ss:$16 sps:$4 sm:$0xff]  }
  0x52   :  { %327 = vmatprep.subr.bf16.mxu0 %v3727_v9  ;;  %400 = vmatprep.subr.bf16.mxu1 %v3729_v10  ;;  %v3749_v23 = vld [vmem:[#allocation6 + $0xa0] ss:$16 sps:$4 sm:$0xff]   ;;  %v3750_v24 = vld [vmem:[#allocation6 + $0xa8] ss:$16 sps:$4 sm:$0xff]   ;;  %v3751_v25 = vld [vmem:[#allocation6 + $0xc4] ss:$16 sps:$4 sm:$0xff]  }
  0x53   :  { %v3753_v26 = vld [vmem:[#allocation6 + $0xcc] ss:$16 sps:$4 sm:$0xff]   ;;  %v3755_v27 = vld [vmem:[#allocation6 + $0xc0] ss:$16 sps:$4 sm:$0xff]   ;;  %v3756_v28 = vld [vmem:[#allocation6 + $0xc8] ss:$16 sps:$4 sm:$0xff]  }
  0x54   :  { %v3757_v29 = vld [vmem:[#allocation6 + $0xe4] ss:$16 sps:$4 sm:$0xff]   ;;  %v3759_v30 = vld [vmem:[#allocation6 + $0xec] ss:$16 sps:$4 sm:$0xff]   ;;  %v3761_v31 = vld [vmem:[#allocation6 + $0xe0] ss:$16 sps:$4 sm:$0xff]  }
  0x55   :  { %328 = vmatpush1.bf16.msra.mxu0 %v3731_v11  ;;  %401 = vmatpush1.bf16.msra.mxu1 %v3732_v12  ;;  %v3762_v32 = vld [vmem:[#allocation6 + $0xe8] ss:$16 sps:$4 sm:$0xff]   ;;  %v4462_v33 = vld [vmem:[#allocation9 + $0x4] ss:$16 sps:$4 sm:$0xff]   ;;  %v4464_v34 = vld [vmem:[#allocation9 + $0xc] ss:$16 sps:$4 sm:$0xff]  }
  0x56   :  { %329 = vmatprep.subr.bf16.mxu0 %v3733_v13  ;;  %402 = vmatprep.subr.bf16.mxu1 %v3735_v14  ;;  %v3763_v35 = vld [vmem:[#allocation3] sm:$0xff]   ;;  %v4468_v37 = vld [vmem:[#allocation9 + $0x8] ss:$16 sps:$4 sm:$0xff]   ;;  %v4474_v39 = vld [vmem:[#allocation9 + $0x2c] ss:$16 sps:$4 sm:$0xff]   ;;  %v4604_v7 = vshrl.u32 %v119_v6, 7 }
  0x57   :  { %v4466_v36 = vld [vmem:[#allocation9] ss:$16 sps:$4 sm:$0xff]   ;;  %v4472_v38 = vld [vmem:[#allocation9 + $0x24] ss:$16 sps:$4 sm:$0xff]   ;;  %v4480_v41 = vld [vmem:[#allocation9 + $0x28] ss:$16 sps:$4 sm:$0xff]  }
  0x58   :  { %v4476_v40 = vld [vmem:[#allocation9 + $0x20] ss:$16 sps:$4 sm:$0xff]   ;;  %v4484_v42 = vld [vmem:[#allocation9 + $0x44] ss:$16 sps:$4 sm:$0xff]   ;;  %v4486_v43 = vld [vmem:[#allocation9 + $0x4c] ss:$16 sps:$4 sm:$0xff]  }
  0x59   :  { %330 = vmatpush1.bf16.msra.mxu0 %v3737_v15  ;;  %403 = vmatpush1.bf16.msra.mxu1 %v3738_v16  ;;  %v4490_v45 = vld [vmem:[#allocation9 + $0x40] ss:$16 sps:$4 sm:$0xff]   ;;  %v4492_v46 = vld [vmem:[#allocation9 + $0x48] ss:$16 sps:$4 sm:$0xff]   ;;  %v4496_v47 = vld [vmem:[#allocation9 + $0x64] ss:$16 sps:$4 sm:$0xff]  }
  0x5a   :  { %331 = vmatprep.subr.bf16.mxu0 %v3739_v17  ;;  %404 = vmatprep.subr.bf16.mxu1 %v3741_v18  ;;  %v4500_v48 = vld [vmem:[#allocation9 + $0x6c] ss:$16 sps:$4 sm:$0xff]   ;;  %v4502_v49 = vld [vmem:[#allocation9 + $0x60] ss:$16 sps:$4 sm:$0xff]   ;;  %v4504_v50 = vld [vmem:[#allocation9 + $0x68] ss:$16 sps:$4 sm:$0xff]  }
  0x5b   :  { %v4508_v51 = vld [vmem:[#allocation9 + $0x84] ss:$16 sps:$4 sm:$0xff]   ;;  %v4512_v52 = vld [vmem:[#allocation9 + $0x8c] ss:$16 sps:$4 sm:$0xff]   ;;  %v4516_v54 = vld [vmem:[#allocation9 + $0x80] ss:$16 sps:$4 sm:$0xff]  }
  0x5c   :  { %v3789_v53 = vld [vmem:[#allocation3 + $0x10] sm:$0xff]   ;;  %v4518_v55 = vld [vmem:[#allocation9 + $0x88] ss:$16 sps:$4 sm:$0xff]   ;;  %v4522_v57 = vld [vmem:[#allocation9 + $0xac] ss:$16 sps:$4 sm:$0xff]   ;;  %5608 = vst [vmem:[#allocation16_spill] sm:$0xff] %v4604_v7 }
  0x5d   :  { %332 = vmatpush1.bf16.msra.mxu0 %v3743_v19  ;;  %405 = vmatpush1.bf16.msra.mxu1 %v3744_v20  ;;  %v4520_v56 = vld [vmem:[#allocation9 + $0xa4] ss:$16 sps:$4 sm:$0xff]   ;;  %v4528_v58 = vld [vmem:[#allocation9 + $0xa0] ss:$16 sps:$4 sm:$0xff]   ;;  %v4530_v59 = vld [vmem:[#allocation9 + $0xa8] ss:$16 sps:$4 sm:$0xff]  }
  0x5e   :  { %333 = vmatprep.subr.bf16.mxu0 %v3745_v21  ;;  %406 = vmatprep.subr.bf16.mxu1 %v3747_v22  ;;  %v4532_v60 = vld [vmem:[#allocation9 + $0xc4] ss:$16 sps:$4 sm:$0xff]   ;;  %v4534_v61 = vld [vmem:[#allocation9 + $0xcc] ss:$16 sps:$4 sm:$0xff]   ;;  %v4542_v63 = vld [vmem:[#allocation9 + $0xc0] ss:$16 sps:$4 sm:$0xff]  }
  0x5f   :  { %v3802_v62 = vld [vmem:[#allocation3 + $0x18] sm:$0xff]   ;;  %v4546_v2 = vld [vmem:[#allocation9 + $0xe4] ss:$16 sps:$4 sm:$0xff]   ;;  %v4554_v4 = vld [vmem:[#allocation9 + $0xe0] ss:$16 sps:$4 sm:$0xff]   ;;  %v5592_v8 = vsub.s32 0, %v4604_v7 }
  0x60   :  { %v4544_v1 = vld [vmem:[#allocation9 + $0xc8] ss:$16 sps:$4 sm:$0xff]   ;;  %v4548_v3 = vld [vmem:[#allocation9 + $0xec] ss:$16 sps:$4 sm:$0xff]   ;;  %v5591_v9 = vsub.s32 2, %v4604_v7  ;;  %v5590_v11 = vsub.s32 1, %v4604_v7 }
  0x61   :  { %334 = vmatpush1.bf16.msra.mxu0 %v3749_v23  ;;  %407 = vmatpush1.bf16.msra.mxu1 %v3750_v24  ;;  %v4556_v5 = vld [vmem:[#allocation9 + $0xe8] ss:$16 sps:$4 sm:$0xff]   ;;  %v117_v10 = vld [vmem:[%s5587_s4] sm:$0xf]  ;;  %v5589_v12 = vsub.s32 3, %v4604_v7 }
  0x62   :  { %335 = vmatprep.subr.bf16.mxu0 %v3751_v25  ;;  %408 = vmatprep.subr.bf16.mxu1 %v3753_v26  ;;  %v4615_v13 = vrot.slane %v117_v10, %v5592_v8  ;;  %v4619_v14 = vrot.slane %v117_v10, %v5591_v9  ;;  %v4623_v15 = vrot.slane %v117_v10, %v5590_v11 }
  0x63   :  { %v4627_v16 = vrot.slane %v117_v10, %v5589_v12 }
  0x65   :  { %336 = vmatpush1.bf16.msra.mxu0 %v3755_v27  ;;  %409 = vmatpush1.bf16.msra.mxu1 %v3756_v28 }
  0x66   :  { %337 = vmatprep.subr.bf16.mxu0 %v3757_v29  ;;  %410 = vmatprep.subr.bf16.mxu1 %v3759_v30 }
  0x69   :  { %338 = vmatpush1.bf16.msra.mxu0 %v3761_v31  ;;  %411 = vmatpush1.bf16.msra.mxu1 %v3762_v32 }
  0x6a   :  { %811 = vmatprep.subr.bf16.mxu0 %v4462_v33  ;;  %852 = vmatprep.subr.bf16.mxu1 %v4464_v34 }
  0x6c   :  { %356 = vmatmul.mubr.bf16.vlgmr.msra.gmra.mrb[0].mxu0 %v3763_v35  ;;  %429 = vmatmul.mubr.bf16.vlgmr.msra.gmra.mrb[0].mxu1 %v3763_v35 }
  0x6d   :  { %812 = vmatpush1.bf16.msra.mxu0 %v4466_v36  ;;  %853 = vmatpush1.bf16.msra.mxu1 %v4468_v37 }
  0x6e   :  { %813 = vmatprep.subr.bf16.mxu0 %v4472_v38  ;;  %854 = vmatprep.subr.bf16.mxu1 %v4474_v39 }
  0x6f   :  { %365 = vmatprep.mubr.bf16.mxu0 %v5593_v0  ;;  %438 = vmatprep.mubr.bf16.mxu1 %v5593_v0 }
  0x71   :  { %814 = vmatpush1.bf16.msra.mxu0 %v4476_v40  ;;  %855 = vmatpush1.bf16.msra.mxu1 %v4480_v41 }
  0x72   :  { %815 = vmatprep.subr.bf16.mxu0 %v4484_v42  ;;  %856 = vmatprep.subr.bf16.mxu1 %v4486_v43 }
  0x74   :  { %366 = vmatmul.mubr.bf16.gmra.mrb[4].mxu0 %v3776_v44  ;;  %439 = vmatmul.mubr.bf16.gmra.mrb[4].mxu1 %v3776_v44 }
  0x75   :  { %816 = vmatpush1.bf16.msra.mxu0 %v4490_v45  ;;  %857 = vmatpush1.bf16.msra.mxu1 %v4492_v46 }
  0x76   :  { %817 = vmatprep.subr.bf16.mxu0 %v4496_v47  ;;  %858 = vmatprep.subr.bf16.mxu1 %v4500_v48 }
  0x77   :  { %375 = vmatprep.mubr.bf16.mxu0 %v5593_v0  ;;  %448 = vmatprep.mubr.bf16.mxu1 %v5593_v0 }
  0x79   :  { %818 = vmatpush1.bf16.msra.mxu0 %v4502_v49  ;;  %859 = vmatpush1.bf16.msra.mxu1 %v4504_v50 }
  0x7a   :  { %819 = vmatprep.subr.bf16.mxu0 %v4508_v51  ;;  %860 = vmatprep.subr.bf16.mxu1 %v4512_v52 }
  0x7c   :  { %376 = vmatmul.mubr.bf16.gmra.mrb[8].mxu0 %v3789_v53  ;;  %449 = vmatmul.mubr.bf16.gmra.mrb[8].mxu1 %v3789_v53 }
  0x7d   :  { %820 = vmatpush1.bf16.msra.mxu0 %v4516_v54  ;;  %861 = vmatpush1.bf16.msra.mxu1 %v4518_v55 }
  0x7e   :  { %821 = vmatprep.subr.bf16.mxu0 %v4520_v56  ;;  %862 = vmatprep.subr.bf16.mxu1 %v4522_v57 }
  0x7f   :  { %385 = vmatprep.mubr.bf16.mxu0 %v5593_v0  ;;  %458 = vmatprep.mubr.bf16.mxu1 %v5593_v0 }
  0x81   :  { %822 = vmatpush1.bf16.msra.mxu0 %v4528_v58  ;;  %863 = vmatpush1.bf16.msra.mxu1 %v4530_v59 }
  0x82   :  { %823 = vmatprep.subr.bf16.mxu0 %v4532_v60  ;;  %864 = vmatprep.subr.bf16.mxu1 %v4534_v61 }
  0x84   :  { %386 = vmatmul.mubr.bf16.gmra.mrb[12].mxu0 %v3802_v62  ;;  %459 = vmatmul.mubr.bf16.gmra.mrb[12].mxu1 %v3802_v62 }
  0x85   :  { %824 = vmatpush1.bf16.msra.mxu0 %v4542_v63  ;;  %865 = vmatpush1.bf16.msra.mxu1 %v4544_v1 }
  0x86   :  { %825 = vmatprep.subr.bf16.mxu0 %v4546_v2  ;;  %866 = vmatprep.subr.bf16.mxu1 %v4548_v3 }
  0x87   :  { %843 = vmatprep.mubr.bf16.mxu0 %v5593_v0  ;;  %884 = vmatprep.mubr.bf16.mxu1 %v5593_v0 }
  0x89   :  { %826 = vmatpush1.bf16.msra.mxu0 %v4554_v4  ;;  %867 = vmatpush1.bf16.msra.mxu1 %v4556_v5 }
  0x8a   :  { %930 = vmatprep.subr.bf16.mxu0 %v4462_v33  ;;  %971 = vmatprep.subr.bf16.mxu1 %v4464_v34 }
  0x8c   :  { %844 = vmatmul.mubr.bf16.vlgmr.msra.gmra.mrb[16].mxu0 %v5593_v0  ;;  %885 = vmatmul.mubr.bf16.vlgmr.msra.gmra.mrb[16].mxu1 %v5593_v0 }
  0x8d   :  { %931 = vmatpush1.bf16.msra.mxu0 %v4466_v36  ;;  %972 = vmatpush1.bf16.msra.mxu1 %v4468_v37 }
  0x8e   :  { %932 = vmatprep.subr.bf16.mxu0 %v4472_v38  ;;  %973 = vmatprep.subr.bf16.mxu1 %v4474_v39 }
  0x8f   :  { %962 = vmatprep.mubr.bf16.mxu0 %v5593_v0  ;;  %1003 = vmatprep.mubr.bf16.mxu1 %v5593_v0 }
  0x91   :  { %933 = vmatpush1.bf16.msra.mxu0 %v4476_v40  ;;  %974 = vmatpush1.bf16.msra.mxu1 %v4480_v41 }
  0x92   :  { %934 = vmatprep.subr.bf16.mxu0 %v4484_v42  ;;  %975 = vmatprep.subr.bf16.mxu1 %v4486_v43 }
  0x95   :  { %935 = vmatpush1.bf16.msra.mxu0 %v4490_v45  ;;  %976 = vmatpush1.bf16.msra.mxu1 %v4492_v46 }
  0x96   :  { %936 = vmatprep.subr.bf16.mxu0 %v4496_v47  ;;  %977 = vmatprep.subr.bf16.mxu1 %v4500_v48 }
  0x99   :  { %937 = vmatpush1.bf16.msra.mxu0 %v4502_v49  ;;  %978 = vmatpush1.bf16.msra.mxu1 %v4504_v50 }
  0x9a   :  { %938 = vmatprep.subr.bf16.mxu0 %v4508_v51  ;;  %979 = vmatprep.subr.bf16.mxu1 %v4512_v52 }
  0x9d   :  { %939 = vmatpush1.bf16.msra.mxu0 %v4516_v54  ;;  %980 = vmatpush1.bf16.msra.mxu1 %v4518_v55 }
  0x9e   :  { %940 = vmatprep.subr.bf16.mxu0 %v4520_v56  ;;  %981 = vmatprep.subr.bf16.mxu1 %v4522_v57 }
  0xa1   :  { %941 = vmatpush1.bf16.msra.mxu0 %v4528_v58  ;;  %982 = vmatpush1.bf16.msra.mxu1 %v4530_v59 }
  0xa2   :  { %942 = vmatprep.subr.bf16.mxu0 %v4532_v60  ;;  %983 = vmatprep.subr.bf16.mxu1 %v4534_v61 }
  0xa5   :  { %943 = vmatpush1.bf16.msra.mxu0 %v4542_v63  ;;  %984 = vmatpush1.bf16.msra.mxu1 %v4544_v1 }
  0xa6   :  { %944 = vmatprep.subr.bf16.mxu0 %v4546_v2  ;;  %985 = vmatprep.subr.bf16.mxu1 %v4548_v3 }
  0xa9   :  { %945 = vmatpush1.bf16.msra.mxu0 %v4554_v4  ;;  %986 = vmatpush1.bf16.msra.mxu1 %v4556_v5 }
  0xaa   :  { %1050 = vmatprep.subr.bf16.mxu0 %v4462_v33  ;;  %1091 = vmatprep.subr.bf16.mxu1 %v4464_v34 }
 0x13f   :  { %v357_v17 = vpop.f32.mrb[0].mxu0  ;;  %v430_v18 = vpop.f32.mrb[0].mxu1 }
 0x140   :  { %v358_v19 = vadd.f32 %v357_v17, %v4615_v13  ;;  %v359_v20 = vpop.f32.mrb[1].mxu0  ;;  %v431_v21 = vadd.f32 %v430_v18, %v4619_v14  ;;  %v432_v22 = vpop.f32.mrb[1].mxu1 }
 0x141   :  { %v360_v23 = vadd.f32 %v359_v20, %v4623_v15  ;;  %v361_v24 = vpop.f32.mrb[2].mxu0  ;;  %v433_v25 = vadd.f32 %v432_v22, %v4627_v16  ;;  %v434_v26 = vpop.f32.mrb[2].mxu1 }
 0x142   :  { %v362_v27 = vadd.f32 %v361_v24, %v4615_v13  ;;  %v363_v28 = vpop.f32.mrb[3].mxu0  ;;  %v435_v29 = vadd.f32 %v434_v26, %v4619_v14  ;;  %v436_v30 = vpop.f32.mrb[3].mxu1 }
 0x143   :  { %v4635_v31 = vpack.c.bf16 %v360_v23, %v358_v19  ;;  %v364_v32 = vadd.f32 %v363_v28, %v4623_v15  ;;  %v4638_v35 = vpack.c.bf16 %v433_v25, %v431_v21  ;;  %v437_v44 = vadd.f32 %v436_v30, %v4627_v16 }
 0x145   :  { %v4641_v53 = vpack.c.bf16 %v364_v32, %v362_v27  ;;  %v4643_v62 = vpack.c.bf16 %v437_v44, %v435_v29 }
 0x147   :  { %v367_v6 = vpop.f32.mrb[4].mxu0  ;;  %v440_v10 = vpop.f32.mrb[4].mxu1 }
 0x148   :  { %v368_v17 = vadd.f32 %v367_v6, %v4615_v13  ;;  %v369_v18 = vpop.f32.mrb[5].mxu0  ;;  %v441_v20 = vadd.f32 %v440_v10, %v4619_v14  ;;  %v442_v22 = vpop.f32.mrb[5].mxu1 }
 0x149   :  { %v370_v19 = vadd.f32 %v369_v18, %v4623_v15  ;;  %v371_v23 = vpop.f32.mrb[6].mxu0  ;;  %v443_v21 = vadd.f32 %v442_v22, %v4627_v16  ;;  %v444_v24 = vpop.f32.mrb[6].mxu1 }
 0x14a   :  { %v372_v25 = vadd.f32 %v371_v23, %v4615_v13  ;;  %v373_v26 = vpop.f32.mrb[7].mxu0  ;;  %v445_v27 = vadd.f32 %v444_v24, %v4619_v14  ;;  %v446_v28 = vpop.f32.mrb[7].mxu1 }
 0x14b   :  { %v4651_v29 = vpack.c.bf16 %v370_v19, %v368_v17  ;;  %v374_v30 = vadd.f32 %v373_v26, %v4623_v15  ;;  %v4654_v32 = vpack.c.bf16 %v443_v21, %v441_v20  ;;  %v447_v44 = vadd.f32 %v446_v28, %v4627_v16 }
 0x14d   :  { %v4657_v6 = vpack.c.bf16 %v374_v30, %v372_v25  ;;  %v4659_v10 = vpack.c.bf16 %v447_v44, %v445_v27 }
 0x14f   :  { %v377_v18 = vpop.f32.mrb[8].mxu0  ;;  %v450_v22 = vpop.f32.mrb[8].mxu1 }
 0x150   :  { %v378_v23 = vadd.f32 %v377_v18, %v4615_v13  ;;  %v379_v12 = vpop.f32.mrb[9].mxu0  ;;  %v451_v24 = vadd.f32 %v450_v22, %v4619_v14  ;;  %v452_v11 = vpop.f32.mrb[9].mxu1 }
 0x151   :  { %v380_v17 = vadd.f32 %v379_v12, %v4623_v15  ;;  %v381_v19 = vpop.f32.mrb[10].mxu0  ;;  %v453_v20 = vadd.f32 %v452_v11, %v4627_v16  ;;  %v454_v21 = vpop.f32.mrb[10].mxu1 }
 0x152   :  { %v382_v26 = vadd.f32 %v381_v19, %v4615_v13  ;;  %v383_v25 = vpop.f32.mrb[11].mxu0  ;;  %v455_v27 = vadd.f32 %v454_v21, %v4619_v14  ;;  %v456_v28 = vpop.f32.mrb[11].mxu1 }
 0x153   :  { %v4667_v30 = vpack.c.bf16 %v380_v17, %v378_v23  ;;  %v384_v44 = vadd.f32 %v383_v25, %v4623_v15  ;;  %v4670_v18 = vpack.c.bf16 %v453_v20, %v451_v24  ;;  %v457_v22 = vadd.f32 %v456_v28, %v4627_v16 }
 0x155   :  { %v4673_v9 = vpack.c.bf16 %v384_v44, %v382_v26  ;;  %v4675_v12 = vpack.c.bf16 %v457_v22, %v455_v27 }
 0x157   :  { %5609 = vst [vmem:[#allocation17_spill] sm:$0xff] %v4673_v9  ;;  %5610 = vst [vmem:[#allocation18_spill] sm:$0xff] %v4675_v12  ;;  %v387_v11 = vpop.f32.mrb[12].mxu0  ;;  %v460_v8 = vpop.f32.mrb[12].mxu1 }
 0x158   :  { %v388_v19 = vadd.f32 %v387_v11, %v4615_v13  ;;  %v389_v0 = vpop.f32.mrb[13].mxu0  ;;  %v461_v21 = vadd.f32 %v460_v8, %v4619_v14  ;;  %v462_v7 = vpop.f32.mrb[13].mxu1 }
 0x159   :  { %v390_v23 = vadd.f32 %v389_v0, %v4623_v15  ;;  %v391_v17 = vpop.f32.mrb[14].mxu0  ;;  %v463_v24 = vadd.f32 %v462_v7, %v4627_v16  ;;  %v464_v20 = vpop.f32.mrb[14].mxu1  ;;  %v647_v7 = vunpack.c.l.bf16 %v4635_v31 }
 0x15a   :  { %v392_v25 = vadd.f32 %v391_v17, %v4615_v13  ;;  %v393_v26 = vpop.f32.mrb[15].mxu0  ;;  %v465_v27 = vadd.f32 %v464_v20, %v4619_v14  ;;  %v466_v28 = vpop.f32.mrb[15].mxu1  ;;  %v649_v13 = vunpack.c.l.bf16 %v4638_v35  ;;  %v648_v14 = vunpack.c.h.bf16 %v4635_v31 }
 0x15b   :  { %v4683_v44 = vpack.c.bf16 %v390_v23, %v388_v19  ;;  %v394_v22 = vadd.f32 %v393_v26, %v4623_v15  ;;  %v4686_v11 = vpack.c.bf16 %v463_v24, %v461_v21  ;;  %v467_v8 = vadd.f32 %v466_v28, %v4627_v16 }
 0x15c   :  { %v650_v19 = vunpack.c.h.bf16 %v4638_v35 }
 0x15d   :  { %5611 = vst [vmem:[#allocation19_spill] sm:$0xff] %v4686_v11  ;;  %v4689_v12 = vpack.c.bf16 %v394_v22, %v392_v25  ;;  %v4691_v0 = vpack.c.bf16 %v467_v8, %v465_v27 }
 0x15f   :  { %5612 = vst [vmem:[#allocation20_spill] sm:$0xff] %v4689_v12  ;;  %5613 = vst [vmem:[#allocation21_spill] sm:$0xff] %v4691_v0  ;;  %v845_v17 = vpop.f32.mrb[16].mxu0  ;;  %v886_v9 = vpop.f32.mrb[16].mxu1 }
 0x160   :  { %v893_v23 = vadd.f32 %v845_v17, %v647_v7  ;;  %v895_v15 = vadd.f32 %v886_v9, %v649_v13  ;;  %v847_v21 = vpop.f32.mrb[17].mxu0  ;;  %v888_v24 = vpop.f32.mrb[17].mxu1 }
 0x161   :  { %v894_v20 = vadd.f32 %v847_v21, %v648_v14  ;;  %v896_v16 = vadd.f32 %v888_v24, %v650_v19  ;;  %v849_v25 = vpop.f32.mrb[18].mxu0  ;;  %v890_v26 = vpop.f32.mrb[18].mxu1 }
 0x162   :  { %v3540_v27 = vmul.f32 -1.442695, %v893_v23  ;;  %v850_v28 = vpop.f32.mrb[19].mxu0  ;;  %v891_v22 = vpop.f32.mrb[19].mxu1 }
 0x163   :  { %v3541_v8 = vmul.f32 -1.442695, %v894_v20  ;;  %v3542_v0 = vmul.f32 -1.442695, %v896_v16  ;;  %v928_v16 = vunpack.c.l.bf16 %v4643_v62  ;;  %v929_v28 = vunpack.c.h.bf16 %v4643_v62 }
 0x164   :  { %3915 = vpow2.f32 %v3540_v27  ;;  %v927_v27 = vunpack.c.h.bf16 %v4641_v53 }
 0x165   :  { %3917 = vpow2.f32 %v3541_v8 }
 0x166   :  { %3919 = vpow2.f32 %v3542_v0 }
 0x167   :  { %3921 = vtanh.f32 %v895_v15  ;;  %v926_v15 = vunpack.c.l.bf16 %v4641_v53 }
 0x16e   :  { %v3916_v12 = vpop.eup %3915 }
 0x16f   :  { %v3918_v11 = vpop.eup %3917  ;;  %v903_v31 = vadd.f32 1.0, %v3916_v12 }
 0x170   :  { %v904_v35 = vadd.f32 1.0, %v3918_v11  ;;  %v3920_v9 = vpop.eup %3919  ;;  %v5614_v11 = vmov 0  }
 0x171   :  { %3923 = vrcp.f32 %v903_v31  ;;  %v3922_v7 = vpop.eup %3921  ;;  %v913_v19 = vadd.f32 1.0, %v3920_v9 }
 0x172   :  { %3925 = vrcp.f32 %v904_v35 }
 0x173   :  { %3927 = vrcp.f32 %v913_v19 }
 0x17b   :  { %v3924_v13 = vpop.eup %3923 }
 0x17c   :  { %v3926_v17 = vpop.eup %3925  ;;  %v917_v14 = vmul.f32 %v3924_v13, %v3922_v7 }
 0x17d   :  { %v916_v23 = vmul.f32 0.0, %v3926_v17  ;;  %v3928_v24 = vpop.eup %3927 }
 0x17f   :  { %v4697_v21 = vadd.f32 %v917_v14, %v916_v23 }
 0x181   :  { %3929 = vtanh.f32 %v4697_v21 }
 0x18b   :  { %v3930_v20 = vpop.eup %3929 }
 0x18c   :  { %v920_v12 = vmul.f32 %v3930_v20, %v3928_v24 }
 0x18e   :  { %v921_v0 = vpack.c.bf16 %v920_v12, %v920_v12 }
 0x190   :  { %922 = vst [vmem:[#allocation11] sm:$0xf] %v921_v0  ;;  %963 = vmatmul.mubr.bf16.vlgmr.msra.gmra.mrb[20].mxu0 %v921_v0  ;;  %1004 = vmatmul.mubr.bf16.vlgmr.msra.gmra.mrb[20].mxu1 %v921_v0 }
 0x191   :  { %1051 = vmatpush1.bf16.msra.mxu0 %v4466_v36  ;;  %1092 = vmatpush1.bf16.msra.mxu1 %v4468_v37 }
 0x192   :  { %1052 = vmatprep.subr.bf16.mxu0 %v4472_v38  ;;  %1093 = vmatprep.subr.bf16.mxu1 %v4474_v39 }
 0x193   :  { %1082 = vmatprep.mubr.bf16.mxu0 %v5614_v11  ;;  %1123 = vmatprep.mubr.bf16.mxu1 %v5614_v11 }
 0x195   :  { %1053 = vmatpush1.bf16.msra.mxu0 %v4476_v40  ;;  %1094 = vmatpush1.bf16.msra.mxu1 %v4480_v41 }
 0x196   :  { %1054 = vmatprep.subr.bf16.mxu0 %v4484_v42  ;;  %1095 = vmatprep.subr.bf16.mxu1 %v4486_v43 }
 0x199   :  { %1055 = vmatpush1.bf16.msra.mxu0 %v4490_v45  ;;  %1096 = vmatpush1.bf16.msra.mxu1 %v4492_v46 }
 0x19a   :  { %1056 = vmatprep.subr.bf16.mxu0 %v4496_v47  ;;  %1097 = vmatprep.subr.bf16.mxu1 %v4500_v48 }
 0x19d   :  { %1057 = vmatpush1.bf16.msra.mxu0 %v4502_v49  ;;  %1098 = vmatpush1.bf16.msra.mxu1 %v4504_v50 }
 0x19e   :  { %1058 = vmatprep.subr.bf16.mxu0 %v4508_v51  ;;  %1099 = vmatprep.subr.bf16.mxu1 %v4512_v52 }
 0x1a1   :  { %1059 = vmatpush1.bf16.msra.mxu0 %v4516_v54  ;;  %1100 = vmatpush1.bf16.msra.mxu1 %v4518_v55 }
 0x1a2   :  { %1060 = vmatprep.subr.bf16.mxu0 %v4520_v56  ;;  %1101 = vmatprep.subr.bf16.mxu1 %v4522_v57 }
 0x1a5   :  { %1061 = vmatpush1.bf16.msra.mxu0 %v4528_v58  ;;  %1102 = vmatpush1.bf16.msra.mxu1 %v4530_v59 }
 0x1a6   :  { %1062 = vmatprep.subr.bf16.mxu0 %v4532_v60  ;;  %1103 = vmatprep.subr.bf16.mxu1 %v4534_v61 }
 0x1a9   :  { %1063 = vmatpush1.bf16.msra.mxu0 %v4542_v63  ;;  %1104 = vmatpush1.bf16.msra.mxu1 %v4544_v1 }
 0x1aa   :  { %1064 = vmatprep.subr.bf16.mxu0 %v4546_v2  ;;  %1105 = vmatprep.subr.bf16.mxu1 %v4548_v3 }
 0x1ad   :  { %1065 = vmatpush1.bf16.msra.mxu0 %v4554_v4  ;;  %1106 = vmatpush1.bf16.msra.mxu1 %v4556_v5 }
 0x1ae   :  { %1170 = vmatprep.subr.bf16.mxu0 %v4462_v33  ;;  %1211 = vmatprep.subr.bf16.mxu1 %v4464_v34 }
 0x263   :  { %v964_v25 = vpop.f32.mrb[20].mxu0  ;;  %v1005_v26 = vpop.f32.mrb[20].mxu1 }
 0x264   :  { %v1012_v22 = vadd.f32 %v964_v25, %v926_v15  ;;  %v1014_v8 = vadd.f32 %v1005_v26, %v928_v16  ;;  %v966_v31 = vpop.f32.mrb[21].mxu0  ;;  %v1007_v35 = vpop.f32.mrb[21].mxu1 }
 0x265   :  { %v1013_v9 = vadd.f32 %v966_v31, %v927_v27  ;;  %v1015_v7 = vadd.f32 %v1007_v35, %v929_v28  ;;  %v968_v13 = vpop.f32.mrb[22].mxu0  ;;  %v1009_v17 = vpop.f32.mrb[22].mxu1 }
 0x266   :  { %v3543_v14 = vmul.f32 -1.442695, %v1012_v22  ;;  %v969_v19 = vpop.f32.mrb[23].mxu0  ;;  %v1010_v23 = vpop.f32.mrb[23].mxu1  ;;  %v1048_v13 = vunpack.c.l.bf16 %v4654_v32 }
 0x267   :  { %v3544_v24 = vmul.f32 -1.442695, %v1013_v9  ;;  %v3545_v20 = vmul.f32 -1.442695, %v1015_v7  ;;  %v1047_v19 = vunpack.c.h.bf16 %v4651_v29  ;;  %v1049_v23 = vunpack.c.h.bf16 %v4654_v32 }
 0x268   :  { %3931 = vpow2.f32 %v3543_v14 }
 0x269   :  { %3933 = vpow2.f32 %v3544_v24 }
 0x26a   :  { %3935 = vpow2.f32 %v3545_v20 }
 0x26b   :  { %3937 = vtanh.f32 %v1014_v8 }
 0x272   :  { %v3932_v12 = vpop.eup %3931 }
 0x273   :  { %v3934_v0 = vpop.eup %3933  ;;  %v1022_v53 = vadd.f32 1.0, %v3932_v12 }
 0x274   :  { %v1023_v62 = vadd.f32 1.0, %v3934_v0  ;;  %v3936_v15 = vpop.eup %3935 }
 0x275   :  { %3939 = vrcp.f32 %v1022_v53  ;;  %v3938_v16 = vpop.eup %3937  ;;  %v1032_v28 = vadd.f32 1.0, %v3936_v15 }
 0x276   :  { %3941 = vrcp.f32 %v1023_v62 }
 0x277   :  { %3943 = vrcp.f32 %v1032_v28 }
 0x27f   :  { %v3940_v25 = vpop.eup %3939 }
 0x280   :  { %v3942_v26 = vpop.eup %3941  ;;  %v1036_v27 = vmul.f32 %v3940_v25, %v3938_v16 }
 0x281   :  { %v1035_v22 = vmul.f32 %v3942_v26, %v4697_v21  ;;  %v3944_v35 = vpop.eup %3943  ;;  %v1046_v21 = vunpack.c.l.bf16 %v4651_v29 }
 0x283   :  { %v4739_v31 = vadd.f32 %v1036_v27, %v1035_v22 }
 0x285   :  { %3945 = vtanh.f32 %v4739_v31 }
 0x28f   :  { %v3946_v9 = vpop.eup %3945 }
 0x290   :  { %v1039_v7 = vmul.f32 %v3946_v9, %v3944_v35 }
 0x292   :  { %v1040_v8 = vpack.c.bf16 %v1039_v7, %v1039_v7 }
 0x294   :  { %1042 = vst [vmem:[#allocation11 + $0x4] sm:$0xf] %v1040_v8  ;;  %1083 = vmatmul.mubr.bf16.vlgmr.msra.gmra.mrb[24].mxu0 %v1040_v8  ;;  %1124 = vmatmul.mubr.bf16.vlgmr.msra.gmra.mrb[24].mxu1 %v1040_v8 }
 0x295   :  { %1171 = vmatpush1.bf16.msra.mxu0 %v4466_v36  ;;  %1212 = vmatpush1.bf16.msra.mxu1 %v4468_v37 }
 0x296   :  { %1172 = vmatprep.subr.bf16.mxu0 %v4472_v38  ;;  %1213 = vmatprep.subr.bf16.mxu1 %v4474_v39 }
 0x297   :  { %1202 = vmatprep.mubr.bf16.mxu0 %v5614_v11  ;;  %1243 = vmatprep.mubr.bf16.mxu1 %v5614_v11 }
 0x299   :  { %1173 = vmatpush1.bf16.msra.mxu0 %v4476_v40  ;;  %1214 = vmatpush1.bf16.msra.mxu1 %v4480_v41 }
 0x29a   :  { %1174 = vmatprep.subr.bf16.mxu0 %v4484_v42  ;;  %1215 = vmatprep.subr.bf16.mxu1 %v4486_v43 }
 0x29d   :  { %1175 = vmatpush1.bf16.msra.mxu0 %v4490_v45  ;;  %1216 = vmatpush1.bf16.msra.mxu1 %v4492_v46 }
 0x29e   :  { %1176 = vmatprep.subr.bf16.mxu0 %v4496_v47  ;;  %1217 = vmatprep.subr.bf16.mxu1 %v4500_v48 }
 0x2a1   :  { %1177 = vmatpush1.bf16.msra.mxu0 %v4502_v49  ;;  %1218 = vmatpush1.bf16.msra.mxu1 %v4504_v50 }
 0x2a2   :  { %1178 = vmatprep.subr.bf16.mxu0 %v4508_v51  ;;  %1219 = vmatprep.subr.bf16.mxu1 %v4512_v52 }
 0x2a5   :  { %1179 = vmatpush1.bf16.msra.mxu0 %v4516_v54  ;;  %1220 = vmatpush1.bf16.msra.mxu1 %v4518_v55 }
 0x2a6   :  { %1180 = vmatprep.subr.bf16.mxu0 %v4520_v56  ;;  %1221 = vmatprep.subr.bf16.mxu1 %v4522_v57 }
 0x2a9   :  { %1181 = vmatpush1.bf16.msra.mxu0 %v4528_v58  ;;  %1222 = vmatpush1.bf16.msra.mxu1 %v4530_v59 }
 0x2aa   :  { %1182 = vmatprep.subr.bf16.mxu0 %v4532_v60  ;;  %1223 = vmatprep.subr.bf16.mxu1 %v4534_v61 }
 0x2ad   :  { %1183 = vmatpush1.bf16.msra.mxu0 %v4542_v63  ;;  %1224 = vmatpush1.bf16.msra.mxu1 %v4544_v1 }
 0x2ae   :  { %1184 = vmatprep.subr.bf16.mxu0 %v4546_v2  ;;  %1225 = vmatprep.subr.bf16.mxu1 %v4548_v3 }
 0x2b1   :  { %1185 = vmatpush1.bf16.msra.mxu0 %v4554_v4  ;;  %1226 = vmatpush1.bf16.msra.mxu1 %v4556_v5 }
 0x2b2   :  { %1290 = vmatprep.subr.bf16.mxu0 %v4462_v33  ;;  %1331 = vmatprep.subr.bf16.mxu1 %v4464_v34 }
 0x367   :  { %v1084_v17 = vpop.f32.mrb[24].mxu0  ;;  %v1125_v14 = vpop.f32.mrb[24].mxu1 }
 0x368   :  { %v1132_v24 = vadd.f32 %v1084_v17, %v1046_v21  ;;  %v1134_v20 = vadd.f32 %v1125_v14, %v1048_v13  ;;  %v1086_v12 = vpop.f32.mrb[25].mxu0  ;;  %v1127_v0 = vpop.f32.mrb[25].mxu1 }
 0x369   :  { %v1133_v53 = vadd.f32 %v1086_v12, %v1047_v19  ;;  %v1135_v62 = vadd.f32 %v1127_v0, %v1049_v23  ;;  %v1088_v15 = vpop.f32.mrb[26].mxu0  ;;  %v1129_v33 = vpop.f32.mrb[26].mxu1 }
 0x36a   :  { %v3546_v16 = vmul.f32 -1.442695, %v1132_v24  ;;  %v1089_v34 = vpop.f32.mrb[27].mxu0  ;;  %v1130_v25 = vpop.f32.mrb[27].mxu1 }
 0x36b   :  { %v3547_v26 = vmul.f32 -1.442695, %v1133_v53  ;;  %v3548_v27 = vmul.f32 -1.442695, %v1135_v62 }
 0x36c   :  { %3947 = vpow2.f32 %v3546_v16 }
 0x36d   :  { %3949 = vpow2.f32 %v3547_v26 }
 0x36e   :  { %3951 = vpow2.f32 %v3548_v27  ;;  %v4830_v27 = vld [vmem:[#allocation9] ss:$16 sps:$4 sm:$0xff]  }
 0x36f   :  { %3953 = vtanh.f32 %v1134_v20 }
 0x376   :  { %v3948_v28 = vpop.eup %3947 }
 0x377   :  { %v3950_v22 = vpop.eup %3949  ;;  %v1142_v29 = vadd.f32 1.0, %v3948_v28  ;;  %v4833_v28 = vld [vmem:[#allocation9 + $0x8] ss:$16 sps:$4 sm:$0xff]  }
 0x378   :  { %v1143_v32 = vadd.f32 1.0, %v3950_v22  ;;  %v3952_v35 = vpop.eup %3951  ;;  %v4836_v22 = vld [vmem:[#allocation9 + $0x24] ss:$16 sps:$4 sm:$0xff]  }
 0x379   :  { %3955 = vrcp.f32 %v1142_v29  ;;  %v3954_v9 = vpop.eup %3953  ;;  %v1152_v13 = vadd.f32 1.0, %v3952_v35  ;;  %v4839_v29 = vld [vmem:[#allocation9 + $0x2c] ss:$16 sps:$4 sm:$0xff]   ;;  %v4847_v35 = vld [vmem:[#allocation9 + $0x28] ss:$16 sps:$4 sm:$0xff]  }
 0x37a   :  { %3957 = vrcp.f32 %v1143_v32  ;;  %v4844_v32 = vld [vmem:[#allocation9 + $0x20] ss:$16 sps:$4 sm:$0xff]  }
 0x37b   :  { %3959 = vrcp.f32 %v1152_v13  ;;  %v4862_v13 = vld [vmem:[#allocation9 + $0x64] ss:$16 sps:$4 sm:$0xff]  }
 0x383   :  { %v3956_v7 = vpop.eup %3955 }
 0x384   :  { %v3958_v8 = vpop.eup %3957  ;;  %v1156_v21 = vmul.f32 %v3956_v7, %v3954_v9  ;;  %v4850_v9 = vld [vmem:[#allocation9 + $0x44] ss:$16 sps:$4 sm:$0xff]   ;;  %v4853_v7 = vld [vmem:[#allocation9 + $0x4c] ss:$16 sps:$4 sm:$0xff]  }
 0x385   :  { %v1155_v17 = vmul.f32 %v3958_v8, %v4739_v31  ;;  %v3960_v19 = vpop.eup %3959  ;;  %v4856_v8 = vld [vmem:[#allocation9 + $0x40] ss:$16 sps:$4 sm:$0xff]  }
 0x387   :  { %v4781_v14 = vadd.f32 %v1156_v21, %v1155_v17  ;;  %v4859_v21 = vld [vmem:[#allocation9 + $0x48] ss:$16 sps:$4 sm:$0xff]   ;;  %v4865_v17 = vld [vmem:[#allocation9 + $0x6c] ss:$16 sps:$4 sm:$0xff]  }
 0x389   :  { %3961 = vtanh.f32 %v4781_v14 }
 0x393   :  { %v3962_v23 = vpop.eup %3961 }
 0x394   :  { %v1159_v24 = vmul.f32 %v3962_v23, %v3960_v19  ;;  %v4871_v19 = vld [vmem:[#allocation9 + $0x68] ss:$16 sps:$4 sm:$0xff]   ;;  %v4874_v23 = vld [vmem:[#allocation9 + $0x84] ss:$16 sps:$4 sm:$0xff]  }
 0x396   :  { %v1160_v20 = vpack.c.bf16 %v1159_v24, %v1159_v24  ;;  %v4877_v24 = vld [vmem:[#allocation9 + $0x8c] ss:$16 sps:$4 sm:$0xff]  }
 0x398   :  { %1162 = vst [vmem:[#allocation11 + $0x8] sm:$0xf] %v1160_v20  ;;  %1203 = vmatmul.mubr.bf16.vlgmr.msra.gmra.mrb[28].mxu0 %v1160_v20  ;;  %1244 = vmatmul.mubr.bf16.vlgmr.msra.gmra.mrb[28].mxu1 %v1160_v20  ;;  %v4880_v20 = vld [vmem:[#allocation9 + $0x80] ss:$16 sps:$4 sm:$0xff]  }
 0x399   :  { %1291 = vmatpush1.bf16.msra.mxu0 %v4466_v36  ;;  %1332 = vmatpush1.bf16.msra.mxu1 %v4468_v37  ;;  %v4816_v36 = vld [vmem:[#allocation9 + $0x4] ss:$16 sps:$4 sm:$0xff]   ;;  %v4819_v37 = vld [vmem:[#allocation9 + $0xc] ss:$16 sps:$4 sm:$0xff]  }
 0x39a   :  { %1292 = vmatprep.subr.bf16.mxu0 %v4472_v38  ;;  %1333 = vmatprep.subr.bf16.mxu1 %v4474_v39  ;;  %v1166_v38 = vunpack.c.l.bf16 %v4657_v6  ;;  %v1168_v39 = vunpack.c.l.bf16 %v4659_v10 }
 0x39b   :  { %1322 = vmatprep.mubr.bf16.mxu0 %v5614_v11  ;;  %1363 = vmatprep.mubr.bf16.mxu1 %v5614_v11 }
 0x39d   :  { %1293 = vmatpush1.bf16.msra.mxu0 %v4476_v40  ;;  %1334 = vmatpush1.bf16.msra.mxu1 %v4480_v41 }
 0x39e   :  { %1294 = vmatprep.subr.bf16.mxu0 %v4484_v42  ;;  %1335 = vmatprep.subr.bf16.mxu1 %v4486_v43  ;;  %v1167_v42 = vunpack.c.h.bf16 %v4657_v6  ;;  %v1169_v43 = vunpack.c.h.bf16 %v4659_v10 }
 0x3a1   :  { %1295 = vmatpush1.bf16.msra.mxu0 %v4490_v45  ;;  %1336 = vmatpush1.bf16.msra.mxu1 %v4492_v46 }
 0x3a2   :  { %1296 = vmatprep.subr.bf16.mxu0 %v4496_v47  ;;  %1337 = vmatprep.subr.bf16.mxu1 %v4500_v48 }
 0x3a5   :  { %1297 = vmatpush1.bf16.msra.mxu0 %v4502_v49  ;;  %1338 = vmatpush1.bf16.msra.mxu1 %v4504_v50 }
 0x3a6   :  { %1298 = vmatprep.subr.bf16.mxu0 %v4508_v51  ;;  %1339 = vmatprep.subr.bf16.mxu1 %v4512_v52 }
 0x3a9   :  { %1299 = vmatpush1.bf16.msra.mxu0 %v4516_v54  ;;  %1340 = vmatpush1.bf16.msra.mxu1 %v4518_v55 }
 0x3aa   :  { %1300 = vmatprep.subr.bf16.mxu0 %v4520_v56  ;;  %1341 = vmatprep.subr.bf16.mxu1 %v4522_v57 }
 0x3ad   :  { %1301 = vmatpush1.bf16.msra.mxu0 %v4528_v58  ;;  %1342 = vmatpush1.bf16.msra.mxu1 %v4530_v59 }
 0x3ae   :  { %1302 = vmatprep.subr.bf16.mxu0 %v4532_v60  ;;  %1343 = vmatprep.subr.bf16.mxu1 %v4534_v61 }
 0x3b1   :  { %1303 = vmatpush1.bf16.msra.mxu0 %v4542_v63  ;;  %1344 = vmatpush1.bf16.msra.mxu1 %v4544_v1 }
 0x3b2   :  { %1304 = vmatprep.subr.bf16.mxu0 %v4546_v2  ;;  %1345 = vmatprep.subr.bf16.mxu1 %v4548_v3 }
 0x3b5   :  { %1305 = vmatpush1.bf16.msra.mxu0 %v4554_v4  ;;  %1346 = vmatpush1.bf16.msra.mxu1 %v4556_v5 }
 0x3b6   :  { %1410 = vmatprep.subr.bf16.mxu0 %v4816_v36  ;;  %1451 = vmatprep.subr.bf16.mxu1 %v4819_v37 }
 0x46b   :  { %v1204_v40 = vpop.f32.mrb[28].mxu0  ;;  %v1245_v41 = vpop.f32.mrb[28].mxu1 }
 0x46c   :  { %v1252_v45 = vadd.f32 %v1204_v40, %v1166_v38  ;;  %v1254_v46 = vadd.f32 %v1245_v41, %v1168_v39  ;;  %v1206_v47 = vpop.f32.mrb[29].mxu0  ;;  %v1247_v48 = vpop.f32.mrb[29].mxu1  ;;  %v4883_v38 = vld [vmem:[#allocation9 + $0x88] ss:$16 sps:$4 sm:$0xff]   ;;  %v4886_v39 = vld [vmem:[#allocation9 + $0xa4] ss:$16 sps:$4 sm:$0xff]  }
 0x46d   :  { %v1253_v49 = vadd.f32 %v1206_v47, %v1167_v42  ;;  %v1255_v50 = vadd.f32 %v1247_v48, %v1169_v43  ;;  %v1208_v51 = vpop.f32.mrb[30].mxu0  ;;  %v1249_v52 = vpop.f32.mrb[30].mxu1  ;;  %v4889_v40 = vld [vmem:[#allocation9 + $0xac] ss:$16 sps:$4 sm:$0xff]   ;;  %v4892_v41 = vld [vmem:[#allocation9 + $0xa0] ss:$16 sps:$4 sm:$0xff]   ;;  %v1288_v47 = vunpack.c.l.bf16 %v4670_v18 }
 0x46e   :  { %v3549_v54 = vmul.f32 -1.442695, %v1252_v45  ;;  %v1209_v55 = vpop.f32.mrb[31].mxu0  ;;  %v1250_v56 = vpop.f32.mrb[31].mxu1  ;;  %v4895_v42 = vld [vmem:[#allocation9 + $0xa8] ss:$16 sps:$4 sm:$0xff]  }
 0x46f   :  { %v3550_v57 = vmul.f32 -1.442695, %v1253_v49  ;;  %v3551_v58 = vmul.f32 -1.442695, %v1255_v50  ;;  %v4898_v43 = vld [vmem:[#allocation9 + $0xc4] ss:$16 sps:$4 sm:$0xff]  }
 0x470   :  { %3963 = vpow2.f32 %v3549_v54  ;;  %v4901_v45 = vld [vmem:[#allocation9 + $0xcc] ss:$16 sps:$4 sm:$0xff]  }
 0x471   :  { %3965 = vpow2.f32 %v3550_v57 }
 0x472   :  { %3967 = vpow2.f32 %v3551_v58 }
 0x473   :  { %3969 = vtanh.f32 %v1254_v46  ;;  %v1286_v46 = vunpack.c.l.bf16 %v4667_v30 }
 0x47a   :  { %v3964_v59 = vpop.eup %3963 }
 0x47b   :  { %v3966_v60 = vpop.eup %3965  ;;  %v1262_v61 = vadd.f32 1.0, %v3964_v59 }
 0x47c   :  { %v1263_v6 = vadd.f32 1.0, %v3966_v60  ;;  %v3968_v10 = vpop.eup %3967 }
 0x47d   :  { %3971 = vrcp.f32 %v1262_v61  ;;  %v3970_v31 = vpop.eup %3969  ;;  %v1272_v62 = vadd.f32 1.0, %v3968_v10 }
 0x47e   :  { %3973 = vrcp.f32 %v1263_v6 }
 0x47f   :  { %3975 = vrcp.f32 %v1272_v62 }
 0x487   :  { %v3972_v12 = vpop.eup %3971 }
 0x488   :  { %v3974_v0 = vpop.eup %3973  ;;  %v1276_v53 = vmul.f32 %v3972_v12, %v3970_v31 }
 0x489   :  { %v1275_v15 = vmul.f32 %v3974_v0, %v4781_v14  ;;  %v3976_v16 = vpop.eup %3975  ;;  %v4868_v14 = vld [vmem:[#allocation9 + $0x60] ss:$16 sps:$4 sm:$0xff]  }
 0x48b   :  { %v4827_v33 = vadd.f32 %v1276_v53, %v1275_v15 }
 0x48d   :  { %3977 = vtanh.f32 %v4827_v33 }
 0x497   :  { %v3978_v34 = vpop.eup %3977 }
 0x498   :  { %v1279_v25 = vmul.f32 %v3978_v34, %v3976_v16 }
 0x49a   :  { %v1280_v26 = vpack.c.bf16 %v1279_v25, %v1279_v25 }
 0x49c   :  { %1282 = vst [vmem:[#allocation11 + $0xc] sm:$0xf] %v1280_v26  ;;  %1323 = vmatmul.mubr.bf16.vlgmr.msra.gmra.mrb[32].mxu0 %v1280_v26  ;;  %1364 = vmatmul.mubr.bf16.vlgmr.msra.gmra.mrb[32].mxu1 %v1280_v26 }
 0x49d   :  { %1411 = vmatpush1.bf16.msra.mxu0 %v4830_v27  ;;  %1452 = vmatpush1.bf16.msra.mxu1 %v4833_v28 }
 0x49e   :  { %1412 = vmatprep.subr.bf16.mxu0 %v4836_v22  ;;  %1453 = vmatprep.subr.bf16.mxu1 %v4839_v29 }
 0x49f   :  { %1442 = vmatprep.mubr.bf16.mxu0 %v5614_v11  ;;  %1483 = vmatprep.mubr.bf16.mxu1 %v5614_v11 }
 0x4a1   :  { %1413 = vmatpush1.bf16.msra.mxu0 %v4844_v32  ;;  %1454 = vmatpush1.bf16.msra.mxu1 %v4847_v35 }
 0x4a2   :  { %1414 = vmatprep.subr.bf16.mxu0 %v4850_v9  ;;  %1455 = vmatprep.subr.bf16.mxu1 %v4853_v7 }
 0x4a5   :  { %1415 = vmatpush1.bf16.msra.mxu0 %v4856_v8  ;;  %1456 = vmatpush1.bf16.msra.mxu1 %v4859_v21 }
 0x4a6   :  { %1416 = vmatprep.subr.bf16.mxu0 %v4862_v13  ;;  %1457 = vmatprep.subr.bf16.mxu1 %v4865_v17 }
 0x4a9   :  { %1417 = vmatpush1.bf16.msra.mxu0 %v4868_v14  ;;  %1458 = vmatpush1.bf16.msra.mxu1 %v4871_v19 }
 0x4aa   :  { %1418 = vmatprep.subr.bf16.mxu0 %v4874_v23  ;;  %1459 = vmatprep.subr.bf16.mxu1 %v4877_v24 }
 0x4ad   :  { %1419 = vmatpush1.bf16.msra.mxu0 %v4880_v20  ;;  %1460 = vmatpush1.bf16.msra.mxu1 %v4883_v38 }
 0x4ae   :  { %1420 = vmatprep.subr.bf16.mxu0 %v4886_v39  ;;  %1461 = vmatprep.subr.bf16.mxu1 %v4889_v40 }
 0x4b1   :  { %1421 = vmatpush1.bf16.msra.mxu0 %v4892_v41  ;;  %1462 = vmatpush1.bf16.msra.mxu1 %v4895_v42 }
 0x4b2   :  { %1422 = vmatprep.subr.bf16.mxu0 %v4898_v43  ;;  %1463 = vmatprep.subr.bf16.mxu1 %v4901_v45 }
 0x4b5   :  { %1423 = vmatpush1.bf16.msra.mxu0 %v4542_v63  ;;  %1464 = vmatpush1.bf16.msra.mxu1 %v4544_v1  ;;  %v1287_v1 = vunpack.c.h.bf16 %v4667_v30 }
 0x4b6   :  { %1424 = vmatprep.subr.bf16.mxu0 %v4546_v2  ;;  %1465 = vmatprep.subr.bf16.mxu1 %v4548_v3  ;;  %v1289_v2 = vunpack.c.h.bf16 %v4670_v18 }
 0x4b9   :  { %1425 = vmatpush1.bf16.msra.mxu0 %v4554_v4  ;;  %1466 = vmatpush1.bf16.msra.mxu1 %v4556_v5 }
 0x4ba   :  { %1530 = vmatprep.subr.bf16.mxu0 %v4816_v36  ;;  %1571 = vmatprep.subr.bf16.mxu1 %v4819_v37 }
 0x56f   :  { %v1324_v48 = vpop.f32.mrb[32].mxu0  ;;  %v1365_v63 = vpop.f32.mrb[32].mxu1 }
 0x570   :  { %v1372_v49 = vadd.f32 %v1324_v48, %v1286_v46  ;;  %v1374_v3 = vadd.f32 %v1365_v63, %v1288_v47  ;;  %v1326_v50 = vpop.f32.mrb[33].mxu0  ;;  %v1367_v4 = vpop.f32.mrb[33].mxu1  ;;  %v4949_v46 = vld [vmem:[#allocation9 + $0xc8] ss:$16 sps:$4 sm:$0xff]   ;;  %v4952_v47 = vld [vmem:[#allocation9 + $0xe4] ss:$16 sps:$4 sm:$0xff]  }
 0x571   :  { %v1373_v51 = vadd.f32 %v1326_v50, %v1287_v1  ;;  %v1375_v5 = vadd.f32 %v1367_v4, %v1289_v2  ;;  %v1328_v52 = vpop.f32.mrb[34].mxu0  ;;  %v1369_v54 = vpop.f32.mrb[34].mxu1  ;;  %v4955_v48 = vld [vmem:[#allocation9 + $0xec] ss:$16 sps:$4 sm:$0xff]   ;;  %v4958_v63 = vld [vmem:[#allocation9 + $0xe0] ss:$16 sps:$4 sm:$0xff]  }
 0x572   :  { %v3552_v55 = vmul.f32 -1.442695, %v1372_v49  ;;  %v1329_v56 = vpop.f32.mrb[35].mxu0  ;;  %v1370_v57 = vpop.f32.mrb[35].mxu1  ;;  %v4961_v1 = vld [vmem:[#allocation9 + $0xe8] ss:$16 sps:$4 sm:$0xff]  }
 0x573   :  { %v3553_v58 = vmul.f32 -1.442695, %v1373_v51  ;;  %v3554_v59 = vmul.f32 -1.442695, %v1375_v5  ;;  %v5615_v2 = vld [vmem:[#allocation17_spill] sm:$0xff] }
 0x574   :  { %3979 = vpow2.f32 %v3552_v55  ;;  %v1406_v49 = vunpack.c.l.bf16 %v5615_v2  ;;  %v1407_v5 = vunpack.c.h.bf16 %v5615_v2 }
 0x575   :  { %3981 = vpow2.f32 %v3553_v58 }
 0x576   :  { %3983 = vpow2.f32 %v3554_v59 }
 0x577   :  { %3985 = vtanh.f32 %v1374_v3  ;;  %v5616_v3 = vld [vmem:[#allocation18_spill] sm:$0xff] }
 0x578   :  { %v1408_v50 = vunpack.c.l.bf16 %v5616_v3  ;;  %v1409_v52 = vunpack.c.h.bf16 %v5616_v3 }
 0x57e   :  { %v3980_v60 = vpop.eup %3979 }
 0x57f   :  { %v3982_v61 = vpop.eup %3981  ;;  %v1382_v30 = vadd.f32 1.0, %v3980_v60 }
 0x580   :  { %v1383_v18 = vadd.f32 1.0, %v3982_v61  ;;  %v3984_v6 = vpop.eup %3983 }
 0x581   :  { %3987 = vrcp.f32 %v1382_v30  ;;  %v3986_v10 = vpop.eup %3985  ;;  %v1392_v53 = vadd.f32 1.0, %v3984_v6 }
 0x582   :  { %3989 = vrcp.f32 %v1383_v18 }
 0x583   :  { %3991 = vrcp.f32 %v1392_v53 }
 0x58b   :  { %v3988_v31 = vpop.eup %3987 }
 0x58c   :  { %v3990_v12 = vpop.eup %3989  ;;  %v1396_v0 = vmul.f32 %v3988_v31, %v3986_v10 }
 0x58d   :  { %v1395_v62 = vmul.f32 %v3990_v12, %v4827_v33  ;;  %v3992_v16 = vpop.eup %3991  ;;  %v4946_v33 = vld [vmem:[#allocation9 + $0xc0] ss:$16 sps:$4 sm:$0xff]  }
 0x58f   :  { %v4917_v15 = vadd.f32 %v1396_v0, %v1395_v62 }
 0x591   :  { %3993 = vtanh.f32 %v4917_v15 }
 0x59b   :  { %v3994_v34 = vpop.eup %3993 }
 0x59c   :  { %v1399_v25 = vmul.f32 %v3994_v34, %v3992_v16 }
 0x59e   :  { %v1400_v26 = vpack.c.bf16 %v1399_v25, %v1399_v25 }
 0x5a0   :  { %1402 = vst [vmem:[#allocation11 + $0x10] sm:$0xf] %v1400_v26  ;;  %1443 = vmatmul.mubr.bf16.vlgmr.msra.gmra.mrb[36].mxu0 %v1400_v26  ;;  %1484 = vmatmul.mubr.bf16.vlgmr.msra.gmra.mrb[36].mxu1 %v1400_v26 }
 0x5a1   :  { %1531 = vmatpush1.bf16.msra.mxu0 %v4830_v27  ;;  %1572 = vmatpush1.bf16.msra.mxu1 %v4833_v28 }
 0x5a2   :  { %1532 = vmatprep.subr.bf16.mxu0 %v4836_v22  ;;  %1573 = vmatprep.subr.bf16.mxu1 %v4839_v29 }
 0x5a3   :  { %1562 = vmatprep.mubr.bf16.mxu0 %v5614_v11  ;;  %1603 = vmatprep.mubr.bf16.mxu1 %v5614_v11 }
 0x5a5   :  { %1533 = vmatpush1.bf16.msra.mxu0 %v4844_v32  ;;  %1574 = vmatpush1.bf16.msra.mxu1 %v4847_v35 }
 0x5a6   :  { %1534 = vmatprep.subr.bf16.mxu0 %v4850_v9  ;;  %1575 = vmatprep.subr.bf16.mxu1 %v4853_v7 }
 0x5a9   :  { %1535 = vmatpush1.bf16.msra.mxu0 %v4856_v8  ;;  %1576 = vmatpush1.bf16.msra.mxu1 %v4859_v21 }
 0x5aa   :  { %1536 = vmatprep.subr.bf16.mxu0 %v4862_v13  ;;  %1577 = vmatprep.subr.bf16.mxu1 %v4865_v17 }
 0x5ad   :  { %1537 = vmatpush1.bf16.msra.mxu0 %v4868_v14  ;;  %1578 = vmatpush1.bf16.msra.mxu1 %v4871_v19 }
 0x5ae   :  { %1538 = vmatprep.subr.bf16.mxu0 %v4874_v23  ;;  %1579 = vmatprep.subr.bf16.mxu1 %v4877_v24 }
 0x5b1   :  { %1539 = vmatpush1.bf16.msra.mxu0 %v4880_v20  ;;  %1580 = vmatpush1.bf16.msra.mxu1 %v4883_v38 }
 0x5b2   :  { %1540 = vmatprep.subr.bf16.mxu0 %v4886_v39  ;;  %1581 = vmatprep.subr.bf16.mxu1 %v4889_v40 }
 0x5b5   :  { %1541 = vmatpush1.bf16.msra.mxu0 %v4892_v41  ;;  %1582 = vmatpush1.bf16.msra.mxu1 %v4895_v42 }
 0x5b6   :  { %1542 = vmatprep.subr.bf16.mxu0 %v4898_v43  ;;  %1583 = vmatprep.subr.bf16.mxu1 %v4901_v45 }
 0x5b9   :  { %1543 = vmatpush1.bf16.msra.mxu0 %v4946_v33  ;;  %1584 = vmatpush1.bf16.msra.mxu1 %v4949_v46 }
 0x5ba   :  { %1544 = vmatprep.subr.bf16.mxu0 %v4952_v47  ;;  %1585 = vmatprep.subr.bf16.mxu1 %v4955_v48 }
 0x5bd   :  { %1545 = vmatpush1.bf16.msra.mxu0 %v4958_v63  ;;  %1586 = vmatpush1.bf16.msra.mxu1 %v4961_v1 }
 0x5be   :  { %1650 = vmatprep.subr.bf16.mxu0 %v4816_v36  ;;  %1691 = vmatprep.subr.bf16.mxu1 %v4819_v37 }
 0x673   :  { %v1444_v4 = vpop.f32.mrb[36].mxu0  ;;  %v1485_v51 = vpop.f32.mrb[36].mxu1 }
 0x674   :  { %v1492_v54 = vadd.f32 %v1444_v4, %v1406_v49  ;;  %v1494_v55 = vadd.f32 %v1485_v51, %v1408_v50  ;;  %v1446_v56 = vpop.f32.mrb[37].mxu0  ;;  %v1487_v57 = vpop.f32.mrb[37].mxu1 }
 0x675   :  { %v1493_v58 = vadd.f32 %v1446_v56, %v1407_v5  ;;  %v1495_v59 = vadd.f32 %v1487_v57, %v1409_v52  ;;  %v1448_v60 = vpop.f32.mrb[38].mxu0  ;;  %v1489_v36 = vpop.f32.mrb[38].mxu1  ;;  %v3815_v57 = vld [vmem:[#allocation8] ss:$16 sps:$4 sm:$0xff]  }
 0x676   :  { %v3555_v61 = vmul.f32 -1.442695, %v1492_v54  ;;  %v1449_v37 = vpop.f32.mrb[39].mxu0  ;;  %v1490_v30 = vpop.f32.mrb[39].mxu1  ;;  %v3823_v60 = vld [vmem:[#allocation8 + $0x24] ss:$16 sps:$4 sm:$0xff]  }
 0x677   :  { %v3556_v18 = vmul.f32 -1.442695, %v1493_v58  ;;  %v3557_v6 = vmul.f32 -1.442695, %v1495_v59  ;;  %v3818_v58 = vld [vmem:[#allocation8 + $0x8] ss:$16 sps:$4 sm:$0xff]  }
 0x678   :  { %3995 = vpow2.f32 %v3555_v61  ;;  %v3826_v36 = vld [vmem:[#allocation8 + $0x2c] ss:$16 sps:$4 sm:$0xff]   ;;  %v3821_v61 = vld [vmem:[#allocation8 + $0x20] ss:$16 sps:$4 sm:$0xff]   ;;  %v3824_v37 = vld [vmem:[#allocation8 + $0x28] ss:$16 sps:$4 sm:$0xff]  }
 0x679   :  { %3997 = vpow2.f32 %v3556_v18  ;;  %v3829_v30 = vld [vmem:[#allocation8 + $0x44] ss:$16 sps:$4 sm:$0xff]   ;;  %v3832_v18 = vld [vmem:[#allocation8 + $0x4c] ss:$16 sps:$4 sm:$0xff]  }
 0x67a   :  { %3999 = vpow2.f32 %v3557_v6  ;;  %v3827_v6 = vld [vmem:[#allocation8 + $0x40] ss:$16 sps:$4 sm:$0xff]  }
 0x67b   :  { %4001 = vtanh.f32 %v1494_v55 }
 0x682   :  { %v3996_v10 = vpop.eup %3995 }
 0x683   :  { %v3998_v31 = vpop.eup %3997  ;;  %v1502_v12 = vadd.f32 1.0, %v3996_v10  ;;  %v3830_v10 = vld [vmem:[#allocation8 + $0x48] ss:$16 sps:$4 sm:$0xff]  }
 0x684   :  { %v1503_v0 = vadd.f32 1.0, %v3998_v31  ;;  %v4000_v53 = vpop.eup %3999  ;;  %v3835_v31 = vld [vmem:[#allocation8 + $0x64] ss:$16 sps:$4 sm:$0xff]  }
 0x685   :  { %4003 = vrcp.f32 %v1502_v12  ;;  %v4002_v62 = vpop.eup %4001  ;;  %v1512_v26 = vadd.f32 1.0, %v4000_v53  ;;  %v3838_v12 = vld [vmem:[#allocation8 + $0x6c] ss:$16 sps:$4 sm:$0xff]   ;;  %v3836_v53 = vld [vmem:[#allocation8 + $0x68] ss:$16 sps:$4 sm:$0xff]  }
 0x686   :  { %4005 = vrcp.f32 %v1503_v0  ;;  %v3833_v0 = vld [vmem:[#allocation8 + $0x60] ss:$16 sps:$4 sm:$0xff]  }
 0x687   :  { %4007 = vrcp.f32 %v1512_v26  ;;  %v3847_v26 = vld [vmem:[#allocation8 + $0xa4] ss:$16 sps:$4 sm:$0xff]  }
 0x68f   :  { %v4004_v16 = vpop.eup %4003 }
 0x690   :  { %v4006_v34 = vpop.eup %4005  ;;  %v1516_v25 = vmul.f32 %v4004_v16, %v4002_v62  ;;  %v3841_v62 = vld [vmem:[#allocation8 + $0x84] ss:$16 sps:$4 sm:$0xff]   ;;  %v3844_v16 = vld [vmem:[#allocation8 + $0x8c] ss:$16 sps:$4 sm:$0xff]  }
 0x691   :  { %v1515_v2 = vmul.f32 %v4006_v34, %v4917_v15  ;;  %v4008_v3 = vpop.eup %4007  ;;  %v3839_v34 = vld [vmem:[#allocation8 + $0x80] ss:$16 sps:$4 sm:$0xff]  }
 0x693   :  { %v4971_v49 = vadd.f32 %v1516_v25, %v1515_v2  ;;  %v3842_v25 = vld [vmem:[#allocation8 + $0x88] ss:$16 sps:$4 sm:$0xff]   ;;  %v3850_v2 = vld [vmem:[#allocation8 + $0xac] ss:$16 sps:$4 sm:$0xff]  }
 0x695   :  { %4009 = vtanh.f32 %v4971_v49 }
 0x69f   :  { %v4010_v50 = vpop.eup %4009 }
 0x6a0   :  { %v1519_v4 = vmul.f32 %v4010_v50, %v4008_v3  ;;  %v3848_v3 = vld [vmem:[#allocation8 + $0xa8] ss:$16 sps:$4 sm:$0xff]   ;;  %v3853_v50 = vld [vmem:[#allocation8 + $0xc4] ss:$16 sps:$4 sm:$0xff]  }
 0x6a2   :  { %v1520_v51 = vpack.c.bf16 %v1519_v4, %v1519_v4  ;;  %v3856_v4 = vld [vmem:[#allocation8 + $0xcc] ss:$16 sps:$4 sm:$0xff]  }
 0x6a4   :  { %1522 = vst [vmem:[#allocation11 + $0x14] sm:$0xf] %v1520_v51  ;;  %1563 = vmatmul.mubr.bf16.vlgmr.msra.gmra.mrb[40].mxu0 %v1520_v51  ;;  %1604 = vmatmul.mubr.bf16.vlgmr.msra.gmra.mrb[40].mxu1 %v1520_v51  ;;  %v3851_v51 = vld [vmem:[#allocation8 + $0xc0] ss:$16 sps:$4 sm:$0xff]  }
 0x6a5   :  { %1651 = vmatpush1.bf16.msra.mxu0 %v4830_v27  ;;  %1692 = vmatpush1.bf16.msra.mxu1 %v4833_v28  ;;  %v3817_v27 = vld [vmem:[#allocation8 + $0x4] ss:$16 sps:$4 sm:$0xff]   ;;  %v3820_v28 = vld [vmem:[#allocation8 + $0xc] ss:$16 sps:$4 sm:$0xff]  }
 0x6a6   :  { %1652 = vmatprep.subr.bf16.mxu0 %v4836_v22  ;;  %1693 = vmatprep.subr.bf16.mxu1 %v4839_v29  ;;  %v1526_v22 = vunpack.c.l.bf16 %v4683_v44  ;;  %v5617_v29 = vld [vmem:[#allocation19_spill] sm:$0xff] }
 0x6a7   :  { %1682 = vmatprep.mubr.bf16.mxu0 %v5614_v11  ;;  %1723 = vmatprep.mubr.bf16.mxu1 %v5614_v11 }
 0x6a9   :  { %1653 = vmatpush1.bf16.msra.mxu0 %v4844_v32  ;;  %1694 = vmatpush1.bf16.msra.mxu1 %v4847_v35  ;;  %v1528_v32 = vunpack.c.l.bf16 %v5617_v29 }
 0x6aa   :  { %1654 = vmatprep.subr.bf16.mxu0 %v4850_v9  ;;  %1695 = vmatprep.subr.bf16.mxu1 %v4853_v7  ;;  %v1527_v7 = vunpack.c.h.bf16 %v4683_v44 }
 0x6ad   :  { %1655 = vmatpush1.bf16.msra.mxu0 %v4856_v8  ;;  %1696 = vmatpush1.bf16.msra.mxu1 %v4859_v21  ;;  %v1529_v8 = vunpack.c.h.bf16 %v5617_v29  ;;  %v3857_v29 = vld [vmem:[#allocation8 + $0xe0] ss:$16 sps:$4 sm:$0xff]  }
 0x6ae   :  { %1656 = vmatprep.subr.bf16.mxu0 %v4862_v13  ;;  %1697 = vmatprep.subr.bf16.mxu1 %v4865_v17 }
 0x6b1   :  { %1657 = vmatpush1.bf16.msra.mxu0 %v4868_v14  ;;  %1698 = vmatpush1.bf16.msra.mxu1 %v4871_v19 }
 0x6b2   :  { %1658 = vmatprep.subr.bf16.mxu0 %v4874_v23  ;;  %1699 = vmatprep.subr.bf16.mxu1 %v4877_v24 }
 0x6b5   :  { %1659 = vmatpush1.bf16.msra.mxu0 %v4880_v20  ;;  %1700 = vmatpush1.bf16.msra.mxu1 %v4883_v38 }
 0x6b6   :  { %1660 = vmatprep.subr.bf16.mxu0 %v4886_v39  ;;  %1701 = vmatprep.subr.bf16.mxu1 %v4889_v40 }
 0x6b9   :  { %1661 = vmatpush1.bf16.msra.mxu0 %v4892_v41  ;;  %1702 = vmatpush1.bf16.msra.mxu1 %v4895_v42 }
 0x6ba   :  { %1662 = vmatprep.subr.bf16.mxu0 %v4898_v43  ;;  %1703 = vmatprep.subr.bf16.mxu1 %v4901_v45 }
 0x6bd   :  { %1663 = vmatpush1.bf16.msra.mxu0 %v4946_v33  ;;  %1704 = vmatpush1.bf16.msra.mxu1 %v4949_v46 }
 0x6be   :  { %1664 = vmatprep.subr.bf16.mxu0 %v4952_v47  ;;  %1705 = vmatprep.subr.bf16.mxu1 %v4955_v48 }
 0x6c1   :  { %1665 = vmatpush1.bf16.msra.mxu0 %v4958_v63  ;;  %1706 = vmatpush1.bf16.msra.mxu1 %v4961_v1 }
 0x6c2   :  { %2010 = vmatprep.subr.bf16.mxu0 %v3817_v27  ;;  %2083 = vmatprep.subr.bf16.mxu1 %v3820_v28  ;;  %v3854_v27 = vld [vmem:[#allocation8 + $0xc8] ss:$16 sps:$4 sm:$0xff]   ;;  %v3859_v28 = vld [vmem:[#allocation8 + $0xe4] ss:$16 sps:$4 sm:$0xff]  }
 0x777   :  { %v1564_v35 = vpop.f32.mrb[40].mxu0  ;;  %v1605_v9 = vpop.f32.mrb[40].mxu1 }
 0x778   :  { %v1612_v21 = vadd.f32 %v1564_v35, %v1526_v22  ;;  %v1614_v13 = vadd.f32 %v1605_v9, %v1528_v32  ;;  %v1566_v17 = vpop.f32.mrb[41].mxu0  ;;  %v1607_v14 = vpop.f32.mrb[41].mxu1  ;;  %v3862_v22 = vld [vmem:[#allocation8 + $0xec] ss:$16 sps:$4 sm:$0xff]   ;;  %v3860_v32 = vld [vmem:[#allocation8 + $0xe8] ss:$16 sps:$4 sm:$0xff]  }
 0x779   :  { %v1613_v19 = vadd.f32 %v1566_v17, %v1527_v7  ;;  %v1615_v23 = vadd.f32 %v1607_v14, %v1529_v8  ;;  %v1568_v24 = vpop.f32.mrb[42].mxu0  ;;  %v1609_v20 = vpop.f32.mrb[42].mxu1  ;;  %v3863_v35 = vld [vmem:[#allocation11] sm:$0xff]   ;;  %v3864_v9 = vld [vmem:[#allocation11 + $0x8] sm:$0xff]   ;;  %v3865_v7 = vld [vmem:[#allocation11 + $0x10] sm:$0xff]  }
 0x77a   :  { %v3558_v38 = vmul.f32 -1.442695, %v1612_v21  ;;  %v1569_v39 = vpop.f32.mrb[43].mxu0  ;;  %v1610_v40 = vpop.f32.mrb[43].mxu1  ;;  %v5022_v8 = vld [vmem:[#allocation9 + $0x104] ss:$16 sps:$4 sm:$0xff]  }
 0x77b   :  { %v3559_v41 = vmul.f32 -1.442695, %v1613_v19  ;;  %v3560_v42 = vmul.f32 -1.442695, %v1615_v23  ;;  %v5024_v21 = vld [vmem:[#allocation9 + $0x10c] ss:$16 sps:$4 sm:$0xff]  }
 0x77c   :  { %4011 = vpow2.f32 %v3558_v38  ;;  %v5028_v17 = vld [vmem:[#allocation9 + $0x108] ss:$16 sps:$4 sm:$0xff]   ;;  %v5034_v14 = vld [vmem:[#allocation9 + $0x124] ss:$16 sps:$4 sm:$0xff]   ;;  %v5036_v19 = vld [vmem:[#allocation9 + $0x12c] ss:$16 sps:$4 sm:$0xff]  }
 0x77d   :  { %4013 = vpow2.f32 %v3559_v41  ;;  %v5038_v23 = vld [vmem:[#allocation9 + $0x120] ss:$16 sps:$4 sm:$0xff]   ;;  %v5040_v24 = vld [vmem:[#allocation9 + $0x128] ss:$16 sps:$4 sm:$0xff]   ;;  %v5046_v20 = vld [vmem:[#allocation9 + $0x144] ss:$16 sps:$4 sm:$0xff]  }
 0x77e   :  { %4015 = vpow2.f32 %v3560_v42  ;;  %v5048_v38 = vld [vmem:[#allocation9 + $0x14c] ss:$16 sps:$4 sm:$0xff]   ;;  %v5050_v39 = vld [vmem:[#allocation9 + $0x140] ss:$16 sps:$4 sm:$0xff]   ;;  %v5052_v40 = vld [vmem:[#allocation9 + $0x148] ss:$16 sps:$4 sm:$0xff]  }
 0x77f   :  { %4017 = vtanh.f32 %v1614_v13  ;;  %v5026_v13 = vld [vmem:[#allocation9 + $0x100] ss:$16 sps:$4 sm:$0xff]   ;;  %v5058_v41 = vld [vmem:[#allocation9 + $0x164] ss:$16 sps:$4 sm:$0xff]   ;;  %v5060_v42 = vld [vmem:[#allocation9 + $0x16c] ss:$16 sps:$4 sm:$0xff]  }
 0x786   :  { %v4012_v43 = vpop.eup %4011 }
 0x787   :  { %v4014_v45 = vpop.eup %4013  ;;  %v1622_v44 = vadd.f32 1.0, %v4012_v43  ;;  %v5062_v43 = vld [vmem:[#allocation9 + $0x160] ss:$16 sps:$4 sm:$0xff]  }
 0x788   :  { %v1623_v15 = vadd.f32 1.0, %v4014_v45  ;;  %v4016_v33 = vpop.eup %4015  ;;  %v5064_v45 = vld [vmem:[#allocation9 + $0x168] ss:$16 sps:$4 sm:$0xff]  }
 0x789   :  { %4019 = vrcp.f32 %v1622_v44  ;;  %v4018_v46 = vpop.eup %4017  ;;  %v1632_v1 = vadd.f32 1.0, %v4016_v33  ;;  %v5070_v44 = vld [vmem:[#allocation9 + $0x184] ss:$16 sps:$4 sm:$0xff]   ;;  %v5074_v33 = vld [vmem:[#allocation9 + $0x180] ss:$16 sps:$4 sm:$0xff]  }
 0x78a   :  { %4021 = vrcp.f32 %v1623_v15  ;;  %v5072_v15 = vld [vmem:[#allocation9 + $0x18c] ss:$16 sps:$4 sm:$0xff]  }
 0x78b   :  { %4023 = vrcp.f32 %v1632_v1  ;;  %v5088_v1 = vld [vmem:[#allocation9 + $0x1a8] ss:$16 sps:$4 sm:$0xff]  }
 0x793   :  { %v4020_v47 = vpop.eup %4019 }
 0x794   :  { %v4022_v48 = vpop.eup %4021  ;;  %v1636_v63 = vmul.f32 %v4020_v47, %v4018_v46  ;;  %v5076_v46 = vld [vmem:[#allocation9 + $0x188] ss:$16 sps:$4 sm:$0xff]   ;;  %v5082_v47 = vld [vmem:[#allocation9 + $0x1a4] ss:$16 sps:$4 sm:$0xff]  }
 0x795   :  { %v1635_v5 = vmul.f32 %v4022_v48, %v4971_v49  ;;  %v4024_v54 = vpop.eup %4023  ;;  %v3845_v49 = vld [vmem:[#allocation8 + $0xa0] ss:$16 sps:$4 sm:$0xff]   ;;  %v5084_v48 = vld [vmem:[#allocation9 + $0x1ac] ss:$16 sps:$4 sm:$0xff]  }
 0x797   :  { %v5011_v52 = vadd.f32 %v1636_v63, %v1635_v5  ;;  %v5086_v63 = vld [vmem:[#allocation9 + $0x1a0] ss:$16 sps:$4 sm:$0xff]   ;;  %v5094_v5 = vld [vmem:[#allocation9 + $0x1c4] ss:$16 sps:$4 sm:$0xff]  }
 0x799   :  { %4025 = vtanh.f32 %v5011_v52 }
 0x7a3   :  { %v4026_v55 = vpop.eup %4025 }
 0x7a4   :  { %v1639_v56 = vmul.f32 %v4026_v55, %v4024_v54  ;;  %v5096_v54 = vld [vmem:[#allocation9 + $0x1cc] ss:$16 sps:$4 sm:$0xff]   ;;  %v5098_v55 = vld [vmem:[#allocation9 + $0x1c0] ss:$16 sps:$4 sm:$0xff]  }
 0x7a6   :  { %v1640_v59 = vpack.c.bf16 %v1639_v56, %v1639_v56  ;;  %v5100_v56 = vld [vmem:[#allocation9 + $0x1c8] ss:$16 sps:$4 sm:$0xff]  }
 0x7a8   :  { %1642 = vst [vmem:[#allocation11 + $0x18] sm:$0xf] %v1640_v59  ;;  %1683 = vmatmul.mubr.bf16.vlgmr.msra.gmra.mrb[44].mxu0 %v1640_v59  ;;  %1724 = vmatmul.mubr.bf16.vlgmr.msra.gmra.mrb[44].mxu1 %v1640_v59  ;;  %v5110_v59 = vld [vmem:[#allocation9 + $0x1e0] ss:$16 sps:$4 sm:$0xff]  }
 0x7a9   :  { %2011 = vmatpush1.bf16.msra.mxu0 %v3815_v57  ;;  %2084 = vmatpush1.bf16.msra.mxu1 %v3818_v58  ;;  %v5102_v57 = vld [vmem:[#allocation9 + $0x1e4] ss:$16 sps:$4 sm:$0xff]   ;;  %v5106_v58 = vld [vmem:[#allocation9 + $0x1ec] ss:$16 sps:$4 sm:$0xff]  }
 0x7aa   :  { %2012 = vmatprep.subr.bf16.mxu0 %v3823_v60  ;;  %2085 = vmatprep.subr.bf16.mxu1 %v3826_v36  ;;  %v5112_v60 = vld [vmem:[#allocation9 + $0x1e8] ss:$16 sps:$4 sm:$0xff]   ;;  %v5618_v36 = vld [vmem:[#allocation20_spill] sm:$0xff] }
 0x7ab   :  { %2042 = vmatprep.mubr.bf16.mxu0 %v5614_v11  ;;  %2115 = vmatprep.mubr.bf16.mxu1 %v5614_v11 }
 0x7ad   :  { %2013 = vmatpush1.bf16.msra.mxu0 %v3821_v61  ;;  %2086 = vmatpush1.bf16.msra.mxu1 %v3824_v37  ;;  %v1646_v61 = vunpack.c.l.bf16 %v5618_v36  ;;  %v5619_v37 = vld [vmem:[#allocation21_spill] sm:$0xff] }
 0x7ae   :  { %2014 = vmatprep.subr.bf16.mxu0 %v3829_v30  ;;  %2087 = vmatprep.subr.bf16.mxu1 %v3832_v18  ;;  %v1648_v30 = vunpack.c.l.bf16 %v5619_v37 }
 0x7b1   :  { %2015 = vmatpush1.bf16.msra.mxu0 %v3827_v6  ;;  %2088 = vmatpush1.bf16.msra.mxu1 %v3830_v10  ;;  %v1647_v10 = vunpack.c.h.bf16 %v5618_v36 }
 0x7b2   :  { %2016 = vmatprep.subr.bf16.mxu0 %v3835_v31  ;;  %2089 = vmatprep.subr.bf16.mxu1 %v3838_v12  ;;  %v1649_v31 = vunpack.c.h.bf16 %v5619_v37  ;;  %v5620_v37 = vld [vmem:[#allocation16_spill] sm:$0xff] }
 0x7b5   :  { %2017 = vmatpush1.bf16.msra.mxu0 %v3833_v0  ;;  %2090 = vmatpush1.bf16.msra.mxu1 %v3836_v53 }
 0x7b6   :  { %2018 = vmatprep.subr.bf16.mxu0 %v3841_v62  ;;  %2091 = vmatprep.subr.bf16.mxu1 %v3844_v16 }
 0x7b9   :  { %2019 = vmatpush1.bf16.msra.mxu0 %v3839_v34  ;;  %2092 = vmatpush1.bf16.msra.mxu1 %v3842_v25 }
 0x7ba   :  { %2020 = vmatprep.subr.bf16.mxu0 %v3847_v26  ;;  %2093 = vmatprep.subr.bf16.mxu1 %v3850_v2 }
 0x7bd   :  { %2021 = vmatpush1.bf16.msra.mxu0 %v3845_v49  ;;  %2094 = vmatpush1.bf16.msra.mxu1 %v3848_v3 }
 0x7be   :  { %2022 = vmatprep.subr.bf16.mxu0 %v3853_v50  ;;  %2095 = vmatprep.subr.bf16.mxu1 %v3856_v4 }
 0x7c1   :  { %2023 = vmatpush1.bf16.msra.mxu0 %v3851_v51  ;;  %2096 = vmatpush1.bf16.msra.mxu1 %v3854_v27 }
 0x7c2   :  { %2024 = vmatprep.subr.bf16.mxu0 %v3859_v28  ;;  %2097 = vmatprep.subr.bf16.mxu1 %v3862_v22 }
 0x7c5   :  { %2025 = vmatpush1.bf16.msra.mxu0 %v3857_v29  ;;  %2098 = vmatpush1.bf16.msra.mxu1 %v3860_v32  ;;  %v3564_v32 = vld [vmem:[%s5587_s4 + $0x4] sm:$0xf]  ;;  %s4362_s4 = smov [#allocation11]  }
 0x7c6   :  { %2499 = vmatprep.subr.bf16.mxu0 %v5022_v8  ;;  %2540 = vmatprep.subr.bf16.mxu1 %v5024_v21  ;;  %s3442_s21 = sshll.u32 %s4362_s4, 4  ;;  %s3443_s21 = int_to_ptr.vmem [resolvable:$true] %s3442_s21 }
 0x7c7   :  { %s4323_s22 = scalar_lea.vmem %s3443_s21, 512  ;;  %p4328_p5 = scmp.lt.s32.totalorder %s3443_s21, %s3443_s21 }
 0x7c8   :  { %2043 = vmatmul.mubr.bf16.vlgmr.msra.gmra.mrb[48].mxu0 %v3863_v35  ;;  %2116 = vmatmul.mubr.bf16.vlgmr.msra.gmra.mrb[48].mxu1 %v3863_v35  ;;  %p4324_p4 = scmp.ne.s32.totalorder %s3443_s21, %s4323_s22  ;;  %p4329_p6 = scmp.lt.s32.totalorder %s4323_s22, %s4323_s22 }
 0x7c9   :  { %2052 = vmatprep.mubr.bf16.mxu0 %v5614_v11  ;;  %2125 = vmatprep.mubr.bf16.mxu1 %v5614_v11 }
 0x7ca   :  { %2500 = vmatpush1.bf16.msra.mxu0 %v5026_v13  ;;  %2541 = vmatpush1.bf16.msra.mxu1 %v5028_v17  ;;  %p4330_p7 = por %p4329_p6, %p4328_p5 }
 0x7cb   :  { %2501 = vmatprep.subr.bf16.mxu0 %v5034_v14  ;;  %2542 = vmatprep.subr.bf16.mxu1 %v5036_v19 }
 0x7cc   :  { %p4331_p8 = pnand %p4330_p7, %p4324_p4 }
 0x7ce   :  { %2502 = vmatpush1.bf16.msra.mxu0 %v5038_v23  ;;  %2543 = vmatpush1.bf16.msra.mxu1 %v5040_v24 }
 0x7cf   :  { %2503 = vmatprep.subr.bf16.mxu0 %v5046_v20  ;;  %2544 = vmatprep.subr.bf16.mxu1 %v5048_v38 }
 0x7d0   :  { %2053 = vmatmul.mubr.bf16.gmra.mrb[52].mxu0 %v3864_v9  ;;  %2126 = vmatmul.mubr.bf16.gmra.mrb[52].mxu1 %v3864_v9 }
 0x7d1   :  { %2062 = vmatprep.mubr.bf16.mxu0 %v5614_v11  ;;  %2135 = vmatprep.mubr.bf16.mxu1 %v5614_v11 }
 0x7d2   :  { %2504 = vmatpush1.bf16.msra.mxu0 %v5050_v39  ;;  %2545 = vmatpush1.bf16.msra.mxu1 %v5052_v40 }
 0x7d3   :  { %2505 = vmatprep.subr.bf16.mxu0 %v5058_v41  ;;  %2546 = vmatprep.subr.bf16.mxu1 %v5060_v42 }
 0x7d6   :  { %2506 = vmatpush1.bf16.msra.mxu0 %v5062_v43  ;;  %2547 = vmatpush1.bf16.msra.mxu1 %v5064_v45 }
 0x7d7   :  { %2507 = vmatprep.subr.bf16.mxu0 %v5070_v44  ;;  %2548 = vmatprep.subr.bf16.mxu1 %v5072_v15 }
 0x7d8   :  { %2063 = vmatmul.mubr.bf16.gmra.mrb[56].mxu0 %v3865_v7  ;;  %2136 = vmatmul.mubr.bf16.gmra.mrb[56].mxu1 %v3865_v7 }
 0x7d9   :  { %2072 = vmatprep.mubr.bf16.mxu0 %v5614_v11  ;;  %2145 = vmatprep.mubr.bf16.mxu1 %v5614_v11 }
 0x7da   :  { %2508 = vmatpush1.bf16.msra.mxu0 %v5074_v33  ;;  %2549 = vmatpush1.bf16.msra.mxu1 %v5076_v46 }
 0x7db   :  { %2509 = vmatprep.subr.bf16.mxu0 %v5082_v47  ;;  %2550 = vmatprep.subr.bf16.mxu1 %v5084_v48 }
 0x7de   :  { %2510 = vmatpush1.bf16.msra.mxu0 %v5086_v63  ;;  %2551 = vmatpush1.bf16.msra.mxu1 %v5088_v1 }
 0x7df   :  { %2511 = vmatprep.subr.bf16.mxu0 %v5094_v5  ;;  %2552 = vmatprep.subr.bf16.mxu1 %v5096_v54 }
 0x7e2   :  { %2512 = vmatpush1.bf16.msra.mxu0 %v5098_v55  ;;  %2553 = vmatpush1.bf16.msra.mxu1 %v5100_v56 }
 0x7e3   :  { %2513 = vmatprep.subr.bf16.mxu0 %v5102_v57  ;;  %2554 = vmatprep.subr.bf16.mxu1 %v5106_v58 }
 0x7e6   :  { %2514 = vmatpush1.bf16.msra.mxu0 %v5110_v59  ;;  %2555 = vmatpush1.bf16.msra.mxu1 %v5112_v60 }
 0x7e7   :  { %2617 = vmatprep.subr.bf16.mxu0 %v5022_v8  ;;  %2658 = vmatprep.subr.bf16.mxu1 %v5024_v21 }
 0x87b   :  { %v1684_v18 = vpop.f32.mrb[44].mxu0  ;;  %v1725_v6 = vpop.f32.mrb[44].mxu1 }
 0x87c   :  { %v1732_v12 = vadd.f32 %v1684_v18, %v1646_v61  ;;  %v1734_v0 = vadd.f32 %v1725_v6, %v1648_v30  ;;  %v1686_v53 = vpop.f32.mrb[45].mxu0  ;;  %v1727_v62 = vpop.f32.mrb[45].mxu1  ;;  %v5621_v30 = vsub.s32 0, %v5620_v37  ;;  %v5622_v6 = vsub.s32 2, %v5620_v37 }
 0x87d   :  { %v1733_v16 = vadd.f32 %v1686_v53, %v1647_v10  ;;  %v1735_v34 = vadd.f32 %v1727_v62, %v1649_v31  ;;  %v1688_v25 = vpop.f32.mrb[46].mxu0  ;;  %v1729_v26 = vpop.f32.mrb[46].mxu1  ;;  %v5624_v53 = vsub.s32 3, %v5620_v37 }
 0x87e   :  { %v3561_v2 = vmul.f32 -1.442695, %v1732_v12  ;;  %v1689_v49 = vpop.f32.mrb[47].mxu0  ;;  %v1730_v3 = vpop.f32.mrb[47].mxu1  ;;  %v5129_v18 = vrot.slane %v3564_v32, %v5621_v30  ;;  %v5133_v10 = vrot.slane %v3564_v32, %v5622_v6  ;;  %v5623_v12 = vsub.s32 1, %v5620_v37 }
 0x87f   :  { %v3562_v50 = vmul.f32 -1.442695, %v1733_v16  ;;  %v3563_v4 = vmul.f32 -1.442695, %v1735_v34  ;;  %v5142_v62 = vrot.slane %v3564_v32, %v5624_v53 }
 0x880   :  { %4027 = vpow2.f32 %v3561_v2 }
 0x881   :  { %4029 = vpow2.f32 %v3562_v50 }
 0x882   :  { %4031 = vpow2.f32 %v3563_v4 }
 0x883   :  { %4033 = vtanh.f32 %v1734_v0  ;;  %v5138_v0 = vrot.slane %v3564_v32, %v5623_v12 }
 0x88a   :  { %v4028_v51 = vpop.eup %4027 }
 0x88b   :  { %v4030_v27 = vpop.eup %4029  ;;  %v1742_v28 = vadd.f32 1.0, %v4028_v51 }
 0x88c   :  { %v1743_v22 = vadd.f32 1.0, %v4030_v27  ;;  %v4032_v29 = vpop.eup %4031 }
 0x88d   :  { %4035 = vrcp.f32 %v1742_v28  ;;  %v4034_v35 = vpop.eup %4033  ;;  %v1752_v61 = vadd.f32 1.0, %v4032_v29 }
 0x88e   :  { %4037 = vrcp.f32 %v1743_v22 }
 0x88f   :  { %4039 = vrcp.f32 %v1752_v61 }
 0x897   :  { %v4036_v9 = vpop.eup %4035 }
 0x898   :  { %v4038_v7 = vpop.eup %4037  ;;  %v1756_v36 = vmul.f32 %v4036_v9, %v4034_v35 }
 0x899   :  { %v1755_v31 = vmul.f32 %v4038_v7, %v5011_v52 }
 0x89b   :  { %v1757_v16 = vadd.f32 %v1756_v36, %v1755_v31  ;;  %v2044_v34 = vpop.f32.mrb[48].mxu0  ;;  %v2117_v25 = vpop.f32.mrb[48].mxu1 }
 0x89c   :  { %v2045_v26 = vadd.f32 %v2044_v34, %v5129_v18  ;;  %v2118_v2 = vadd.f32 %v2117_v25, %v5133_v10  ;;  %v2046_v49 = vpop.f32.mrb[49].mxu0  ;;  %v2119_v3 = vpop.f32.mrb[49].mxu1 }
 0x89d   :  { %4041 = vtanh.f32 %v1757_v16  ;;  %v2047_v52 = vadd.f32 %v2046_v49, %v5138_v0  ;;  %v2120_v50 = vadd.f32 %v2119_v3, %v5142_v62  ;;  %v2048_v4 = vpop.f32.mrb[50].mxu0  ;;  %v2121_v51 = vpop.f32.mrb[50].mxu1 }
 0x89e   :  { %v2049_v27 = vadd.f32 %v2048_v4, %v5129_v18  ;;  %v2122_v28 = vadd.f32 %v2121_v51, %v5133_v10  ;;  %v2050_v22 = vpop.f32.mrb[51].mxu0  ;;  %v2123_v29 = vpop.f32.mrb[51].mxu1 }
 0x89f   :  { %v5150_v32 = vpack.c.bf16 %v2047_v52, %v2045_v26  ;;  %v5152_v35 = vpack.c.bf16 %v2120_v50, %v2118_v2  ;;  %v2051_v9 = vadd.f32 %v2050_v22, %v5138_v0  ;;  %v2124_v7 = vadd.f32 %v2123_v29, %v5142_v62  ;;  %v4040_v2 = vpop.eup %4039 }
 0x8a1   :  { %v5156_v36 = vpack.c.bf16 %v2051_v9, %v2049_v27  ;;  %v5158_v61 = vpack.c.bf16 %v2124_v7, %v2122_v28 }
 0x8a3   :  { %v2054_v37 = vpop.f32.mrb[52].mxu0  ;;  %v2127_v30 = vpop.f32.mrb[52].mxu1 }
 0x8a4   :  { %v2055_v6 = vadd.f32 %v2054_v37, %v5129_v18  ;;  %v2128_v31 = vadd.f32 %v2127_v30, %v5133_v10  ;;  %v2056_v12 = vpop.f32.mrb[53].mxu0  ;;  %v2129_v53 = vpop.f32.mrb[53].mxu1 }
 0x8a5   :  { %v2057_v16 = vadd.f32 %v2056_v12, %v5138_v0  ;;  %v2130_v34 = vadd.f32 %v2129_v53, %v5142_v62  ;;  %v2058_v25 = vpop.f32.mrb[54].mxu0  ;;  %v2131_v26 = vpop.f32.mrb[54].mxu1 }
 0x8a6   :  { %v2059_v49 = vadd.f32 %v2058_v25, %v5129_v18  ;;  %v2132_v3 = vadd.f32 %v2131_v26, %v5133_v10  ;;  %v2060_v52 = vpop.f32.mrb[55].mxu0  ;;  %v2133_v50 = vpop.f32.mrb[55].mxu1 }
 0x8a7   :  { %v4042_v4 = vpop.eup %4041  ;;  %v5166_v51 = vpack.c.bf16 %v2057_v16, %v2055_v6  ;;  %v5168_v27 = vpack.c.bf16 %v2130_v34, %v2128_v31  ;;  %v2061_v28 = vadd.f32 %v2060_v52, %v5138_v0  ;;  %v2134_v22 = vadd.f32 %v2133_v50, %v5142_v62 }
 0x8a8   :  { %v1759_v29 = vmul.f32 %v4042_v4, %v4040_v2 }
 0x8a9   :  { %v5172_v9 = vpack.c.bf16 %v2061_v28, %v2059_v49  ;;  %v5174_v7 = vpack.c.bf16 %v2134_v22, %v2132_v3 }
 0x8aa   :  { %v1760_v37 = vpack.c.bf16 %v1759_v29, %v1759_v29 }
 0x8ab   :  { %v2064_v30 = vpop.f32.mrb[56].mxu0  ;;  %v2137_v12 = vpop.f32.mrb[56].mxu1 }
 0x8ac   :  { %1762 = vst [vmem:[#allocation11 + $0x1c] sm:$0xf] %v1760_v37  ;;  %v2065_v53 = vadd.f32 %v2064_v30, %v5129_v18  ;;  %v2138_v6 = vadd.f32 %v2137_v12, %v5133_v10  ;;  %v2066_v16 = vpop.f32.mrb[57].mxu0  ;;  %v2139_v31 = vpop.f32.mrb[57].mxu1 }
 0x8ad   :  { %v2067_v34 = vadd.f32 %v2066_v16, %v5138_v0  ;;  %v2140_v25 = vadd.f32 %v2139_v31, %v5142_v62  ;;  %v2068_v26 = vpop.f32.mrb[58].mxu0  ;;  %v2141_v2 = vpop.f32.mrb[58].mxu1 }
 0x8ae   :  { %v2069_v49 = vadd.f32 %v2068_v26, %v5129_v18  ;;  %v2142_v3 = vadd.f32 %v2141_v2, %v5133_v10  ;;  %v2070_v52 = vpop.f32.mrb[59].mxu0  ;;  %v2143_v50 = vpop.f32.mrb[59].mxu1 }
 0x8af   :  { %v5182_v4 = vpack.c.bf16 %v2067_v34, %v2065_v53  ;;  %v5184_v28 = vpack.c.bf16 %v2140_v25, %v2138_v6  ;;  %v2071_v22 = vadd.f32 %v2070_v52, %v5138_v0  ;;  %v2144_v29 = vadd.f32 %v2143_v50, %v5142_v62 }
 0x8b1   :  { %v5188_v37 = vpack.c.bf16 %v2071_v22, %v2069_v49  ;;  %v5190_v30 = vpack.c.bf16 %v2144_v29, %v2142_v3 }
 0x8b3   :  { %5625 = vst [vmem:[#allocation17_spill] sm:$0xff] %v5188_v37  ;;  %5626 = vst [vmem:[#allocation18_spill] sm:$0xff] %v5190_v30  ;;  %v3902_v12 = vld [vmem:[#allocation11 + $0x18] sm:$0xff]  }
 0x8b4   :  { %2073 = vmatmul.mubr.bf16.gmra.mrb[60].mxu0 %v3902_v12  ;;  %2146 = vmatmul.mubr.bf16.gmra.mrb[60].mxu1 %v3902_v12 }
 0x8b5   :  { %2531 = vmatprep.mubr.bf16.mxu0 %v5614_v11  ;;  %2572 = vmatprep.mubr.bf16.mxu1 %v5614_v11 }
 0x8bc   :  { %2532 = vmatmul.mubr.bf16.vlgmr.msra.gmra.mrb[64].mxu0 %v5614_v11  ;;  %2573 = vmatmul.mubr.bf16.vlgmr.msra.gmra.mrb[64].mxu1 %v5614_v11 }
 0x8bd   :  { %2618 = vmatpush1.bf16.msra.mxu0 %v5026_v13  ;;  %2659 = vmatpush1.bf16.msra.mxu1 %v5028_v17 }
 0x8be   :  { %2619 = vmatprep.subr.bf16.mxu0 %v5034_v14  ;;  %2660 = vmatprep.subr.bf16.mxu1 %v5036_v19 }
 0x8bf   :  { %2649 = vmatprep.mubr.bf16.mxu0 %v5614_v11  ;;  %2690 = vmatprep.mubr.bf16.mxu1 %v5614_v11 }
 0x8c1   :  { %2620 = vmatpush1.bf16.msra.mxu0 %v5038_v23  ;;  %2661 = vmatpush1.bf16.msra.mxu1 %v5040_v24 }
 0x8c2   :  { %2621 = vmatprep.subr.bf16.mxu0 %v5046_v20  ;;  %2662 = vmatprep.subr.bf16.mxu1 %v5048_v38 }
 0x8c5   :  { %2622 = vmatpush1.bf16.msra.mxu0 %v5050_v39  ;;  %2663 = vmatpush1.bf16.msra.mxu1 %v5052_v40 }
 0x8c6   :  { %2623 = vmatprep.subr.bf16.mxu0 %v5058_v41  ;;  %2664 = vmatprep.subr.bf16.mxu1 %v5060_v42 }
 0x8c9   :  { %2624 = vmatpush1.bf16.msra.mxu0 %v5062_v43  ;;  %2665 = vmatpush1.bf16.msra.mxu1 %v5064_v45 }
 0x8ca   :  { %2625 = vmatprep.subr.bf16.mxu0 %v5070_v44  ;;  %2666 = vmatprep.subr.bf16.mxu1 %v5072_v15 }
 0x8cd   :  { %2626 = vmatpush1.bf16.msra.mxu0 %v5074_v33  ;;  %2667 = vmatpush1.bf16.msra.mxu1 %v5076_v46 }
 0x8ce   :  { %2627 = vmatprep.subr.bf16.mxu0 %v5082_v47  ;;  %2668 = vmatprep.subr.bf16.mxu1 %v5084_v48 }
 0x8d1   :  { %2628 = vmatpush1.bf16.msra.mxu0 %v5086_v63  ;;  %2669 = vmatpush1.bf16.msra.mxu1 %v5088_v1 }
 0x8d2   :  { %2629 = vmatprep.subr.bf16.mxu0 %v5094_v5  ;;  %2670 = vmatprep.subr.bf16.mxu1 %v5096_v54 }
 0x8d5   :  { %2630 = vmatpush1.bf16.msra.mxu0 %v5098_v55  ;;  %2671 = vmatpush1.bf16.msra.mxu1 %v5100_v56 }
 0x8d6   :  { %2631 = vmatprep.subr.bf16.mxu0 %v5102_v57  ;;  %2672 = vmatprep.subr.bf16.mxu1 %v5106_v58 }
 0x8d9   :  { %2632 = vmatpush1.bf16.msra.mxu0 %v5110_v59  ;;  %2673 = vmatpush1.bf16.msra.mxu1 %v5112_v60 }
 0x8da   :  { %2735 = vmatprep.subr.bf16.mxu0 %v5022_v8  ;;  %2776 = vmatprep.subr.bf16.mxu1 %v5024_v21 }
 0x987   :  { %v2074_v53 = vpop.f32.mrb[60].mxu0  ;;  %v2147_v6 = vpop.f32.mrb[60].mxu1 }
 0x988   :  { %v2075_v16 = vadd.f32 %v2074_v53, %v5129_v18  ;;  %v2148_v31 = vadd.f32 %v2147_v6, %v5133_v10  ;;  %v2076_v34 = vpop.f32.mrb[61].mxu0  ;;  %v2149_v25 = vpop.f32.mrb[61].mxu1 }
 0x989   :  { %v2077_v26 = vadd.f32 %v2076_v34, %v5138_v0  ;;  %v2150_v2 = vadd.f32 %v2149_v25, %v5142_v62  ;;  %v2078_v49 = vpop.f32.mrb[62].mxu0  ;;  %v2151_v3 = vpop.f32.mrb[62].mxu1  ;;  %v2335_v25 = vunpack.c.l.bf16 %v5150_v32 }
 0x98a   :  { %v2079_v52 = vadd.f32 %v2078_v49, %v5129_v18  ;;  %v2152_v50 = vadd.f32 %v2151_v3, %v5133_v10  ;;  %v2080_v22 = vpop.f32.mrb[63].mxu0  ;;  %v2153_v29 = vpop.f32.mrb[63].mxu1  ;;  %v2337_v18 = vunpack.c.l.bf16 %v5152_v35  ;;  %v2336_v3 = vunpack.c.h.bf16 %v5150_v32 }
 0x98b   :  { %v5236_v12 = vpack.c.bf16 %v2077_v26, %v2075_v16  ;;  %v5238_v30 = vpack.c.bf16 %v2150_v2, %v2148_v31  ;;  %v2081_v53 = vadd.f32 %v2080_v22, %v5138_v0  ;;  %v2154_v6 = vadd.f32 %v2153_v29, %v5142_v62 }
 0x98c   :  { %v2338_v16 = vunpack.c.h.bf16 %v5152_v35 }
 0x98d   :  { %5627 = vst [vmem:[#allocation19_spill] sm:$0xff] %v5236_v12  ;;  %5628 = vst [vmem:[#allocation20_spill] sm:$0xff] %v5238_v30  ;;  %v5242_v37 = vpack.c.bf16 %v2081_v53, %v2079_v52  ;;  %v5244_v34 = vpack.c.bf16 %v2154_v6, %v2152_v50 }
 0x98f   :  { %5629 = vst [vmem:[#allocation21_spill] sm:$0xff] %v5242_v37  ;;  %5630 = vst [vmem:[#allocation16_spill] sm:$0xff] %v5244_v34  ;;  %v2533_v49 = vpop.f32.mrb[64].mxu0  ;;  %v2574_v10 = vpop.f32.mrb[64].mxu1 }
 0x990   :  { %v2581_v31 = vadd.f32 %v2533_v49, %v2335_v25  ;;  %v2583_v26 = vadd.f32 %v2574_v10, %v2337_v18  ;;  %v2535_v2 = vpop.f32.mrb[65].mxu0  ;;  %v2576_v0 = vpop.f32.mrb[65].mxu1 }
 0x991   :  { %v2582_v22 = vadd.f32 %v2535_v2, %v2336_v3  ;;  %v2584_v62 = vadd.f32 %v2576_v0, %v2338_v16  ;;  %v2537_v52 = vpop.f32.mrb[66].mxu0  ;;  %v2578_v29 = vpop.f32.mrb[66].mxu1 }
 0x992   :  { %v3649_v50 = vmul.f32 -1.442695, %v2581_v31  ;;  %v2538_v53 = vpop.f32.mrb[67].mxu0  ;;  %v2579_v6 = vpop.f32.mrb[67].mxu1  ;;  %v2614_v52 = vunpack.c.h.bf16 %v5156_v36  ;;  %v2616_v29 = vunpack.c.h.bf16 %v5158_v61 }
 0x993   :  { %v3650_v34 = vmul.f32 -1.442695, %v2582_v22  ;;  %v3651_v37 = vmul.f32 -1.442695, %v2584_v62 }
 0x994   :  { %4043 = vpow2.f32 %v3649_v50 }
 0x995   :  { %4045 = vpow2.f32 %v3650_v34 }
 0x996   :  { %4047 = vpow2.f32 %v3651_v37 }
 0x997   :  { %4049 = vtanh.f32 %v2583_v26  ;;  %v2615_v26 = vunpack.c.l.bf16 %v5158_v61 }
 0x99e   :  { %v4044_v30 = vpop.eup %4043 }
 0x99f   :  { %v4046_v12 = vpop.eup %4045  ;;  %v2591_v32 = vadd.f32 1.0, %v4044_v30 }
 0x9a0   :  { %v2592_v35 = vadd.f32 1.0, %v4046_v12  ;;  %v4048_v25 = vpop.eup %4047  ;;  %v2613_v12 = vunpack.c.l.bf16 %v5156_v36 }
 0x9a1   :  { %4051 = vrcp.f32 %v2591_v32  ;;  %v4050_v18 = vpop.eup %4049  ;;  %v2601_v16 = vadd.f32 1.0, %v4048_v25 }
 0x9a2   :  { %4053 = vrcp.f32 %v2592_v35 }
 0x9a3   :  { %4055 = vrcp.f32 %v2601_v16 }
 0x9ab   :  { %v4052_v49 = vpop.eup %4051 }
 0x9ac   :  { %v4054_v10 = vpop.eup %4053  ;;  %v2605_v3 = vmul.f32 %v4052_v49, %v4050_v18 }
 0x9ad   :  { %v2604_v31 = vmul.f32 0.0, %v4054_v10  ;;  %v4056_v34 = vpop.eup %4055 }
 0x9af   :  { %v5250_v2 = vadd.f32 %v2605_v3, %v2604_v31 }
 0x9b1   :  { %4057 = vtanh.f32 %v5250_v2 }
 0x9bb   :  { %v4058_v0 = vpop.eup %4057 }
 0x9bc   :  { %v2608_v30 = vmul.f32 %v4058_v0, %v4056_v34 }
 0x9be   :  { %v2609_v37 = vpack.c.bf16 %v2608_v30, %v2608_v30 }
 0x9c0   :  { %2610 = vst [vmem:[#allocation11] sm:$0xf] %v2609_v37  ;;  %2650 = vmatmul.mubr.bf16.vlgmr.msra.gmra.mrb[68].mxu0 %v2609_v37  ;;  %2691 = vmatmul.mubr.bf16.vlgmr.msra.gmra.mrb[68].mxu1 %v2609_v37 }
 0x9c1   :  { %2736 = vmatpush1.bf16.msra.mxu0 %v5026_v13  ;;  %2777 = vmatpush1.bf16.msra.mxu1 %v5028_v17 }
 0x9c2   :  { %2737 = vmatprep.subr.bf16.mxu0 %v5034_v14  ;;  %2778 = vmatprep.subr.bf16.mxu1 %v5036_v19 }
 0x9c3   :  { %2767 = vmatprep.mubr.bf16.mxu0 %v5614_v11  ;;  %2808 = vmatprep.mubr.bf16.mxu1 %v5614_v11 }
 0x9c5   :  { %2738 = vmatpush1.bf16.msra.mxu0 %v5038_v23  ;;  %2779 = vmatpush1.bf16.msra.mxu1 %v5040_v24 }
 0x9c6   :  { %2739 = vmatprep.subr.bf16.mxu0 %v5046_v20  ;;  %2780 = vmatprep.subr.bf16.mxu1 %v5048_v38 }
 0x9c9   :  { %2740 = vmatpush1.bf16.msra.mxu0 %v5050_v39  ;;  %2781 = vmatpush1.bf16.msra.mxu1 %v5052_v40 }
 0x9ca   :  { %2741 = vmatprep.subr.bf16.mxu0 %v5058_v41  ;;  %2782 = vmatprep.subr.bf16.mxu1 %v5060_v42 }
 0x9cd   :  { %2742 = vmatpush1.bf16.msra.mxu0 %v5062_v43  ;;  %2783 = vmatpush1.bf16.msra.mxu1 %v5064_v45 }
 0x9ce   :  { %2743 = vmatprep.subr.bf16.mxu0 %v5070_v44  ;;  %2784 = vmatprep.subr.bf16.mxu1 %v5072_v15 }
 0x9d1   :  { %2744 = vmatpush1.bf16.msra.mxu0 %v5074_v33  ;;  %2785 = vmatpush1.bf16.msra.mxu1 %v5076_v46 }
 0x9d2   :  { %2745 = vmatprep.subr.bf16.mxu0 %v5082_v47  ;;  %2786 = vmatprep.subr.bf16.mxu1 %v5084_v48 }
 0x9d5   :  { %2746 = vmatpush1.bf16.msra.mxu0 %v5086_v63  ;;  %2787 = vmatpush1.bf16.msra.mxu1 %v5088_v1 }
 0x9d6   :  { %2747 = vmatprep.subr.bf16.mxu0 %v5094_v5  ;;  %2788 = vmatprep.subr.bf16.mxu1 %v5096_v54 }
 0x9d9   :  { %2748 = vmatpush1.bf16.msra.mxu0 %v5098_v55  ;;  %2789 = vmatpush1.bf16.msra.mxu1 %v5100_v56 }
 0x9da   :  { %2749 = vmatprep.subr.bf16.mxu0 %v5102_v57  ;;  %2790 = vmatprep.subr.bf16.mxu1 %v5106_v58 }
 0x9dd   :  { %2750 = vmatpush1.bf16.msra.mxu0 %v5110_v59  ;;  %2791 = vmatpush1.bf16.msra.mxu1 %v5112_v60 }
 0x9de   :  { %2853 = vmatprep.subr.bf16.mxu0 %v5022_v8  ;;  %2894 = vmatprep.subr.bf16.mxu1 %v5024_v21 }
 0xa93   :  { %v2651_v22 = vpop.f32.mrb[68].mxu0  ;;  %v2692_v62 = vpop.f32.mrb[68].mxu1 }
 0xa94   :  { %v2699_v50 = vadd.f32 %v2651_v22, %v2613_v12  ;;  %v2701_v53 = vadd.f32 %v2692_v62, %v2615_v26  ;;  %v2653_v6 = vpop.f32.mrb[69].mxu0  ;;  %v2694_v32 = vpop.f32.mrb[69].mxu1 }
 0xa95   :  { %v2700_v35 = vadd.f32 %v2653_v6, %v2614_v52  ;;  %v2702_v25 = vadd.f32 %v2694_v32, %v2616_v29  ;;  %v2655_v18 = vpop.f32.mrb[70].mxu0  ;;  %v2696_v49 = vpop.f32.mrb[70].mxu1 }
 0xa96   :  { %v3652_v10 = vmul.f32 -1.442695, %v2699_v50  ;;  %v2656_v3 = vpop.f32.mrb[71].mxu0  ;;  %v2697_v16 = vpop.f32.mrb[71].mxu1 }
 0xa97   :  { %v3653_v31 = vmul.f32 -1.442695, %v2700_v35  ;;  %v3654_v34 = vmul.f32 -1.442695, %v2702_v25  ;;  %v2733_v25 = vunpack.c.l.bf16 %v5168_v27  ;;  %v2734_v3 = vunpack.c.h.bf16 %v5168_v27 }
 0xa98   :  { %4059 = vpow2.f32 %v3652_v10  ;;  %v2732_v10 = vunpack.c.h.bf16 %v5166_v51 }
 0xa99   :  { %4061 = vpow2.f32 %v3653_v31 }
 0xa9a   :  { %4063 = vpow2.f32 %v3654_v34 }
 0xa9b   :  { %4065 = vtanh.f32 %v2701_v53 }
 0xaa2   :  { %v4060_v0 = vpop.eup %4059 }
 0xaa3   :  { %v4062_v30 = vpop.eup %4061  ;;  %v2709_v36 = vadd.f32 1.0, %v4060_v0 }
 0xaa4   :  { %v2710_v61 = vadd.f32 1.0, %v4062_v30  ;;  %v4064_v37 = vpop.eup %4063 }
 0xaa5   :  { %4067 = vrcp.f32 %v2709_v36  ;;  %v4066_v12 = vpop.eup %4065  ;;  %v2719_v52 = vadd.f32 1.0, %v4064_v37 }
 0xaa6   :  { %4069 = vrcp.f32 %v2710_v61 }
 0xaa7   :  { %4071 = vrcp.f32 %v2719_v52 }
 0xaaf   :  { %v4068_v26 = vpop.eup %4067 }
 0xab0   :  { %v4070_v22 = vpop.eup %4069  ;;  %v2723_v62 = vmul.f32 %v4068_v26, %v4066_v12 }
 0xab1   :  { %v2722_v29 = vmul.f32 %v4070_v22, %v5250_v2  ;;  %v4072_v6 = vpop.eup %4071  ;;  %v2731_v2 = vunpack.c.l.bf16 %v5166_v51 }
 0xab3   :  { %v5292_v50 = vadd.f32 %v2723_v62, %v2722_v29 }
 0xab5   :  { %4073 = vtanh.f32 %v5292_v50 }
 0xabf   :  { %v4074_v32 = vpop.eup %4073 }
 0xac0   :  { %v2726_v35 = vmul.f32 %v4074_v32, %v4072_v6 }
 0xac2   :  { %v2727_v53 = vpack.c.bf16 %v2726_v35, %v2726_v35 }
 0xac4   :  { %2728 = vst [vmem:[#allocation11 + $0x4] sm:$0xf] %v2727_v53  ;;  %2768 = vmatmul.mubr.bf16.vlgmr.msra.gmra.mrb[72].mxu0 %v2727_v53  ;;  %2809 = vmatmul.mubr.bf16.vlgmr.msra.gmra.mrb[72].mxu1 %v2727_v53 }
 0xac5   :  { %2854 = vmatpush1.bf16.msra.mxu0 %v5026_v13  ;;  %2895 = vmatpush1.bf16.msra.mxu1 %v5028_v17 }
 0xac6   :  { %2855 = vmatprep.subr.bf16.mxu0 %v5034_v14  ;;  %2896 = vmatprep.subr.bf16.mxu1 %v5036_v19 }
 0xac7   :  { %2885 = vmatprep.mubr.bf16.mxu0 %v5614_v11  ;;  %2926 = vmatprep.mubr.bf16.mxu1 %v5614_v11 }
 0xac9   :  { %2856 = vmatpush1.bf16.msra.mxu0 %v5038_v23  ;;  %2897 = vmatpush1.bf16.msra.mxu1 %v5040_v24 }
 0xaca   :  { %2857 = vmatprep.subr.bf16.mxu0 %v5046_v20  ;;  %2898 = vmatprep.subr.bf16.mxu1 %v5048_v38 }
 0xacd   :  { %2858 = vmatpush1.bf16.msra.mxu0 %v5050_v39  ;;  %2899 = vmatpush1.bf16.msra.mxu1 %v5052_v40 }
 0xace   :  { %2859 = vmatprep.subr.bf16.mxu0 %v5058_v41  ;;  %2900 = vmatprep.subr.bf16.mxu1 %v5060_v42 }
 0xad1   :  { %2860 = vmatpush1.bf16.msra.mxu0 %v5062_v43  ;;  %2901 = vmatpush1.bf16.msra.mxu1 %v5064_v45 }
 0xad2   :  { %2861 = vmatprep.subr.bf16.mxu0 %v5070_v44  ;;  %2902 = vmatprep.subr.bf16.mxu1 %v5072_v15 }
 0xad5   :  { %2862 = vmatpush1.bf16.msra.mxu0 %v5074_v33  ;;  %2903 = vmatpush1.bf16.msra.mxu1 %v5076_v46 }
 0xad6   :  { %2863 = vmatprep.subr.bf16.mxu0 %v5082_v47  ;;  %2904 = vmatprep.subr.bf16.mxu1 %v5084_v48 }
 0xad9   :  { %2864 = vmatpush1.bf16.msra.mxu0 %v5086_v63  ;;  %2905 = vmatpush1.bf16.msra.mxu1 %v5088_v1 }
 0xada   :  { %2865 = vmatprep.subr.bf16.mxu0 %v5094_v5  ;;  %2906 = vmatprep.subr.bf16.mxu1 %v5096_v54 }
 0xadd   :  { %2866 = vmatpush1.bf16.msra.mxu0 %v5098_v55  ;;  %2907 = vmatpush1.bf16.msra.mxu1 %v5100_v56 }
 0xade   :  { %2867 = vmatprep.subr.bf16.mxu0 %v5102_v57  ;;  %2908 = vmatprep.subr.bf16.mxu1 %v5106_v58 }
 0xae1   :  { %2868 = vmatpush1.bf16.msra.mxu0 %v5110_v59  ;;  %2909 = vmatpush1.bf16.msra.mxu1 %v5112_v60 }
 0xae2   :  { %2971 = vmatprep.subr.bf16.mxu0 %v5022_v8  ;;  %3012 = vmatprep.subr.bf16.mxu1 %v5024_v21 }
 0xb97   :  { %v2769_v18 = vpop.f32.mrb[72].mxu0  ;;  %v2810_v49 = vpop.f32.mrb[72].mxu1 }
 0xb98   :  { %v2817_v16 = vadd.f32 %v2769_v18, %v2731_v2  ;;  %v2819_v31 = vadd.f32 %v2810_v49, %v2733_v25  ;;  %v2771_v34 = vpop.f32.mrb[73].mxu0  ;;  %v2812_v0 = vpop.f32.mrb[73].mxu1 }
 0xb99   :  { %v2818_v30 = vadd.f32 %v2771_v34, %v2732_v10  ;;  %v2820_v36 = vadd.f32 %v2812_v0, %v2734_v3  ;;  %v2773_v61 = vpop.f32.mrb[74].mxu0  ;;  %v2814_v37 = vpop.f32.mrb[74].mxu1 }
 0xb9a   :  { %v3655_v12 = vmul.f32 -1.442695, %v2817_v16  ;;  %v2774_v26 = vpop.f32.mrb[75].mxu0  ;;  %v2815_v22 = vpop.f32.mrb[75].mxu1 }
 0xb9b   :  { %v3656_v62 = vmul.f32 -1.442695, %v2818_v30  ;;  %v3657_v52 = vmul.f32 -1.442695, %v2820_v36 }
 0xb9c   :  { %4075 = vpow2.f32 %v3655_v12 }
 0xb9d   :  { %4077 = vpow2.f32 %v3656_v62 }
 0xb9e   :  { %4079 = vpow2.f32 %v3657_v52 }
 0xb9f   :  { %4081 = vtanh.f32 %v2819_v31 }
 0xba6   :  { %v4076_v29 = vpop.eup %4075 }
 0xba7   :  { %v4078_v6 = vpop.eup %4077  ;;  %v2827_v51 = vadd.f32 1.0, %v4076_v29 }
 0xba8   :  { %v2828_v27 = vadd.f32 1.0, %v4078_v6  ;;  %v4080_v32 = vpop.eup %4079 }
 0xba9   :  { %4083 = vrcp.f32 %v2827_v51  ;;  %v4082_v35 = vpop.eup %4081  ;;  %v2837_v18 = vadd.f32 1.0, %v4080_v32 }
 0xbaa   :  { %4085 = vrcp.f32 %v2828_v27 }
 0xbab   :  { %4087 = vrcp.f32 %v2837_v18 }
 0xbb3   :  { %v4084_v53 = vpop.eup %4083 }
 0xbb4   :  { %v4086_v2 = vpop.eup %4085  ;;  %v2841_v25 = vmul.f32 %v4084_v53, %v4082_v35 }
 0xbb5   :  { %v2840_v49 = vmul.f32 %v4086_v2, %v5292_v50  ;;  %v4088_v3 = vpop.eup %4087 }
 0xbb7   :  { %v5334_v10 = vadd.f32 %v2841_v25, %v2840_v49  ;;  %v5379_v49 = vld [vmem:[#allocation9 + $0x100] ss:$16 sps:$4 sm:$0xff]  }
 0xbb9   :  { %4089 = vtanh.f32 %v5334_v10 }
 0xbc3   :  { %v4090_v16 = vpop.eup %4089 }
 0xbc4   :  { %v2844_v34 = vmul.f32 %v4090_v16, %v4088_v3  ;;  %v5382_v3 = vld [vmem:[#allocation9 + $0x108] ss:$16 sps:$4 sm:$0xff]   ;;  %v5388_v16 = vld [vmem:[#allocation9 + $0x12c] ss:$16 sps:$4 sm:$0xff]  }
 0xbc6   :  { %v2845_v31 = vpack.c.bf16 %v2844_v34, %v2844_v34  ;;  %v5393_v34 = vld [vmem:[#allocation9 + $0x120] ss:$16 sps:$4 sm:$0xff]  }
 0xbc8   :  { %2846 = vst [vmem:[#allocation11 + $0x8] sm:$0xf] %v2845_v31  ;;  %2886 = vmatmul.mubr.bf16.vlgmr.msra.gmra.mrb[76].mxu0 %v2845_v31  ;;  %2927 = vmatmul.mubr.bf16.vlgmr.msra.gmra.mrb[76].mxu1 %v2845_v31  ;;  %v5396_v31 = vld [vmem:[#allocation9 + $0x128] ss:$16 sps:$4 sm:$0xff]  }
 0xbc9   :  { %2972 = vmatpush1.bf16.msra.mxu0 %v5026_v13  ;;  %3013 = vmatpush1.bf16.msra.mxu1 %v5028_v17  ;;  %v2849_v13 = vunpack.c.l.bf16 %v5172_v9  ;;  %v2851_v17 = vunpack.c.l.bf16 %v5174_v7 }
 0xbca   :  { %2973 = vmatprep.subr.bf16.mxu0 %v5034_v14  ;;  %3014 = vmatprep.subr.bf16.mxu1 %v5036_v19 }
 0xbcb   :  { %3003 = vmatprep.mubr.bf16.mxu0 %v5614_v11  ;;  %3044 = vmatprep.mubr.bf16.mxu1 %v5614_v11 }
 0xbcd   :  { %2974 = vmatpush1.bf16.msra.mxu0 %v5038_v23  ;;  %3015 = vmatpush1.bf16.msra.mxu1 %v5040_v24  ;;  %v2850_v23 = vunpack.c.h.bf16 %v5172_v9  ;;  %v2852_v24 = vunpack.c.h.bf16 %v5174_v7 }
 0xbce   :  { %2975 = vmatprep.subr.bf16.mxu0 %v5046_v20  ;;  %3016 = vmatprep.subr.bf16.mxu1 %v5048_v38 }
 0xbd1   :  { %2976 = vmatpush1.bf16.msra.mxu0 %v5050_v39  ;;  %3017 = vmatpush1.bf16.msra.mxu1 %v5052_v40 }
 0xbd2   :  { %2977 = vmatprep.subr.bf16.mxu0 %v5058_v41  ;;  %3018 = vmatprep.subr.bf16.mxu1 %v5060_v42 }
 0xbd5   :  { %2978 = vmatpush1.bf16.msra.mxu0 %v5062_v43  ;;  %3019 = vmatpush1.bf16.msra.mxu1 %v5064_v45 }
 0xbd6   :  { %2979 = vmatprep.subr.bf16.mxu0 %v5070_v44  ;;  %3020 = vmatprep.subr.bf16.mxu1 %v5072_v15 }
 0xbd9   :  { %2980 = vmatpush1.bf16.msra.mxu0 %v5074_v33  ;;  %3021 = vmatpush1.bf16.msra.mxu1 %v5076_v46 }
 0xbda   :  { %2981 = vmatprep.subr.bf16.mxu0 %v5082_v47  ;;  %3022 = vmatprep.subr.bf16.mxu1 %v5084_v48 }
 0xbdd   :  { %2982 = vmatpush1.bf16.msra.mxu0 %v5086_v63  ;;  %3023 = vmatpush1.bf16.msra.mxu1 %v5088_v1 }
 0xbde   :  { %2983 = vmatprep.subr.bf16.mxu0 %v5094_v5  ;;  %3024 = vmatprep.subr.bf16.mxu1 %v5096_v54 }
 0xbe1   :  { %2984 = vmatpush1.bf16.msra.mxu0 %v5098_v55  ;;  %3025 = vmatpush1.bf16.msra.mxu1 %v5100_v56 }
 0xbe2   :  { %2985 = vmatprep.subr.bf16.mxu0 %v5102_v57  ;;  %3026 = vmatprep.subr.bf16.mxu1 %v5106_v58 }
 0xbe5   :  { %2986 = vmatpush1.bf16.msra.mxu0 %v5110_v59  ;;  %3027 = vmatpush1.bf16.msra.mxu1 %v5112_v60 }
 0xbe6   :  { %3089 = vmatprep.subr.bf16.mxu0 %v5022_v8  ;;  %3130 = vmatprep.subr.bf16.mxu1 %v5024_v21 }
 0xc9b   :  { %v2887_v14 = vpop.f32.mrb[76].mxu0  ;;  %v2928_v19 = vpop.f32.mrb[76].mxu1 }
 0xc9c   :  { %v2935_v20 = vadd.f32 %v2887_v14, %v2849_v13  ;;  %v2937_v38 = vadd.f32 %v2928_v19, %v2851_v17  ;;  %v2889_v39 = vpop.f32.mrb[77].mxu0  ;;  %v2930_v40 = vpop.f32.mrb[77].mxu1  ;;  %v5399_v13 = vld [vmem:[#allocation9 + $0x144] ss:$16 sps:$4 sm:$0xff]   ;;  %v5402_v17 = vld [vmem:[#allocation9 + $0x14c] ss:$16 sps:$4 sm:$0xff]  }
 0xc9d   :  { %v2936_v50 = vadd.f32 %v2889_v39, %v2850_v23  ;;  %v2938_v0 = vadd.f32 %v2930_v40, %v2852_v24  ;;  %v2891_v30 = vpop.f32.mrb[78].mxu0  ;;  %v2932_v8 = vpop.f32.mrb[78].mxu1  ;;  %v5405_v14 = vld [vmem:[#allocation9 + $0x140] ss:$16 sps:$4 sm:$0xff]   ;;  %v5408_v19 = vld [vmem:[#allocation9 + $0x148] ss:$16 sps:$4 sm:$0xff]  }
 0xc9e   :  { %v3658_v36 = vmul.f32 -1.442695, %v2935_v20  ;;  %v2892_v21 = vpop.f32.mrb[79].mxu0  ;;  %v2933_v61 = vpop.f32.mrb[79].mxu1 }
 0xc9f   :  { %v3659_v37 = vmul.f32 -1.442695, %v2936_v50  ;;  %v3660_v12 = vmul.f32 -1.442695, %v2938_v0 }
 0xca0   :  { %4091 = vpow2.f32 %v3658_v36 }
 0xca1   :  { %4093 = vpow2.f32 %v3659_v37 }
 0xca2   :  { %4095 = vpow2.f32 %v3660_v12 }
 0xca3   :  { %4097 = vtanh.f32 %v2937_v38 }
 0xcaa   :  { %v4092_v26 = vpop.eup %4091 }
 0xcab   :  { %v4094_v22 = vpop.eup %4093  ;;  %v2945_v9 = vadd.f32 1.0, %v4092_v26  ;;  %v5457_v26 = vld [vmem:[#allocation9 + $0x164] ss:$16 sps:$4 sm:$0xff]  }
 0xcac   :  { %v2946_v7 = vadd.f32 1.0, %v4094_v22  ;;  %v4096_v62 = vpop.eup %4095  ;;  %v5460_v22 = vld [vmem:[#allocation9 + $0x16c] ss:$16 sps:$4 sm:$0xff]  }
 0xcad   :  { %4099 = vrcp.f32 %v2945_v9  ;;  %v4098_v52 = vpop.eup %4097  ;;  %v2955_v27 = vadd.f32 1.0, %v4096_v62  ;;  %v5463_v9 = vld [vmem:[#allocation9 + $0x160] ss:$16 sps:$4 sm:$0xff]   ;;  %v5469_v62 = vld [vmem:[#allocation9 + $0x184] ss:$16 sps:$4 sm:$0xff]  }
 0xcae   :  { %4101 = vrcp.f32 %v2946_v7  ;;  %v5466_v7 = vld [vmem:[#allocation9 + $0x168] ss:$16 sps:$4 sm:$0xff]  }
 0xcaf   :  { %4103 = vrcp.f32 %v2955_v27  ;;  %v5484_v27 = vld [vmem:[#allocation9 + $0x1ac] ss:$16 sps:$4 sm:$0xff]  }
 0xcb7   :  { %v4100_v29 = vpop.eup %4099 }
 0xcb8   :  { %v4102_v6 = vpop.eup %4101  ;;  %v2959_v51 = vmul.f32 %v4100_v29, %v4098_v52  ;;  %v5472_v52 = vld [vmem:[#allocation9 + $0x18c] ss:$16 sps:$4 sm:$0xff]   ;;  %v5475_v29 = vld [vmem:[#allocation9 + $0x180] ss:$16 sps:$4 sm:$0xff]  }
 0xcb9   :  { %v2958_v32 = vmul.f32 %v4102_v6, %v5334_v10  ;;  %v4104_v53 = vpop.eup %4103  ;;  %v5385_v10 = vld [vmem:[#allocation9 + $0x124] ss:$16 sps:$4 sm:$0xff]   ;;  %v5478_v6 = vld [vmem:[#allocation9 + $0x188] ss:$16 sps:$4 sm:$0xff]  }
 0xcbb   :  { %v5376_v35 = vadd.f32 %v2959_v51, %v2958_v32  ;;  %v5481_v51 = vld [vmem:[#allocation9 + $0x1a4] ss:$16 sps:$4 sm:$0xff]   ;;  %v5487_v32 = vld [vmem:[#allocation9 + $0x1a0] ss:$16 sps:$4 sm:$0xff]  }
 0xcbd   :  { %4105 = vtanh.f32 %v5376_v35 }
 0xcc7   :  { %v4106_v2 = vpop.eup %4105 }
 0xcc8   :  { %v2962_v25 = vmul.f32 %v4106_v2, %v4104_v53  ;;  %v5493_v53 = vld [vmem:[#allocation9 + $0x1c4] ss:$16 sps:$4 sm:$0xff]   ;;  %v5496_v2 = vld [vmem:[#allocation9 + $0x1cc] ss:$16 sps:$4 sm:$0xff]  }
 0xcca   :  { %v2963_v18 = vpack.c.bf16 %v2962_v25, %v2962_v25  ;;  %v5499_v25 = vld [vmem:[#allocation9 + $0x1c0] ss:$16 sps:$4 sm:$0xff]  }
 0xccc   :  { %2964 = vst [vmem:[#allocation11 + $0xc] sm:$0xf] %v2963_v18  ;;  %3004 = vmatmul.mubr.bf16.vlgmr.msra.gmra.mrb[80].mxu0 %v2963_v18  ;;  %3045 = vmatmul.mubr.bf16.vlgmr.msra.gmra.mrb[80].mxu1 %v2963_v18  ;;  %v5502_v18 = vld [vmem:[#allocation9 + $0x1c8] ss:$16 sps:$4 sm:$0xff]  }
 0xccd   :  { %3090 = vmatpush1.bf16.msra.mxu0 %v5379_v49  ;;  %3131 = vmatpush1.bf16.msra.mxu1 %v5382_v3 }
 0xcce   :  { %3091 = vmatprep.subr.bf16.mxu0 %v5385_v10  ;;  %3132 = vmatprep.subr.bf16.mxu1 %v5388_v16 }
 0xccf   :  { %3121 = vmatprep.mubr.bf16.mxu0 %v5614_v11  ;;  %3162 = vmatprep.mubr.bf16.mxu1 %v5614_v11 }
 0xcd1   :  { %3092 = vmatpush1.bf16.msra.mxu0 %v5393_v34  ;;  %3133 = vmatpush1.bf16.msra.mxu1 %v5396_v31 }
 0xcd2   :  { %3093 = vmatprep.subr.bf16.mxu0 %v5399_v13  ;;  %3134 = vmatprep.subr.bf16.mxu1 %v5402_v17 }
 0xcd5   :  { %3094 = vmatpush1.bf16.msra.mxu0 %v5405_v14  ;;  %3135 = vmatpush1.bf16.msra.mxu1 %v5408_v19 }
 0xcd6   :  { %3095 = vmatprep.subr.bf16.mxu0 %v5058_v41  ;;  %3136 = vmatprep.subr.bf16.mxu1 %v5060_v42  ;;  %v5431_v41 = vld [vmem:[#allocation9 + $0x104] ss:$16 sps:$4 sm:$0xff]   ;;  %v5434_v42 = vld [vmem:[#allocation9 + $0x10c] ss:$16 sps:$4 sm:$0xff]  }
 0xcd9   :  { %3096 = vmatpush1.bf16.msra.mxu0 %v5062_v43  ;;  %3137 = vmatpush1.bf16.msra.mxu1 %v5064_v45  ;;  %v2967_v43 = vunpack.c.l.bf16 %v5182_v4  ;;  %v2969_v45 = vunpack.c.l.bf16 %v5184_v28 }
 0xcda   :  { %3097 = vmatprep.subr.bf16.mxu0 %v5070_v44  ;;  %3138 = vmatprep.subr.bf16.mxu1 %v5072_v15 }
 0xcdd   :  { %3098 = vmatpush1.bf16.msra.mxu0 %v5074_v33  ;;  %3139 = vmatpush1.bf16.msra.mxu1 %v5076_v46  ;;  %v2968_v33 = vunpack.c.h.bf16 %v5182_v4  ;;  %v2970_v46 = vunpack.c.h.bf16 %v5184_v28 }
 0xcde   :  { %3099 = vmatprep.subr.bf16.mxu0 %v5082_v47  ;;  %3140 = vmatprep.subr.bf16.mxu1 %v5084_v48 }
 0xce1   :  { %3100 = vmatpush1.bf16.msra.mxu0 %v5086_v63  ;;  %3141 = vmatpush1.bf16.msra.mxu1 %v5088_v1 }
 0xce2   :  { %3101 = vmatprep.subr.bf16.mxu0 %v5094_v5  ;;  %3142 = vmatprep.subr.bf16.mxu1 %v5096_v54 }
 0xce5   :  { %3102 = vmatpush1.bf16.msra.mxu0 %v5098_v55  ;;  %3143 = vmatpush1.bf16.msra.mxu1 %v5100_v56 }
 0xce6   :  { %3103 = vmatprep.subr.bf16.mxu0 %v5102_v57  ;;  %3144 = vmatprep.subr.bf16.mxu1 %v5106_v58 }
 0xce9   :  { %3104 = vmatpush1.bf16.msra.mxu0 %v5110_v59  ;;  %3145 = vmatpush1.bf16.msra.mxu1 %v5112_v60 }
 0xcea   :  { %3207 = vmatprep.subr.bf16.mxu0 %v5431_v41  ;;  %3248 = vmatprep.subr.bf16.mxu1 %v5434_v42 }
 0xd9f   :  { %v3005_v44 = vpop.f32.mrb[80].mxu0  ;;  %v3046_v15 = vpop.f32.mrb[80].mxu1 }
 0xda0   :  { %v3053_v47 = vadd.f32 %v3005_v44, %v2967_v43  ;;  %v3055_v48 = vadd.f32 %v3046_v15, %v2969_v45  ;;  %v3007_v63 = vpop.f32.mrb[81].mxu0  ;;  %v3048_v1 = vpop.f32.mrb[81].mxu1  ;;  %v5505_v43 = vld [vmem:[#allocation9 + $0x1e4] ss:$16 sps:$4 sm:$0xff]   ;;  %v5508_v45 = vld [vmem:[#allocation9 + $0x1ec] ss:$16 sps:$4 sm:$0xff]  }
 0xda1   :  { %v3054_v5 = vadd.f32 %v3007_v63, %v2968_v33  ;;  %v3056_v54 = vadd.f32 %v3048_v1, %v2970_v46  ;;  %v3009_v55 = vpop.f32.mrb[82].mxu0  ;;  %v3050_v56 = vpop.f32.mrb[82].mxu1  ;;  %v5511_v44 = vld [vmem:[#allocation9 + $0x1e0] ss:$16 sps:$4 sm:$0xff]   ;;  %v5514_v15 = vld [vmem:[#allocation9 + $0x1e8] ss:$16 sps:$4 sm:$0xff]  }
 0xda2   :  { %v3661_v57 = vmul.f32 -1.442695, %v3053_v47  ;;  %v3010_v58 = vpop.f32.mrb[83].mxu0  ;;  %v3051_v59 = vpop.f32.mrb[83].mxu1  ;;  %v5631_v33 = vld [vmem:[#allocation17_spill] sm:$0xff]  ;;  %v5632_v47 = vld [vmem:[#allocation18_spill] sm:$0xff] }
 0xda3   :  { %v3662_v60 = vmul.f32 -1.442695, %v3054_v5  ;;  %v3663_v23 = vmul.f32 -1.442695, %v3056_v54  ;;  %v3085_v46 = vunpack.c.l.bf16 %v5631_v33  ;;  %v3086_v5 = vunpack.c.h.bf16 %v5631_v33 }
 0xda4   :  { %4107 = vpow2.f32 %v3661_v57  ;;  %v3088_v54 = vunpack.c.h.bf16 %v5632_v47 }
 0xda5   :  { %4109 = vpow2.f32 %v3662_v60 }
 0xda6   :  { %4111 = vpow2.f32 %v3663_v23 }
 0xda7   :  { %4113 = vtanh.f32 %v3055_v48  ;;  %v3087_v48 = vunpack.c.l.bf16 %v5632_v47 }
 0xdae   :  { %v4108_v24 = vpop.eup %4107 }
 0xdaf   :  { %v4110_v20 = vpop.eup %4109  ;;  %v3063_v4 = vadd.f32 1.0, %v4108_v24 }
 0xdb0   :  { %v3064_v28 = vadd.f32 1.0, %v4110_v20  ;;  %v4112_v38 = vpop.eup %4111 }
 0xdb1   :  { %4115 = vrcp.f32 %v3063_v4  ;;  %v4114_v39 = vpop.eup %4113  ;;  %v3073_v30 = vadd.f32 1.0, %v4112_v38 }
 0xdb2   :  { %4117 = vrcp.f32 %v3064_v28 }
 0xdb3   :  { %4119 = vrcp.f32 %v3073_v30 }
 0xdbb   :  { %v4116_v40 = vpop.eup %4115 }
 0xdbc   :  { %v4118_v50 = vpop.eup %4117  ;;  %v3077_v0 = vmul.f32 %v4116_v40, %v4114_v39 }
 0xdbd   :  { %v3076_v8 = vmul.f32 %v4118_v50, %v5376_v35  ;;  %v4120_v21 = vpop.eup %4119  ;;  %v5490_v35 = vld [vmem:[#allocation9 + $0x1a8] ss:$16 sps:$4 sm:$0xff]  }
 0xdbf   :  { %v5442_v36 = vadd.f32 %v3077_v0, %v3076_v8 }
 0xdc1   :  { %4121 = vtanh.f32 %v5442_v36 }
 0xdcb   :  { %v4122_v61 = vpop.eup %4121 }
 0xdcc   :  { %v3080_v37 = vmul.f32 %v4122_v61, %v4120_v21 }
 0xdce   :  { %v3081_v12 = vpack.c.bf16 %v3080_v37, %v3080_v37 }
 0xdd0   :  { %3082 = vst [vmem:[#allocation11 + $0x10] sm:$0xf] %v3081_v12  ;;  %3122 = vmatmul.mubr.bf16.vlgmr.msra.gmra.mrb[84].mxu0 %v3081_v12  ;;  %3163 = vmatmul.mubr.bf16.vlgmr.msra.gmra.mrb[84].mxu1 %v3081_v12 }
 0xdd1   :  { %3208 = vmatpush1.bf16.msra.mxu0 %v5379_v49  ;;  %3249 = vmatpush1.bf16.msra.mxu1 %v5382_v3 }
 0xdd2   :  { %3209 = vmatprep.subr.bf16.mxu0 %v5385_v10  ;;  %3250 = vmatprep.subr.bf16.mxu1 %v5388_v16 }
 0xdd3   :  { %3239 = vmatprep.mubr.bf16.mxu0 %v5614_v11  ;;  %3280 = vmatprep.mubr.bf16.mxu1 %v5614_v11 }
 0xdd5   :  { %3210 = vmatpush1.bf16.msra.mxu0 %v5393_v34  ;;  %3251 = vmatpush1.bf16.msra.mxu1 %v5396_v31 }
 0xdd6   :  { %3211 = vmatprep.subr.bf16.mxu0 %v5399_v13  ;;  %3252 = vmatprep.subr.bf16.mxu1 %v5402_v17 }
 0xdd9   :  { %3212 = vmatpush1.bf16.msra.mxu0 %v5405_v14  ;;  %3253 = vmatpush1.bf16.msra.mxu1 %v5408_v19 }
 0xdda   :  { %3213 = vmatprep.subr.bf16.mxu0 %v5457_v26  ;;  %3254 = vmatprep.subr.bf16.mxu1 %v5460_v22 }
 0xddd   :  { %3214 = vmatpush1.bf16.msra.mxu0 %v5463_v9  ;;  %3255 = vmatpush1.bf16.msra.mxu1 %v5466_v7 }
 0xdde   :  { %3215 = vmatprep.subr.bf16.mxu0 %v5469_v62  ;;  %3256 = vmatprep.subr.bf16.mxu1 %v5472_v52 }
 0xde1   :  { %3216 = vmatpush1.bf16.msra.mxu0 %v5475_v29  ;;  %3257 = vmatpush1.bf16.msra.mxu1 %v5478_v6 }
 0xde2   :  { %3217 = vmatprep.subr.bf16.mxu0 %v5481_v51  ;;  %3258 = vmatprep.subr.bf16.mxu1 %v5484_v27 }
 0xde5   :  { %3218 = vmatpush1.bf16.msra.mxu0 %v5487_v32  ;;  %3259 = vmatpush1.bf16.msra.mxu1 %v5490_v35 }
 0xde6   :  { %3219 = vmatprep.subr.bf16.mxu0 %v5493_v53  ;;  %3260 = vmatprep.subr.bf16.mxu1 %v5496_v2 }
 0xde9   :  { %3220 = vmatpush1.bf16.msra.mxu0 %v5499_v25  ;;  %3261 = vmatpush1.bf16.msra.mxu1 %v5502_v18 }
 0xdea   :  { %3221 = vmatprep.subr.bf16.mxu0 %v5505_v43  ;;  %3262 = vmatprep.subr.bf16.mxu1 %v5508_v45 }
 0xded   :  { %3222 = vmatpush1.bf16.msra.mxu0 %v5511_v44  ;;  %3263 = vmatpush1.bf16.msra.mxu1 %v5514_v15 }
 0xdee   :  { %3325 = vmatprep.subr.bf16.mxu0 %v5431_v41  ;;  %3366 = vmatprep.subr.bf16.mxu1 %v5434_v42 }
 0xea3   :  { %v3123_v63 = vpop.f32.mrb[84].mxu0  ;;  %v3164_v1 = vpop.f32.mrb[84].mxu1 }
 0xea4   :  { %v3171_v55 = vadd.f32 %v3123_v63, %v3085_v46  ;;  %v3173_v56 = vadd.f32 %v3164_v1, %v3087_v48  ;;  %v3125_v57 = vpop.f32.mrb[85].mxu0  ;;  %v3166_v58 = vpop.f32.mrb[85].mxu1 }
 0xea5   :  { %v3172_v59 = vadd.f32 %v3125_v57, %v3086_v5  ;;  %v3174_v60 = vadd.f32 %v3166_v58, %v3088_v54  ;;  %v3127_v23 = vpop.f32.mrb[86].mxu0  ;;  %v3168_v41 = vpop.f32.mrb[86].mxu1  ;;  %v5635_v57 = vld [vmem:[#allocation21_spill] sm:$0xff] }
 0xea6   :  { %v3664_v24 = vmul.f32 -1.442695, %v3171_v55  ;;  %v3128_v42 = vpop.f32.mrb[87].mxu0  ;;  %v3169_v20 = vpop.f32.mrb[87].mxu1  ;;  %v3321_v58 = vunpack.c.l.bf16 %v5635_v57 }
 0xea7   :  { %v3665_v4 = vmul.f32 -1.442695, %v3172_v59  ;;  %v3666_v28 = vmul.f32 -1.442695, %v3174_v60  ;;  %v5636_v59 = vld [vmem:[#allocation16_spill] sm:$0xff] }
 0xea8   :  { %4123 = vpow2.f32 %v3664_v24  ;;  %v3323_v60 = vunpack.c.l.bf16 %v5636_v59  ;;  %v3322_v24 = vunpack.c.h.bf16 %v5635_v57  ;;  %v3324_v42 = vunpack.c.h.bf16 %v5636_v59 }
 0xea9   :  { %4125 = vpow2.f32 %v3665_v4 }
 0xeaa   :  { %4127 = vpow2.f32 %v3666_v28 }
 0xeab   :  { %4129 = vtanh.f32 %v3173_v56 }
 0xeb2   :  { %v4124_v38 = vpop.eup %4123 }
 0xeb3   :  { %v4126_v39 = vpop.eup %4125  ;;  %v3181_v40 = vadd.f32 1.0, %v4124_v38 }
 0xeb4   :  { %v3182_v50 = vadd.f32 1.0, %v4126_v39  ;;  %v4128_v0 = vpop.eup %4127 }
 0xeb5   :  { %4131 = vrcp.f32 %v3181_v40  ;;  %v4130_v30 = vpop.eup %4129  ;;  %v3191_v37 = vadd.f32 1.0, %v4128_v0 }
 0xeb6   :  { %4133 = vrcp.f32 %v3182_v50 }
 0xeb7   :  { %4135 = vrcp.f32 %v3191_v37 }
 0xebf   :  { %v4132_v8 = vpop.eup %4131 }
 0xec0   :  { %v4134_v21 = vpop.eup %4133  ;;  %v3195_v61 = vmul.f32 %v4132_v8, %v4130_v30 }
 0xec1   :  { %v3194_v12 = vmul.f32 %v4134_v21, %v5442_v36  ;;  %v4136_v46 = vpop.eup %4135 }
 0xec3   :  { %v5524_v33 = vadd.f32 %v3195_v61, %v3194_v12 }
 0xec5   :  { %4137 = vtanh.f32 %v5524_v33 }
 0xecf   :  { %v4138_v47 = vpop.eup %4137 }
 0xed0   :  { %v3198_v48 = vmul.f32 %v4138_v47, %v4136_v46 }
 0xed2   :  { %v3199_v63 = vpack.c.bf16 %v3198_v48, %v3198_v48 }
 0xed4   :  { %3200 = vst [vmem:[#allocation11 + $0x14] sm:$0xf] %v3199_v63  ;;  %3240 = vmatmul.mubr.bf16.vlgmr.msra.gmra.mrb[88].mxu0 %v3199_v63  ;;  %3281 = vmatmul.mubr.bf16.vlgmr.msra.gmra.mrb[88].mxu1 %v3199_v63 }
 0xed5   :  { %3326 = vmatpush1.bf16.msra.mxu0 %v5379_v49  ;;  %3367 = vmatpush1.bf16.msra.mxu1 %v5382_v3  ;;  %v5634_v3 = vld [vmem:[#allocation20_spill] sm:$0xff] }
 0xed6   :  { %3327 = vmatprep.subr.bf16.mxu0 %v5385_v10  ;;  %3368 = vmatprep.subr.bf16.mxu1 %v5388_v16  ;;  %v3205_v10 = vunpack.c.l.bf16 %v5634_v3 }
 0xed7   :  { %3357 = vmatprep.mubr.bf16.mxu0 %v5614_v11  ;;  %3398 = vmatprep.mubr.bf16.mxu1 %v5614_v11  ;;  %v5633_v11 = vld [vmem:[#allocation19_spill] sm:$0xff] }
 0xed8   :  { %v3203_v49 = vunpack.c.l.bf16 %v5633_v11 }
 0xed9   :  { %3328 = vmatpush1.bf16.msra.mxu0 %v5393_v34  ;;  %3369 = vmatpush1.bf16.msra.mxu1 %v5396_v31  ;;  %v3204_v31 = vunpack.c.h.bf16 %v5633_v11 }
 0xeda   :  { %3329 = vmatprep.subr.bf16.mxu0 %v5399_v13  ;;  %3370 = vmatprep.subr.bf16.mxu1 %v5402_v17  ;;  %v3206_v13 = vunpack.c.h.bf16 %v5634_v3 }
 0xedd   :  { %3330 = vmatpush1.bf16.msra.mxu0 %v5405_v14  ;;  %3371 = vmatpush1.bf16.msra.mxu1 %v5408_v19 }
 0xede   :  { %3331 = vmatprep.subr.bf16.mxu0 %v5457_v26  ;;  %3372 = vmatprep.subr.bf16.mxu1 %v5460_v22 }
 0xee1   :  { %3332 = vmatpush1.bf16.msra.mxu0 %v5463_v9  ;;  %3373 = vmatpush1.bf16.msra.mxu1 %v5466_v7 }
 0xee2   :  { %3333 = vmatprep.subr.bf16.mxu0 %v5469_v62  ;;  %3374 = vmatprep.subr.bf16.mxu1 %v5472_v52 }
 0xee5   :  { %3334 = vmatpush1.bf16.msra.mxu0 %v5475_v29  ;;  %3375 = vmatpush1.bf16.msra.mxu1 %v5478_v6 }
 0xee6   :  { %3335 = vmatprep.subr.bf16.mxu0 %v5481_v51  ;;  %3376 = vmatprep.subr.bf16.mxu1 %v5484_v27 }
 0xee9   :  { %3336 = vmatpush1.bf16.msra.mxu0 %v5487_v32  ;;  %3377 = vmatpush1.bf16.msra.mxu1 %v5490_v35 }
 0xeea   :  { %3337 = vmatprep.subr.bf16.mxu0 %v5493_v53  ;;  %3378 = vmatprep.subr.bf16.mxu1 %v5496_v2 }
 0xeed   :  { %3338 = vmatpush1.bf16.msra.mxu0 %v5499_v25  ;;  %3379 = vmatpush1.bf16.msra.mxu1 %v5502_v18 }
 0xeee   :  { %3339 = vmatprep.subr.bf16.mxu0 %v5505_v43  ;;  %3380 = vmatprep.subr.bf16.mxu1 %v5508_v45 }
 0xef1   :  { %3340 = vmatpush1.bf16.msra.mxu0 %v5511_v44  ;;  %3381 = vmatpush1.bf16.msra.mxu1 %v5514_v15 }
 0xfa7   :  { %v3241_v16 = vpop.f32.mrb[88].mxu0  ;;  %v3282_v34 = vpop.f32.mrb[88].mxu1 }
 0xfa8   :  { %v3289_v17 = vadd.f32 %v3241_v16, %v3203_v49  ;;  %v3291_v14 = vadd.f32 %v3282_v34, %v3205_v10  ;;  %v3243_v19 = vpop.f32.mrb[89].mxu0  ;;  %v3284_v36 = vpop.f32.mrb[89].mxu1 }
 0xfa9   :  { %v3290_v26 = vadd.f32 %v3243_v19, %v3204_v31  ;;  %v3292_v22 = vadd.f32 %v3284_v36, %v3206_v13  ;;  %v3245_v9 = vpop.f32.mrb[90].mxu0  ;;  %v3286_v7 = vpop.f32.mrb[90].mxu1 }
 0xfaa   :  { %v3667_v62 = vmul.f32 -1.442695, %v3289_v17  ;;  %v3246_v52 = vpop.f32.mrb[91].mxu0  ;;  %v3287_v29 = vpop.f32.mrb[91].mxu1 }
 0xfab   :  { %v3668_v6 = vmul.f32 -1.442695, %v3290_v26  ;;  %v3669_v51 = vmul.f32 -1.442695, %v3292_v22 }
 0xfac   :  { %4139 = vpow2.f32 %v3667_v62 }
 0xfad   :  { %4141 = vpow2.f32 %v3668_v6 }
 0xfae   :  { %4143 = vpow2.f32 %v3669_v51 }
 0xfaf   :  { %4145 = vtanh.f32 %v3291_v14 }
 0xfb6   :  { %v4140_v27 = vpop.eup %4139 }
 0xfb7   :  { %v4142_v32 = vpop.eup %4141  ;;  %v3299_v35 = vadd.f32 1.0, %v4140_v27 }
 0xfb8   :  { %v3300_v53 = vadd.f32 1.0, %v4142_v32  ;;  %v4144_v2 = vpop.eup %4143 }
 0xfb9   :  { %4147 = vrcp.f32 %v3299_v35  ;;  %v4146_v25 = vpop.eup %4145  ;;  %v3309_v44 = vadd.f32 1.0, %v4144_v2 }
 0xfba   :  { %4149 = vrcp.f32 %v3300_v53 }
 0xfbb   :  { %4151 = vrcp.f32 %v3309_v44 }
 0xfc3   :  { %v4148_v18 = vpop.eup %4147 }
 0xfc4   :  { %v4150_v43 = vpop.eup %4149  ;;  %v3313_v45 = vmul.f32 %v4148_v18, %v4146_v25 }
 0xfc5   :  { %v3312_v15 = vmul.f32 %v4150_v43, %v5524_v33  ;;  %v4152_v5 = vpop.eup %4151 }
 0xfc7   :  { %v3314_v1 = vadd.f32 %v3313_v45, %v3312_v15 }
 0xfc9   :  { %4153 = vtanh.f32 %v3314_v1 }
 0xfd3   :  { %v4154_v54 = vpop.eup %4153 }
 0xfd4   :  { %v3316_v55 = vmul.f32 %v4154_v54, %v4152_v5 }
 0xfd6   :  { %v3317_v56 = vpack.c.bf16 %v3316_v55, %v3316_v55 }
 0xfd8   :  { %3318 = vst [vmem:[#allocation11 + $0x18] sm:$0xf] %v3317_v56  ;;  %3358 = vmatmul.mubr.bf16.vlgmr.msra.gmra.mrb[92].mxu0 %v3317_v56  ;;  %3399 = vmatmul.mubr.bf16.vlgmr.msra.gmra.mrb[92].mxu1 %v3317_v56 }
0x10ab   :  { %v3359_v23 = vpop.f32.mrb[92].mxu0  ;;  %v3400_v41 = vpop.f32.mrb[92].mxu1 }
0x10ac   :  { %v3407_v20 = vadd.f32 %v3359_v23, %v3321_v58  ;;  %v3409_v4 = vadd.f32 %v3400_v41, %v3323_v60  ;;  %v3361_v28 = vpop.f32.mrb[93].mxu0  ;;  %v3402_v38 = vpop.f32.mrb[93].mxu1 }
0x10ad   :  { %v3408_v39 = vadd.f32 %v3361_v28, %v3322_v24  ;;  %v3410_v40 = vadd.f32 %v3402_v38, %v3324_v42  ;;  %v3363_v50 = vpop.f32.mrb[94].mxu0  ;;  %v3404_v0 = vpop.f32.mrb[94].mxu1 }
0x10ae   :  { %v3670_v30 = vmul.f32 -1.442695, %v3407_v20  ;;  %v3364_v8 = vpop.f32.mrb[95].mxu0  ;;  %v3405_v21 = vpop.f32.mrb[95].mxu1 }
0x10af   :  { %v3671_v61 = vmul.f32 -1.442695, %v3408_v39  ;;  %v3672_v37 = vmul.f32 -1.442695, %v3410_v40 }
0x10b0   :  { %4155 = vpow2.f32 %v3670_v30 }
0x10b1   :  { %4157 = vpow2.f32 %v3671_v61 }
0x10b2   :  { %4159 = vpow2.f32 %v3672_v37 }
0x10b3   :  { %4161 = vtanh.f32 %v3409_v4 }
0x10ba   :  { %v4156_v12 = vpop.eup %4155 }
0x10bb   :  { %v4158_v33 = vpop.eup %4157  ;;  %v3417_v46 = vadd.f32 1.0, %v4156_v12 }
0x10bc   :  { %v3418_v47 = vadd.f32 1.0, %v4158_v33  ;;  %v4160_v48 = vpop.eup %4159 }
0x10bd   :  { %4163 = vrcp.f32 %v3417_v46  ;;  %v4162_v63 = vpop.eup %4161  ;;  %v3427_v10 = vadd.f32 1.0, %v4160_v48 }
0x10be   :  { %4165 = vrcp.f32 %v3418_v47 }
0x10bf   :  { %4167 = vrcp.f32 %v3427_v10 }
0x10c7   :  { %v4164_v11 = vpop.eup %4163 }
0x10c8   :  { %v4166_v49 = vpop.eup %4165  ;;  %v3431_v3 = vmul.f32 %v4164_v11, %v4162_v63 }
0x10c9   :  { %v3430_v16 = vmul.f32 %v4166_v49, %v3314_v1  ;;  %v4168_v31 = vpop.eup %4167 }
0x10cb   :  { %v3432_v34 = vadd.f32 %v3431_v3, %v3430_v16 }
0x10cd   :  { %4169 = vtanh.f32 %v3432_v34 }
0x10d7   :  { %v4170_v13 = vpop.eup %4169 }
0x10d8   :  { %v3434_v17 = vmul.f32 %v4170_v13, %v4168_v31 }
0x10da   :  { %v3435_v14 = vpack.c.bf16 %v3434_v17, %v3434_v17 }
0x10dc   :  { %3436 = vst [vmem:[#allocation11 + $0x1c] sm:$0xf] %v3435_v14 }
0x10dd   :  { %4334 = shalt.err (!%p4331_p8)
}
0x10de   :  { %s4335_s25 = scalar_lea.hbm %s5588_s5, 512 }
0x10df   :  { %p4336_p9 = scmp.ne.s32.totalorder %s5588_s5, %s4335_s25  ;;  %p4339_p10 = scmp.lt.u32.totalorder %s4335_s25, %s5588_s5 }
0x10e1   :  { %p4341_p11 = pnand %p4339_p10, %p4336_p9 }
0x10e3   :  { %4344 = shalt.err (!%p4341_p11)
}
0x10e4   :  { %3448 = dma.vmem_to_hbm [thread:$0]  %s3443_s21, 512, %s5588_s5, [#allocation5], %s4357_s1, %s4357_s1, %s4358_s17  }
0x10e5   :  { %4351 = dma.done.wait [#allocation5], 512  }
0x10e6   :  { %4352 = vsyncadd [#allocation5], 4294966784 }
0x10e7   :  { %3452 = vsyncpa [#allocation4], 1 }
0x10e8   :  { %3453 = vsyncpa [#allocation7], 1 }
0x10e9   :  { %3454 = vsyncpa [#allocation10], 1 }
0x10ea   :  { %3455 = vsyncpa [#allocation5], 1 }

</bundles_post_ra>
